<compile_context>
chip_gen: v7x
topology: tpu7x:2x2x1
jax: 0.10.0
libtpu: 0.0.40
codegen_flags: <defaults>
</compile_context>

<pallas_src>
import functools
import math

import numpy as np
import jax
import jax.numpy as jnp
from jax.experimental import pallas as pl
from jax.experimental.pallas import tpu as pltpu


# ----------------------------------------------------------------------------
# Generic row-tiled pallas_call helper (single- or multi-output)
# ----------------------------------------------------------------------------
_MAX_BLOCK_ROWS = 4096
_LN_EPS = 1e-5


def _round_up(n, m):
    return ((n + m - 1) // m) * m


def _row_map(ndim):
    return lambda i, _nd=ndim: (i,) + (0,) * (_nd - 1)


def _full_map(ndim):
    return lambda i, _nd=ndim: (0,) * _nd


def _tiled_call(kernel_fn, n, out_widths, inputs):
    """inputs: list of (array, mode); mode 'row' (tiled over rows) or 'full'
    (whole array visible to every grid step).  out_widths: int or tuple."""
    single = isinstance(out_widths, int)
    widths = (out_widths,) if single else tuple(out_widths)
    br = min(_MAX_BLOCK_ROWS, _round_up(max(n, 1), 8))
    arrs, specs = [], []
    for arr, mode in inputs:
        arr = jnp.asarray(arr, jnp.float32)
        arrs.append(arr)
        if mode == "row":
            specs.append(pl.BlockSpec((br,) + arr.shape[1:], _row_map(arr.ndim)))
        else:
            specs.append(pl.BlockSpec(arr.shape, _full_map(arr.ndim)))
    out_shape = tuple(jax.ShapeDtypeStruct((n, w), jnp.float32) for w in widths)
    out_specs = tuple(pl.BlockSpec((br, w), _row_map(2)) for w in widths)
    if single:
        out_shape, out_specs = out_shape[0], out_specs[0]
    # TODO(synk): on v7x, CORE_PARALLEL sharding of the row grid and an explicit
    # vmem_limit_bytes budget would use both TensorCores; kept generic here.
    return pl.pallas_call(
        kernel_fn,
        out_shape=out_shape,
        grid=(pl.cdiv(n, br),),
        in_specs=specs,
        out_specs=out_specs,
        compiler_params=pltpu.CompilerParams(dimension_semantics=("parallel",)),
    )(*arrs)


def _layernorm(x, g, b, eps):
    mean = jnp.mean(x, axis=-1, keepdims=True)
    var = jnp.mean((x - mean) ** 2, axis=-1, keepdims=True)
    return (x - mean) * jax.lax.rsqrt(var + eps) * g + b


def _bf16_dot(a, w):
    return jnp.dot(a.astype(jnp.bfloat16), w.astype(jnp.bfloat16),
                   preferred_element_type=jnp.float32)


# ----------------------------------------------------------------------------
# Kernel 1: pre-LayerNorm + lane-dense projection, multi-output split
# ----------------------------------------------------------------------------
def _ln_proj_kernel(*refs, splits, has_bias, eps):
    if has_bias:
        x_ref, g_ref, b_ref, w_ref, bias_ref = refs[:5]
        o_refs = refs[5:]
    else:
        x_ref, g_ref, b_ref, w_ref = refs[:4]
        bias_ref = None
        o_refs = refs[4:]
    x = _layernorm(x_ref[...], g_ref[...], b_ref[...], eps)
    y = _bf16_dot(x, w_ref[...])
    if bias_ref is not None:
        y = y + bias_ref[...]
    off = 0
    for o_ref, s in zip(o_refs, splits):
        o_ref[...] = y[:, off:off + s]
        off += s


def pallas_ln_proj(x, w, b, ln, splits, eps=_LN_EPS):
    x = jnp.asarray(x, jnp.float32)
    n, d_in = x.shape
    splits = tuple(splits)
    if n == 0:
        return tuple(jnp.zeros((0, s), jnp.float32) for s in splits)
    inputs = [
        (x, "row"),
        (jnp.asarray(ln["g"], jnp.float32).reshape(1, d_in), "full"),
        (jnp.asarray(ln["b"], jnp.float32).reshape(1, d_in), "full"),
        (w, "full"),
    ]
    if b is not None:
        inputs.append((jnp.asarray(b, jnp.float32).reshape(1, -1), "full"))
    return _tiled_call(
        functools.partial(_ln_proj_kernel, splits=splits,
                          has_bias=b is not None, eps=eps),
        n, splits, inputs)


# ----------------------------------------------------------------------------
# Kernel 2: fused FourierEmbedding (wide, de-unrolled)
#   phases = cont @ freq_bd        (block-diag, pre-scaled by 2*pi)
#   h      = cos(ph) @ W1c_bd + sin(ph) @ W1s_bd + cont @ W1l_bd + b1
#   per-dim LayerNorm via block-averaging matmul P, ReLU
#   acc    = h @ W2_stack + b2_sum  (the contraction IS the per-dim sum)
#   acc   += categorical; out LN -> ReLU -> Linear
# ----------------------------------------------------------------------------
def _fourier_kernel(*refs, has_cat, eps):
    (cont_ref, fbd_ref, wc_ref, ws_ref, wl_ref, b1_ref, p_ref,
     g1_ref, gb1_ref, w2_ref, b2_ref, olg_ref, olb_ref, ow_ref, ob_ref) = refs[:15]
    cat_ref = refs[15] if has_cat else None
    o_ref = refs[-1]

    cont = cont_ref[...]                                            # (br, D)
    ph = jnp.dot(cont, fbd_ref[...], preferred_element_type=jnp.float32)   # (br, D*F)
    h = (jnp.dot(jnp.cos(ph), wc_ref[...], preferred_element_type=jnp.float32)
         + jnp.dot(jnp.sin(ph), ws_ref[...], preferred_element_type=jnp.float32)
         + jnp.dot(cont, wl_ref[...], preferred_element_type=jnp.float32)
         + b1_ref[...])                                             # (br, D*H)

    # Per-dim LayerNorm over each H-wide block (f32, no reshape/relayout).
    P = p_ref[...]
    mean = jnp.dot(h, P, preferred_element_type=jnp.float32)
    ex2 = jnp.dot(h * h, P, preferred_element_type=jnp.float32)
    var = ex2 - mean * mean
    hn = (h - mean) * jax.lax.rsqrt(var + eps) * g1_ref[...] + gb1_ref[...]
    hn = jnp.maximum(hn, 0.0)

    acc = _bf16_dot(hn, w2_ref[...]) + b2_ref[...]                  # (br, H)
    if cat_ref is not None:
        acc = acc + cat_ref[...]
    y = _layernorm(acc, olg_ref[...], olb_ref[...], eps)
    y = jnp.maximum(y, 0.0)
    o_ref[...] = _bf16_dot(y, ow_ref[...]) + ob_ref[...]


def pallas_fourier(p, cont, cat_emb=None, eps=_LN_EPS):
    cont = jnp.asarray(cont, jnp.float32)
    n = cont.shape[0]
    h_dim = p["out_W"].shape[0]
    if n == 0:
        return jnp.zeros((0, h_dim), jnp.float32)
    inputs = [
        (cont, "row"), (p["freq_bd"], "full"),
        (p["W1c_bd"], "full"), (p["W1s_bd"], "full"), (p["W1l_bd"], "full"),
        (p["b1_flat"], "full"), (p["P"], "full"),
        (p["ln1_g"], "full"), (p["ln1_b"], "full"),
        (p["W2_stack"], "full"), (p["b2_sum"], "full"),
        (p["out_ln_g"], "full"), (p["out_ln_b"], "full"),
        (p["out_W"], "full"), (p["out_b"], "full"),
    ]
    if cat_emb is not None:
        inputs.append((jnp.asarray(cat_emb, jnp.float32), "row"))
    return _tiled_call(
        functools.partial(_fourier_kernel, has_cat=cat_emb is not None, eps=eps),
        n, h_dim, inputs)


# ----------------------------------------------------------------------------
# Kernel 3: fused attention tail + feed-forward block
#   gate / update / to_out / post-LN / +residual
#   pre-LN -> ff1 -> relu -> ff2 -> post-LN -> +residual
# ----------------------------------------------------------------------------
def _attn_ff_kernel(agg_ref, s_ref, x_ref, ldg_ref, ldb_ref, wg_ref, bg_ref,
                    wo_ref, bo_ref, lpg_ref, lpb_ref, lfg_ref, lfb_ref,
                    w1_ref, bb1_ref, w2_ref, bb2_ref, lqg_ref, lqb_ref,
                    o_ref, *, eps):
    x_raw = x_ref[...]
    x_n = _layernorm(x_raw, ldg_ref[...], ldb_ref[...], eps)
    agg = agg_ref[...]
    gate_in = jnp.concatenate([agg, x_n], axis=-1)
    g = jax.nn.sigmoid(_bf16_dot(gate_in, wg_ref[...]) + bg_ref[...])
    upd = agg + g * (s_ref[...] - agg)
    y = _bf16_dot(upd, wo_ref[...]) + bo_ref[...]
    y = _layernorm(y, lpg_ref[...], lpb_ref[...], eps)
    x1 = x_raw + y
    h = _layernorm(x1, lfg_ref[...], lfb_ref[...], eps)
    h = jnp.maximum(_bf16_dot(h, w1_ref[...]) + bb1_ref[...], 0.0)
    y2 = _bf16_dot(h, w2_ref[...]) + bb2_ref[...]
    y2 = _layernorm(y2, lqg_ref[...], lqb_ref[...], eps)
    o_ref[...] = x1 + y2


def pallas_attn_ff(agg, s_val, x_raw, ln_dst, p, eps=_LN_EPS):
    n, h = x_raw.shape
    d = agg.shape[1]
    inputs = [
        (agg, "row"), (s_val, "row"), (x_raw, "row"),
        (ln_dst["g"].reshape(1, h), "full"), (ln_dst["b"].reshape(1, h), "full"),
        (p["Wg"], "full"), (p["bg"].reshape(1, d), "full"),
        (p["W_out"], "full"), (p["b_out"].reshape(1, h), "full"),
        (p["ln_post"]["g"].reshape(1, h), "full"),
        (p["ln_post"]["b"].reshape(1, h), "full"),
        (p["ln_ff_pre"]["g"].reshape(1, h), "full"),
        (p["ln_ff_pre"]["b"].reshape(1, h), "full"),
        (p["W_ff1"], "full"), (p["b_ff1"].reshape(1, -1), "full"),
        (p["W_ff2"], "full"), (p["b_ff2"].reshape(1, h), "full"),
        (p["ln_ff_post"]["g"].reshape(1, h), "full"),
        (p["ln_ff_post"]["b"].reshape(1, h), "full"),
    ]
    return _tiled_call(functools.partial(_attn_ff_kernel, eps=eps), n, h, inputs)


# ----------------------------------------------------------------------------
# Parameter init (deterministic, synthetic)
# ----------------------------------------------------------------------------
class KeyGen:
    def __init__(self, seed):
        self._key = jax.random.PRNGKey(seed)

    def __call__(self):
        self._key, k = jax.random.split(self._key)
        return k


def init_linear(kg, d_in, d_out, bias=True):
    w = jax.random.normal(kg(), (d_in, d_out), jnp.float32) / math.sqrt(d_in)
    b = jnp.zeros((d_out,), jnp.float32) if bias else None
    return {"W": w, "b": b}


def init_layernorm(d):
    return {"g": jnp.ones((d,), jnp.float32), "b": jnp.zeros((d,), jnp.float32)}


def init_fourier(kg, input_dim, hidden_dim, num_freq_bands):
    D, F, H = input_dim, num_freq_bands, hidden_dim
    freqs = jax.random.normal(kg(), (D, F), jnp.float32)
    w1 = jax.random.normal(kg(), (D, 2 * F + 1, H), jnp.float32) / math.sqrt(2 * F + 1)
    W1c, W1s, W1l = w1[:, :F, :], w1[:, F:2 * F, :], w1[:, 2 * F, :]
    b1 = jnp.zeros((D, H), jnp.float32)
    W2 = jax.random.normal(kg(), (D, H, H), jnp.float32) / math.sqrt(H)
    b2 = jnp.zeros((D, H), jnp.float32)

    eyeD = jnp.eye(D, dtype=jnp.float32)
    # block-diagonal frequency matrix, pre-scaled by 2*pi: (D, D*F)
    freq_bd = (eyeD[:, :, None] * (freqs * (2.0 * math.pi))[None, :, :]).reshape(D, D * F)
    # block-diagonal lin1 weights: (D*F, D*H) and (D, D*H)
    w1c_bd = (eyeD[:, None, :, None] * W1c[:, :, None, :]).reshape(D * F, D * H)
    w1s_bd = (eyeD[:, None, :, None] * W1s[:, :, None, :]).reshape(D * F, D * H)
    w1l_bd = (eyeD[:, :, None] * W1l[:, None, :]).reshape(D, D * H)
    # block-averaging matrix for the per-dim LayerNorm (mean broadcast back)
    block_id = jnp.arange(D * H) // H
    P = (block_id[:, None] == block_id[None, :]).astype(jnp.float32) / float(H)

    return {
        "freq_bd": freq_bd,
        "W1c_bd": w1c_bd, "W1s_bd": w1s_bd, "W1l_bd": w1l_bd,
        "b1_flat": b1.reshape(1, D * H),
        "P": P,
        "ln1_g": jnp.ones((1, D * H), jnp.float32),
        "ln1_b": jnp.zeros((1, D * H), jnp.float32),
        "W2_stack": W2.reshape(D * H, H),
        "b2_sum": jnp.sum(b2, axis=0).reshape(1, H),
        "out_ln_g": jnp.ones((1, H), jnp.float32),
        "out_ln_b": jnp.zeros((1, H), jnp.float32),
        "out_W": jax.random.normal(kg(), (H, H), jnp.float32) / math.sqrt(H),
        "out_b": jnp.zeros((1, H), jnp.float32),
    }


def init_attention(kg, h, n_heads, head_dim, bipartite):
    d = n_heads * head_dim
    to_q = init_linear(kg, h, d)
    to_k = init_linear(kg, h, d, bias=False)
    to_v = init_linear(kg, h, d, bias=False)
    to_kr = init_linear(kg, h, d, bias=False)
    to_vr = init_linear(kg, h, d, bias=False)
    to_s = init_linear(kg, h, d)
    to_g = init_linear(kg, d + h, d)
    to_out = init_linear(kg, d, h)
    ff1 = init_linear(kg, h, 4 * h)
    ff2 = init_linear(kg, 4 * h, h)
    zd = jnp.zeros((d,), jnp.float32)
    p = {
        "bipartite": bipartite,
        "ln_src": init_layernorm(h),
        "ln_r": init_layernorm(h),
        "ln_post": init_layernorm(h),
        "ln_ff_pre": init_layernorm(h),
        "ln_ff_post": init_layernorm(h),
        # fused projection weights (lane-dense concatenated outputs)
        "W_kvr": jnp.concatenate([to_kr["W"], to_vr["W"]], axis=1),
        # gate: one matmul on concat([agg, x_norm])
        "Wg": to_g["W"], "bg": to_g["b"],
        "W_out": to_out["W"], "b_out": to_out["b"],
        "W_ff1": ff1["W"], "b_ff1": ff1["b"],
        "W_ff2": ff2["W"], "b_ff2": ff2["b"],
    }
    if bipartite:
        p["ln_dst"] = init_layernorm(h)
        p["W_qs"] = jnp.concatenate([to_q["W"], to_s["W"]], axis=1)
        p["b_qs"] = jnp.concatenate([to_q["b"], to_s["b"]])
        p["W_kv"] = jnp.concatenate([to_k["W"], to_v["W"]], axis=1)
    else:
        p["W_qskv"] = jnp.concatenate(
            [to_q["W"], to_s["W"], to_k["W"], to_v["W"]], axis=1)   # (H, 4D) = 128-wide
        p["b_qskv"] = jnp.concatenate([to_q["b"], to_s["b"], zd, zd])
    return p


def init_params(cfg):
    kg = KeyGen(0)
    h, f = cfg["hidden_dim"], cfg["num_freq_bands"]
    n_h, d_h = cfg["num_heads"], cfg["head_dim"]
    d_in = cfg["input_dim"]
    return {
        "type_a_emb": 0.1 * jax.random.normal(kg(), (5, h), jnp.float32),
        "type_m_emb": 0.1 * jax.random.normal(kg(), (17, h), jnp.float32),
        "x_a_emb": init_fourier(kg, 5, h, f),
        "x_m_emb": init_fourier(kg, d_in - 1, h, f),
        "r_patch_emb": init_fourier(kg, 2 + d_in, h, f),
        "r_t_emb": init_fourier(kg, 2 + d_in, h, f),
        "r_m2a_emb": init_fourier(kg, 1 + d_in, h, f),
        "r_a2a_emb": init_fourier(kg, 1 + d_in, h, f),
        "to_patch": init_attention(kg, h, n_h, d_h, False),
        "t_attn": [init_attention(kg, h, n_h, d_h, False) for _ in range(cfg["num_layers"])],
        "m2a_attn": [init_attention(kg, h, n_h, d_h, True) for _ in range(cfg["num_layers"])],
        "a2a_attn": [init_attention(kg, h, n_h, d_h, False) for _ in range(cfg["num_layers"])],
    }


# ----------------------------------------------------------------------------
# Module blocks
# ----------------------------------------------------------------------------
def wrap_angle(a):
    return (a + math.pi) % (2.0 * math.pi) - math.pi


def angle_between_2d(ctr, nbr):
    return jnp.arctan2(ctr[..., 0] * nbr[..., 1] - ctr[..., 1] * nbr[..., 0],
                       jnp.sum(ctr * nbr, axis=-1))


def segment_softmax(sim, seg_ids, num_segments):
    m = jax.ops.segment_max(sim, seg_ids, num_segments=num_segments)
    m = jnp.where(jnp.isfinite(m), m, 0.0)
    e = jnp.exp(sim - m[seg_ids])
    s = jax.ops.segment_sum(e, seg_ids, num_segments=num_segments)
    return e / (s[seg_ids] + 1e-16)


def attention_layer(p, x, r, edge_index, num_heads, head_dim):
    # TODO(synk): valid_index-gated residual updates of the original layer are
    # applied densely to all rows here.
    d = num_heads * head_dim
    if p["bipartite"]:
        x_src_in, x_dst_in = x
        k, v = pallas_ln_proj(x_src_in, p["W_kv"], None, p["ln_src"], (d, d))
        q, s_val = pallas_ln_proj(x_dst_in, p["W_qs"], p["b_qs"], p["ln_dst"], (d, d))
        ln_dst = p["ln_dst"]
        x_raw = x_dst_in
    else:
        q, s_val, k, v = pallas_ln_proj(x, p["W_qskv"], p["b_qskv"],
                                        p["ln_src"], (d, d, d, d))
        ln_dst = p["ln_src"]
        x_raw = x
    kr, vr = pallas_ln_proj(r, p["W_kvr"], None, p["ln_r"], (d, d))

    num_dst = x_raw.shape[0]
    # TODO(synk): per-edge gather / segment-softmax / scatter-add stays in XLA;
    # a dst-sorted scalar-prefetch Pallas kernel would fuse this hot path.
    src, dst = edge_index[0], edge_index[1]
    q_i = q[dst].reshape(-1, num_heads, head_dim)
    k_j = (k[src] + kr).reshape(-1, num_heads, head_dim)
    v_j = (v[src] + vr).reshape(-1, num_heads, head_dim)
    sim = jnp.sum(q_i * k_j, axis=-1) * (head_dim ** -0.5)
    attn = segment_softmax(sim, dst, num_dst)
    agg = jax.ops.segment_sum(v_j * attn[:, :, None], dst,
                              num_segments=num_dst).reshape(num_dst, d)

    return pallas_attn_ff(agg, s_val, x_raw, ln_dst, p)


# ----------------------------------------------------------------------------
# BehaviorGPTDecoder forward
# ----------------------------------------------------------------------------
def behavior_gpt_decoder_forward(params, data, cfg):
    t_steps = cfg["num_steps"]
    hdim = cfg["hidden_dim"]
    d_in = cfg["input_dim"]
    n_h, d_h = cfg["num_heads"], cfg["head_dim"]

    # --- host-side graph construction (data-dependent index sets; glue) ------
    # TODO(synk): complete-graph + radius-20 filter path (non-torch_cluster
    # branch); num_m2a_nbrs / num_a2a_nbrs knn caps not replicated, and the
    # variable-size edge sets keep this on the host.
    mask_np = np.asarray(data["agent"]["valid_mask"])[:, :t_steps]
    pos_a_np = np.asarray(data["agent"]["position"])[:, :t_steps, :d_in]
    pos_m_np = np.asarray(data["map_point"]["position"])[:, :d_in]
    n_agents, n_map = mask_np.shape[0], pos_m_np.shape[0]
    pos_t_np = pos_a_np.reshape(-1, d_in)
    pos_s_np = pos_a_np.transpose(1, 0, 2).reshape(-1, d_in)
    mask_s_np = mask_np.T.reshape(-1)
    mask_t_flat = mask_np.reshape(-1)

    mt = mask_np[:, :, None] & mask_np[:, None, :]
    a_idx, i_idx, j_idx = np.nonzero(mt)
    src_all = a_idx * t_steps + i_idx
    dst_all = a_idx * t_steps + j_idx
    keep = dst_all > src_all
    src_all, dst_all = src_all[keep], dst_all[keep]
    gap = dst_all - src_all
    ei_patch = np.stack([src_all[gap < 10], dst_all[gap < 10]])
    ei_t = np.stack([src_all[(gap % 10) == 0], dst_all[(gap % 10) == 0]])

    m_idx = np.repeat(np.arange(n_map), n_agents * t_steps)
    at_idx = np.tile(np.arange(n_agents * t_steps), n_map)
    keep = mask_t_flat[at_idx]
    m_idx, at_idx = m_idx[keep], at_idx[keep]
    rel = pos_m_np[m_idx] - pos_t_np[at_idx]
    keep = np.linalg.norm(rel, axis=-1) < 20.0
    ei_m2a = np.stack([m_idx[keep], at_idx[keep]])

    u = np.arange(n_agents)
    uu, ww = np.meshgrid(u, u, indexing="ij")
    off = (uu != ww)
    srcs = np.concatenate([t * n_agents + uu[off] for t in range(t_steps)])
    dsts = np.concatenate([t * n_agents + ww[off] for t in range(t_steps)])
    keep = mask_s_np[srcs] & mask_s_np[dsts]
    srcs, dsts = srcs[keep], dsts[keep]
    rel = pos_s_np[srcs] - pos_s_np[dsts]
    keep = np.linalg.norm(rel, axis=-1) < 20.0
    ei_a2a = np.stack([srcs[keep], dsts[keep]])

    # --- device-side node features & embeddings ------------------------------
    pos_a = data["agent"]["position"][:, :t_steps, :d_in]
    head_a = data["agent"]["heading"][:, :t_steps]
    head_vector_a = jnp.stack([jnp.cos(head_a), jnp.sin(head_a)], axis=-1)
    pos_m = data["map_point"]["position"][:, :d_in]
    orient_m = data["map_point"]["orientation"]
    vel = data["agent"]["velocity"][:, :t_steps, :d_in]
    length = data["agent"]["length"][:, :t_steps]
    width = data["agent"]["width"][:, :t_steps]
    height = data["agent"]["height"][:, :t_steps]

    type_a_emb = jnp.repeat(params["type_a_emb"][data["agent"]["type"]], t_steps, axis=0)
    type_m_emb = params["type_m_emb"][data["map_point"]["type"]]

    x_a_feat = jnp.stack([
        jnp.linalg.norm(vel[..., :2], axis=-1),
        angle_between_2d(head_vector_a, vel[..., :2]),
        length, width, height], axis=-1)                       # [A, T, 5]
    x_m_feat = data["map_point"]["magnitude"][:, None]          # input_dim == 2

    # TODO(synk): valid_index-restricted sparse Fourier embedding computed densely.
    x_a = pallas_fourier(params["x_a_emb"], x_a_feat.reshape(-1, 5), type_a_emb)
    x_m = pallas_fourier(params["x_m_emb"], x_m_feat, type_m_emb)

    pos_t = pos_a.reshape(-1, d_in)
    head_t = head_a.reshape(-1)
    head_vector_t = head_vector_a.reshape(-1, 2)
    pos_s = jnp.transpose(pos_a, (1, 0, 2)).reshape(-1, d_in)
    head_s = jnp.transpose(head_a, (1, 0)).reshape(-1)
    head_vector_s = jnp.transpose(head_vector_a, (1, 0, 2)).reshape(-1, 2)

    def rel_feats_t(ei):
        src = jnp.asarray(ei[0], jnp.int32)
        dst = jnp.asarray(ei[1], jnp.int32)
        rel_pos = pos_t[src] - pos_t[dst]
        rel_head = wrap_angle(head_t[src] - head_t[dst])
        return jnp.stack([
            jnp.linalg.norm(rel_pos[:, :2], axis=-1),
            angle_between_2d(head_vector_t[dst], rel_pos[:, :2]),
            rel_head,
            (src - dst).astype(jnp.float32)], axis=-1)

    r_patch = pallas_fourier(params["r_patch_emb"], rel_feats_t(ei_patch), None)
    r_t = pallas_fourier(params["r_t_emb"], rel_feats_t(ei_t), None)

    src = jnp.asarray(ei_m2a[0], jnp.int32)
    dst = jnp.asarray(ei_m2a[1], jnp.int32)
    rel_pos_m2a = pos_m[src] - pos_t[dst]
    rel_orient_m2a = wrap_angle(orient_m[src] - head_t[dst])
    r_m2a_feat = jnp.stack([
        jnp.linalg.norm(rel_pos_m2a[:, :2], axis=-1),
        angle_between_2d(head_vector_t[dst], rel_pos_m2a[:, :2]),
        rel_orient_m2a], axis=-1)
    r_m2a = pallas_fourier(params["r_m2a_emb"], r_m2a_feat, None)

    src = jnp.asarray(ei_a2a[0], jnp.int32)
    dst = jnp.asarray(ei_a2a[1], jnp.int32)
    rel_pos_a2a = pos_s[src] - pos_s[dst]
    rel_head_a2a = wrap_angle(head_s[src] - head_s[dst])
    r_a2a_feat = jnp.stack([
        jnp.linalg.norm(rel_pos_a2a[:, :2], axis=-1),
        angle_between_2d(head_vector_s[dst], rel_pos_a2a[:, :2]),
        rel_head_a2a], axis=-1)
    r_a2a = pallas_fourier(params["r_a2a_emb"], r_a2a_feat, None)

    ei_patch_j = jnp.asarray(ei_patch, jnp.int32)
    ei_t_j = jnp.asarray(ei_t, jnp.int32)
    ei_m2a_j = jnp.asarray(ei_m2a, jnp.int32)
    ei_a2a_j = jnp.asarray(ei_a2a, jnp.int32)

    # --- attention stack ------------------------------------------------------
    x_a = x_a.reshape(-1, hdim)
    x_a = attention_layer(params["to_patch"], x_a, r_patch, ei_patch_j, n_h, d_h)
    for i in range(cfg["num_layers"]):
        x_a = x_a.reshape(-1, hdim)
        x_a = attention_layer(params["t_attn"][i], x_a, r_t, ei_t_j, n_h, d_h)
        x_a = attention_layer(params["m2a_attn"][i], (x_m, x_a), r_m2a, ei_m2a_j, n_h, d_h)
        x_a = jnp.transpose(x_a.reshape(-1, t_steps, hdim), (1, 0, 2)).reshape(-1, hdim)
        x_a = attention_layer(params["a2a_attn"][i], x_a, r_a2a, ei_a2a_j, n_h, d_h)
        x_a = jnp.transpose(x_a.reshape(t_steps, -1, hdim), (1, 0, 2))
    return x_a   # [num_agents, num_steps, hidden_dim]


# ----------------------------------------------------------------------------
# Main
# ----------------------------------------------------------------------------
if __name__ == "__main__":
    cfg = dict(input_dim=2, hidden_dim=32, num_steps=20, time_span=None,
               num_m2a_nbrs=8, num_a2a_nbrs=8, num_freq_bands=4,
               num_layers=1, num_heads=2, head_dim=16, dropout=0.0)
    A, T, M = 4, cfg["num_steps"], 12

    key = jax.random.PRNGKey(0)
    ks = jax.random.split(key, 12)
    valid_mask = np.ones((A, T), dtype=bool)
    valid_mask[0, 3] = False
    valid_mask[2, 17] = False

    data = {
        "agent": {
            "valid_mask": jnp.asarray(valid_mask),
            "position": jax.random.uniform(ks[0], (A, T, 3), jnp.float32, 0.0, 15.0),
            "heading": jax.random.uniform(ks[1], (A, T), jnp.float32, -math.pi, math.pi),
            "velocity": jax.random.normal(ks[2], (A, T, 3), jnp.float32) * 2.0,
            "length": jax.random.uniform(ks[3], (A, T), jnp.float32, 3.0, 6.0),
            "width": jax.random.uniform(ks[4], (A, T), jnp.float32, 1.5, 2.5),
            "height": jax.random.uniform(ks[5], (A, T), jnp.float32, 1.0, 2.0),
            "type": jax.random.randint(ks[6], (A,), 0, 5),
        },
        "map_point": {
            "position": jax.random.uniform(ks[7], (M, 3), jnp.float32, 0.0, 15.0),
            "orientation": jax.random.uniform(ks[8], (M,), jnp.float32, -math.pi, math.pi),
            "magnitude": jax.random.uniform(ks[9], (M,), jnp.float32, 0.0, 5.0),
            "type": jax.random.randint(ks[10], (M,), 0, 17),
        },
    }

    params = init_params(cfg)
    out = behavior_gpt_decoder_forward(params, data, cfg)
    out = jax.block_until_ready(out)
    assert out.shape == (A, T, cfg["hidden_dim"])
    assert bool(jnp.all(jnp.isfinite(out)))
    print("KERNEL_OK")
</pallas_src>

<mosaic_0001>
module attributes {stable_mosaic.version = 11 : i64} {
  func.func @_fourier_kernel(%arg0: i32, %arg1: memref<80x5xf32, #tpu.memory_space<vmem>>, %arg2: memref<5x20xf32, #tpu.memory_space<vmem>>, %arg3: memref<20x160xf32, #tpu.memory_space<vmem>>, %arg4: memref<20x160xf32, #tpu.memory_space<vmem>>, %arg5: memref<5x160xf32, #tpu.memory_space<vmem>>, %arg6: memref<1x160xf32, #tpu.memory_space<vmem>>, %arg7: memref<160x160xf32, #tpu.memory_space<vmem>>, %arg8: memref<1x160xf32, #tpu.memory_space<vmem>>, %arg9: memref<1x160xf32, #tpu.memory_space<vmem>>, %arg10: memref<160x32xf32, #tpu.memory_space<vmem>>, %arg11: memref<1x32xf32, #tpu.memory_space<vmem>>, %arg12: memref<1x32xf32, #tpu.memory_space<vmem>>, %arg13: memref<1x32xf32, #tpu.memory_space<vmem>>, %arg14: memref<32x32xf32, #tpu.memory_space<vmem>>, %arg15: memref<1x32xf32, #tpu.memory_space<vmem>>, %arg16: memref<80x32xf32, #tpu.memory_space<vmem>>, %arg17: memref<80x32xf32, #tpu.memory_space<vmem>>) attributes {dimension_semantics = [#tpu.dimension_semantics<parallel>], iteration_bounds = array<i64: 1>, scalar_prefetch = 0 : i64, scratch_operands = 0 : i64, tpu.core_type = #tpu.core_type<tc>, window_params = [{transform_indices = @transform_0, window_bounds = array<i64: 80, 5>}, {pipeline_mode = #tpu.pipeline_mode<synchronous>, transform_indices = @transform_1, window_bounds = array<i64: 5, 20>}, {pipeline_mode = #tpu.pipeline_mode<synchronous>, transform_indices = @transform_2, window_bounds = array<i64: 20, 160>}, {pipeline_mode = #tpu.pipeline_mode<synchronous>, transform_indices = @transform_3, window_bounds = array<i64: 20, 160>}, {pipeline_mode = #tpu.pipeline_mode<synchronous>, transform_indices = @transform_4, window_bounds = array<i64: 5, 160>}, {pipeline_mode = #tpu.pipeline_mode<synchronous>, transform_indices = @transform_5, window_bounds = array<i64: 1, 160>}, {pipeline_mode = #tpu.pipeline_mode<synchronous>, transform_indices = @transform_6, window_bounds = array<i64: 160, 160>}, {pipeline_mode = #tpu.pipeline_mode<synchronous>, transform_indices = @transform_7, window_bounds = array<i64: 1, 160>}, {pipeline_mode = #tpu.pipeline_mode<synchronous>, transform_indices = @transform_8, window_bounds = array<i64: 1, 160>}, {pipeline_mode = #tpu.pipeline_mode<synchronous>, transform_indices = @transform_9, window_bounds = array<i64: 160, 32>}, {pipeline_mode = #tpu.pipeline_mode<synchronous>, transform_indices = @transform_10, window_bounds = array<i64: 1, 32>}, {pipeline_mode = #tpu.pipeline_mode<synchronous>, transform_indices = @transform_11, window_bounds = array<i64: 1, 32>}, {pipeline_mode = #tpu.pipeline_mode<synchronous>, transform_indices = @transform_12, window_bounds = array<i64: 1, 32>}, {pipeline_mode = #tpu.pipeline_mode<synchronous>, transform_indices = @transform_13, window_bounds = array<i64: 32, 32>}, {pipeline_mode = #tpu.pipeline_mode<synchronous>, transform_indices = @transform_14, window_bounds = array<i64: 1, 32>}, {transform_indices = @transform_15, window_bounds = array<i64: 80, 32>}, {transform_indices = @transform_16, window_bounds = array<i64: 80, 32>}]} {
    %c0 = arith.constant 0 : index
    %c0_0 = arith.constant 0 : index
    %0 = vector.load %arg1[%c0, %c0_0] : memref<80x5xf32, #tpu.memory_space<vmem>>, vector<80x5xf32>
    %c0_1 = arith.constant 0 : index
    %c0_2 = arith.constant 0 : index
    %1 = vector.load %arg2[%c0_1, %c0_2] : memref<5x20xf32, #tpu.memory_space<vmem>>, vector<5x20xf32>
    %cst = arith.constant dense<0.000000e+00> : vector<80x20xf32>
    %2 = tpu.matmul %0, %1, %cst {dimension_numbers = #tpu.dot_dimension_numbers<[1], [0], [0], [1], [0, 0, 1, 1], [], []>} : vector<80x5xf32>, vector<5x20xf32>, vector<80x20xf32> -> vector<80x20xf32>
    %3 = math.cos %2 : vector<80x20xf32>
    %c0_3 = arith.constant 0 : index
    %c0_4 = arith.constant 0 : index
    %4 = vector.load %arg3[%c0_3, %c0_4] : memref<20x160xf32, #tpu.memory_space<vmem>>, vector<20x160xf32>
    %cst_5 = arith.constant dense<0.000000e+00> : vector<80x160xf32>
    %5 = tpu.matmul %3, %4, %cst_5 {dimension_numbers = #tpu.dot_dimension_numbers<[1], [0], [0], [1], [0, 0, 1, 1], [], []>} : vector<80x20xf32>, vector<20x160xf32>, vector<80x160xf32> -> vector<80x160xf32>
    %6 = math.sin %2 : vector<80x20xf32>
    %c0_6 = arith.constant 0 : index
    %c0_7 = arith.constant 0 : index
    %7 = vector.load %arg4[%c0_6, %c0_7] : memref<20x160xf32, #tpu.memory_space<vmem>>, vector<20x160xf32>
    %cst_8 = arith.constant dense<0.000000e+00> : vector<80x160xf32>
    %8 = tpu.matmul %6, %7, %cst_8 {dimension_numbers = #tpu.dot_dimension_numbers<[1], [0], [0], [1], [0, 0, 1, 1], [], []>} : vector<80x20xf32>, vector<20x160xf32>, vector<80x160xf32> -> vector<80x160xf32>
    %9 = arith.addf %5, %8 : vector<80x160xf32>
    %c0_9 = arith.constant 0 : index
    %c0_10 = arith.constant 0 : index
    %10 = vector.load %arg5[%c0_9, %c0_10] : memref<5x160xf32, #tpu.memory_space<vmem>>, vector<5x160xf32>
    %cst_11 = arith.constant dense<0.000000e+00> : vector<80x160xf32>
    %11 = tpu.matmul %0, %10, %cst_11 {dimension_numbers = #tpu.dot_dimension_numbers<[1], [0], [0], [1], [0, 0, 1, 1], [], []>} : vector<80x5xf32>, vector<5x160xf32>, vector<80x160xf32> -> vector<80x160xf32>
    %12 = arith.addf %9, %11 : vector<80x160xf32>
    %c0_12 = arith.constant 0 : index
    %c0_13 = arith.constant 0 : index
    %13 = vector.load %arg6[%c0_12, %c0_13] : memref<1x160xf32, #tpu.memory_space<vmem>>, vector<1x160xf32>
    %14 = vector.broadcast %13 : vector<1x160xf32> to vector<80x160xf32>
    %15 = arith.addf %12, %14 : vector<80x160xf32>
    %c0_14 = arith.constant 0 : index
    %c0_15 = arith.constant 0 : index
    %16 = vector.load %arg7[%c0_14, %c0_15] : memref<160x160xf32, #tpu.memory_space<vmem>>, vector<160x160xf32>
    %cst_16 = arith.constant dense<0.000000e+00> : vector<80x160xf32>
    %17 = tpu.matmul %15, %16, %cst_16 {dimension_numbers = #tpu.dot_dimension_numbers<[1], [0], [0], [1], [0, 0, 1, 1], [], []>} : vector<80x160xf32>, vector<160x160xf32>, vector<80x160xf32> -> vector<80x160xf32>
    %18 = arith.mulf %15, %15 : vector<80x160xf32>
    %cst_17 = arith.constant dense<0.000000e+00> : vector<80x160xf32>
    %19 = tpu.matmul %18, %16, %cst_17 {dimension_numbers = #tpu.dot_dimension_numbers<[1], [0], [0], [1], [0, 0, 1, 1], [], []>} : vector<80x160xf32>, vector<160x160xf32>, vector<80x160xf32> -> vector<80x160xf32>
    %20 = arith.mulf %17, %17 : vector<80x160xf32>
    %21 = arith.subf %19, %20 : vector<80x160xf32>
    %22 = arith.subf %15, %17 : vector<80x160xf32>
    %cst_18 = arith.constant 9.99999974E-6 : f32
    %23 = vector.broadcast %cst_18 : f32 to vector<80x160xf32>
    %24 = arith.addf %21, %23 : vector<80x160xf32>
    %25 = math.rsqrt %24 : vector<80x160xf32>
    %26 = arith.mulf %22, %25 : vector<80x160xf32>
    %c0_19 = arith.constant 0 : index
    %c0_20 = arith.constant 0 : index
    %27 = vector.load %arg8[%c0_19, %c0_20] : memref<1x160xf32, #tpu.memory_space<vmem>>, vector<1x160xf32>
    %28 = vector.broadcast %27 : vector<1x160xf32> to vector<80x160xf32>
    %29 = arith.mulf %26, %28 : vector<80x160xf32>
    %c0_21 = arith.constant 0 : index
    %c0_22 = arith.constant 0 : index
    %30 = vector.load %arg9[%c0_21, %c0_22] : memref<1x160xf32, #tpu.memory_space<vmem>>, vector<1x160xf32>
    %31 = vector.broadcast %30 : vector<1x160xf32> to vector<80x160xf32>
    %32 = arith.addf %29, %31 : vector<80x160xf32>
    %cst_23 = arith.constant 0.000000e+00 : f32
    %33 = vector.broadcast %cst_23 : f32 to vector<80x160xf32>
    %34 = arith.maximumf %32, %33 : vector<80x160xf32>
    %c0_24 = arith.constant 0 : index
    %c0_25 = arith.constant 0 : index
    %35 = vector.load %arg10[%c0_24, %c0_25] : memref<160x32xf32, #tpu.memory_space<vmem>>, vector<160x32xf32>
    %36 = arith.truncf %34 : vector<80x160xf32> to vector<80x160xbf16>
    %37 = arith.truncf %35 : vector<160x32xf32> to vector<160x32xbf16>
    %cst_26 = arith.constant dense<0.000000e+00> : vector<80x32xf32>
    %38 = tpu.matmul %36, %37, %cst_26 {dimension_numbers = #tpu.dot_dimension_numbers<[1], [0], [0], [1], [0, 0, 1, 1], [], []>} : vector<80x160xbf16>, vector<160x32xbf16>, vector<80x32xf32> -> vector<80x32xf32>
    %c0_27 = arith.constant 0 : index
    %c0_28 = arith.constant 0 : index
    %39 = vector.load %arg11[%c0_27, %c0_28] : memref<1x32xf32, #tpu.memory_space<vmem>>, vector<1x32xf32>
    %40 = vector.broadcast %39 : vector<1x32xf32> to vector<80x32xf32>
    %41 = arith.addf %38, %40 : vector<80x32xf32>
    %c0_29 = arith.constant 0 : index
    %c0_30 = arith.constant 0 : index
    %42 = vector.load %arg16[%c0_29, %c0_30] : memref<80x32xf32, #tpu.memory_space<vmem>>, vector<80x32xf32>
    %43 = arith.addf %41, %42 : vector<80x32xf32>
    %c0_31 = arith.constant 0 : index
    %c0_32 = arith.constant 0 : index
    %44 = vector.load %arg12[%c0_31, %c0_32] : memref<1x32xf32, #tpu.memory_space<vmem>>, vector<1x32xf32>
    %c0_33 = arith.constant 0 : index
    %c0_34 = arith.constant 0 : index
    %45 = vector.load %arg13[%c0_33, %c0_34] : memref<1x32xf32, #tpu.memory_space<vmem>>, vector<1x32xf32>
    %cst_35 = arith.constant dense<0.000000e+00> : vector<80xf32>
    %46 = vector.multi_reduction <add>, %43, %cst_35 [1] : vector<80x32xf32> to vector<80xf32>
    %47 = vector.shape_cast %46 : vector<80xf32> to vector<80x1xf32>
    %cst_36 = arith.constant 3.200000e+01 : f32
    %48 = vector.broadcast %cst_36 : f32 to vector<80x1xf32>
    %49 = arith.divf %47, %48 : vector<80x1xf32>
    %50 = vector.broadcast %49 : vector<80x1xf32> to vector<80x32xf32>
    %51 = arith.subf %43, %50 : vector<80x32xf32>
    %52 = arith.mulf %51, %51 : vector<80x32xf32>
    %cst_37 = arith.constant dense<0.000000e+00> : vector<80xf32>
    %53 = vector.multi_reduction <add>, %52, %cst_37 [1] : vector<80x32xf32> to vector<80xf32>
    %54 = vector.shape_cast %53 : vector<80xf32> to vector<80x1xf32>
    %cst_38 = arith.constant 3.200000e+01 : f32
    %55 = vector.broadcast %cst_38 : f32 to vector<80x1xf32>
    %56 = arith.divf %54, %55 : vector<80x1xf32>
    %57 = vector.broadcast %49 : vector<80x1xf32> to vector<80x32xf32>
    %58 = arith.subf %43, %57 : vector<80x32xf32>
    %cst_39 = arith.constant 9.99999974E-6 : f32
    %59 = vector.broadcast %cst_39 : f32 to vector<80x1xf32>
    %60 = arith.addf %56, %59 : vector<80x1xf32>
    %61 = math.rsqrt %60 : vector<80x1xf32>
    %62 = vector.broadcast %61 : vector<80x1xf32> to vector<80x32xf32>
    %63 = arith.mulf %58, %62 : vector<80x32xf32>
    %64 = vector.broadcast %44 : vector<1x32xf32> to vector<80x32xf32>
    %65 = arith.mulf %63, %64 : vector<80x32xf32>
    %66 = vector.broadcast %45 : vector<1x32xf32> to vector<80x32xf32>
    %67 = arith.addf %65, %66 : vector<80x32xf32>
    %cst_40 = arith.constant 0.000000e+00 : f32
    %68 = vector.broadcast %cst_40 : f32 to vector<80x32xf32>
    %69 = arith.maximumf %67, %68 : vector<80x32xf32>
    %c0_41 = arith.constant 0 : index
    %c0_42 = arith.constant 0 : index
    %70 = vector.load %arg14[%c0_41, %c0_42] : memref<32x32xf32, #tpu.memory_space<vmem>>, vector<32x32xf32>
    %71 = arith.truncf %69 : vector<80x32xf32> to vector<80x32xbf16>
    %72 = arith.truncf %70 : vector<32x32xf32> to vector<32x32xbf16>
    %cst_43 = arith.constant dense<0.000000e+00> : vector<80x32xf32>
    %73 = tpu.matmul %71, %72, %cst_43 {dimension_numbers = #tpu.dot_dimension_numbers<[1], [0], [0], [1], [0, 0, 1, 1], [], []>} : vector<80x32xbf16>, vector<32x32xbf16>, vector<80x32xf32> -> vector<80x32xf32>
    %c0_44 = arith.constant 0 : index
    %c0_45 = arith.constant 0 : index
    %74 = vector.load %arg15[%c0_44, %c0_45] : memref<1x32xf32, #tpu.memory_space<vmem>>, vector<1x32xf32>
    %75 = vector.broadcast %74 : vector<1x32xf32> to vector<80x32xf32>
    %76 = arith.addf %73, %75 : vector<80x32xf32>
    %c0_46 = arith.constant 0 : index
    %c0_47 = arith.constant 0 : index
    %77 = vector.load %arg17[%c0_46, %c0_47] : memref<80x32xf32, #tpu.memory_space<vmem>>, vector<80x32xf32>
    tpu.vector_store %arg17[%c0_46, %c0_47], %76 {strides = array<i32>} : memref<80x32xf32, #tpu.memory_space<vmem>>, vector<80x32xf32>,
    return
  }
  func.func @transform_0(%arg0: i32) -> (i32, i32) {
    %c0_i32 = arith.constant 0 : i32
    %c0_i32_0 = arith.constant 0 : i32
    return %arg0, %c0_i32 : i32, i32
  }
  func.func @transform_1(%arg0: i32) -> (i32, i32) {
    %c0_i32 = arith.constant 0 : i32
    %c0_i32_0 = arith.constant 0 : i32
    %c0_i32_1 = arith.constant 0 : i32
    return %c0_i32, %c0_i32_0 : i32, i32
  }
  func.func @transform_2(%arg0: i32) -> (i32, i32) {
    %c0_i32 = arith.constant 0 : i32
    %c0_i32_0 = arith.constant 0 : i32
    %c0_i32_1 = arith.constant 0 : i32
    return %c0_i32, %c0_i32_0 : i32, i32
  }
  func.func @transform_3(%arg0: i32) -> (i32, i32) {
    %c0_i32 = arith.constant 0 : i32
    %c0_i32_0 = arith.constant 0 : i32
    %c0_i32_1 = arith.constant 0 : i32
    return %c0_i32, %c0_i32_0 : i32, i32
  }
  func.func @transform_4(%arg0: i32) -> (i32, i32) {
    %c0_i32 = arith.constant 0 : i32
    %c0_i32_0 = arith.constant 0 : i32
    %c0_i32_1 = arith.constant 0 : i32
    return %c0_i32, %c0_i32_0 : i32, i32
  }
  func.func @transform_5(%arg0: i32) -> (i32, i32) {
    %c0_i32 = arith.constant 0 : i32
    %c0_i32_0 = arith.constant 0 : i32
    %c0_i32_1 = arith.constant 0 : i32
    return %c0_i32, %c0_i32_0 : i32, i32
  }
  func.func @transform_6(%arg0: i32) -> (i32, i32) {
    %c0_i32 = arith.constant 0 : i32
    %c0_i32_0 = arith.constant 0 : i32
    %c0_i32_1 = arith.constant 0 : i32
    return %c0_i32, %c0_i32_0 : i32, i32
  }
  func.func @transform_7(%arg0: i32) -> (i32, i32) {
    %c0_i32 = arith.constant 0 : i32
    %c0_i32_0 = arith.constant 0 : i32
    %c0_i32_1 = arith.constant 0 : i32
    return %c0_i32, %c0_i32_0 : i32, i32
  }
  func.func @transform_8(%arg0: i32) -> (i32, i32) {
    %c0_i32 = arith.constant 0 : i32
    %c0_i32_0 = arith.constant 0 : i32
    %c0_i32_1 = arith.constant 0 : i32
    return %c0_i32, %c0_i32_0 : i32, i32
  }
  func.func @transform_9(%arg0: i32) -> (i32, i32) {
    %c0_i32 = arith.constant 0 : i32
    %c0_i32_0 = arith.constant 0 : i32
    %c0_i32_1 = arith.constant 0 : i32
    return %c0_i32, %c0_i32_0 : i32, i32
  }
  func.func @transform_10(%arg0: i32) -> (i32, i32) {
    %c0_i32 = arith.constant 0 : i32
    %c0_i32_0 = arith.constant 0 : i32
    %c0_i32_1 = arith.constant 0 : i32
    return %c0_i32, %c0_i32_0 : i32, i32
  }
  func.func @transform_11(%arg0: i32) -> (i32, i32) {
    %c0_i32 = arith.constant 0 : i32
    %c0_i32_0 = arith.constant 0 : i32
    %c0_i32_1 = arith.constant 0 : i32
    return %c0_i32, %c0_i32_0 : i32, i32
  }
  func.func @transform_12(%arg0: i32) -> (i32, i32) {
    %c0_i32 = arith.constant 0 : i32
    %c0_i32_0 = arith.constant 0 : i32
    %c0_i32_1 = arith.constant 0 : i32
    return %c0_i32, %c0_i32_0 : i32, i32
  }
  func.func @transform_13(%arg0: i32) -> (i32, i32) {
    %c0_i32 = arith.constant 0 : i32
    %c0_i32_0 = arith.constant 0 : i32
    %c0_i32_1 = arith.constant 0 : i32
    return %c0_i32, %c0_i32_0 : i32, i32
  }
  func.func @transform_14(%arg0: i32) -> (i32, i32) {
    %c0_i32 = arith.constant 0 : i32
    %c0_i32_0 = arith.constant 0 : i32
    %c0_i32_1 = arith.constant 0 : i32
    return %c0_i32, %c0_i32_0 : i32, i32
  }
  func.func @transform_15(%arg0: i32) -> (i32, i32) {
    %c0_i32 = arith.constant 0 : i32
    %c0_i32_0 = arith.constant 0 : i32
    return %arg0, %c0_i32 : i32, i32
  }
  func.func @transform_16(%arg0: i32) -> (i32, i32) {
    %c0_i32 = arith.constant 0 : i32
    %c0_i32_0 = arith.constant 0 : i32
    return %arg0, %c0_i32 : i32, i32
  }
}

</mosaic_0001>

<bundles_post_ra>
// kernel: tpu_custom_call.1
= control target key start
LH: loop header
LB: loop body
LE: loop exit
PB: predicated region body
PF: predicated region fallthrough
CT: control target
= control target key end

     0   :  { %s6811_s0 = inlined_call_operand.vmem [shape: f32[80,5], index: 0, kind: input, shape index: {}]   ;;  %s6812_s1 = inlined_call_operand.hbm [shape: f32[5,20], index: 1, kind: input, shape index: {}]   ;;  %s6813_s2 = inlined_call_operand.vmem [shape: f32[20,160], index: 2, kind: input, shape index: {}]   ;;  %s6814_s3 = inlined_call_operand.hbm [shape: f32[20,160], index: 3, kind: input, shape index: {}]   ;;  %s6815_s4 = inlined_call_operand.hbm [shape: f32[5,160], index: 4, kind: input, shape index: {}]   ;;  %s6816_s5 = inlined_call_operand.vmem [shape: f32[1,160], index: 5, kind: input, shape index: {}]   ;;  %s6817_s6 = inlined_call_operand.vmem [shape: f32[160,160], index: 6, kind: input, shape index: {}]   ;;  %s6818_s7 = inlined_call_operand.vmem [shape: f32[1,160], index: 7, kind: input, shape index: {}]   ;;  %s6819_s8 = inlined_call_operand.hbm [shape: f32[1,160], index: 8, kind: input, shape index: {}]   ;;  %s6820_s9 = inlined_call_operand.vmem [shape: f32[160,32], index: 9, kind: input, shape index: {}]   ;;  %s6821_s10 = inlined_call_operand.vmem [shape: f32[1,32], index: 10, kind: input, shape index: {}]   ;;  %s6822_s11 = inlined_call_operand.hbm [shape: f32[1,32], index: 11, kind: input, shape index: {}]   ;;  %s6823_s12 = inlined_call_operand.hbm [shape: f32[1,32], index: 12, kind: input, shape index: {}]   ;;  %s6824_s13 = inlined_call_operand.vmem [shape: f32[32,32], index: 13, kind: input, shape index: {}]   ;;  %s6825_s14 = inlined_call_operand.vmem [shape: f32[1,32], index: 14, kind: input, shape index: {}]   ;;  %s6826_s15 = inlined_call_operand.vmem [shape: f32[80,32], index: 15, kind: input, shape index: {}]   ;;  %s6827_s16 = inlined_call_operand.vmem [shape: f32[80,32], index: 16, kind: output, shape index: {}]  }
   0x1   :  { %6857 = sst [smem:[#allocation19_spill]] %s6811_s0 }
   0x2   :  { %6858 = sst [smem:[#allocation20_spill]] %s6827_s16 }
   0x3   :  { %21 = vsyncpa [#allocation3], 0 }
   0x4   :  { %22 = vsyncpa [#allocation5], 0 }
   0x5   :  { %23 = vsyncpa [#allocation8], 0 }
   0x6   :  { %24 = vsyncpa [#allocation11], 0  ;;  %s4562_s21 = smov [#allocation4]   ;;  %s4422_s25 = scalar_lea.hbm %s6814_s3, 768 }
   0x7   :  { %s44_s22 = sshll.u32 %s4562_s21, 4  ;;  %p4423_p0 = scmp.ne.s32.totalorder %s6814_s3, %s4422_s25  ;;  %s45_s22 = int_to_ptr.vmem [resolvable:$true] %s44_s22 }
   0x8   :  { %p4426_p1 = scmp.lt.u32.totalorder %s4422_s25, %s6814_s3 }
   0xa   :  { %p4428_p2 = pnand %p4426_p1, %p4423_p0 }
   0xc   :  { %4431 = shalt.err (!%p4428_p2)
}
   0xd   :  { %s4432_s30 = scalar_lea.vmem %s45_s22, 768  ;;  %p4437_p4 = scmp.lt.s32.totalorder %s45_s22, %s45_s22 }
   0xe   :  { %p4433_p3 = scmp.ne.s32.totalorder %s45_s22, %s4432_s30  ;;  %p4438_p5 = scmp.lt.s32.totalorder %s4432_s30, %s4432_s30 }
  0x10   :  { %p4439_p6 = por %p4438_p5, %p4437_p4 }
  0x12   :  { %p4440_p7 = pnand %p4439_p6, %p4433_p3 }
  0x14   :  { %4443 = shalt.err (!%p4440_p7)
}
  0x15   :  { %s4563_s0 = smov 256   ;;  %s4564_s17 = smov 16  }
  0x16   :  { %50 = dma.hbm_to_vmem [thread:$0]  %s6814_s3, 768, %s45_s22, [#allocation5], %s4563_s0, %s4563_s0, %s4564_s17  }
  0x17   :  { %s4565_s20 = smov [#allocation7]   ;;  %s4566_s23 = smov [#allocation2]  }
  0x18   :  { %s73_s21 = sshll.u32 %s4565_s20, 4  ;;  %s33_s24 = sshll.u32 %s4566_s23, 4  ;;  %s74_s21 = int_to_ptr.vmem [resolvable:$true] %s73_s21  ;;  %s34_s24 = int_to_ptr.vmem [resolvable:$true] %s33_s24 }
  0x19   :  { %s4444_s27 = scalar_lea.hbm %s6819_s8, 32 }
  0x1a   :  { %p4445_p8 = scmp.ne.s32.totalorder %s6819_s8, %s4444_s27  ;;  %p4448_p9 = scmp.lt.u32.totalorder %s4444_s27, %s6819_s8 }
  0x1c   :  { %p4450_p10 = pnand %p4448_p9, %p4445_p8 }
  0x1e   :  { %4453 = shalt.err (!%p4450_p10)
}
  0x1f   :  { %s4454_s3 = scalar_lea.vmem %s74_s21, 32  ;;  %p4459_p12 = scmp.lt.s32.totalorder %s74_s21, %s74_s21 }
  0x20   :  { %p4455_p11 = scmp.ne.s32.totalorder %s74_s21, %s4454_s3  ;;  %p4460_p13 = scmp.lt.s32.totalorder %s4454_s3, %s4454_s3 }
  0x22   :  { %p4461_p0 = por %p4460_p13, %p4459_p12 }
  0x24   :  { %p4462_p1 = pnand %p4461_p0, %p4455_p11 }
  0x26   :  { %4465 = shalt.err (!%p4462_p1)
}
  0x27   :  { %76 = dma.hbm_to_vmem [thread:$0]  %s6819_s8, 32, %s74_s21, [#allocation8]  }
  0x28   :  { %s4466_s19 = scalar_lea.hbm %s6812_s1, 128 }
  0x29   :  { %p4467_p2 = scmp.ne.s32.totalorder %s6812_s1, %s4466_s19  ;;  %p4470_p3 = scmp.lt.u32.totalorder %s4466_s19, %s6812_s1 }
  0x2b   :  { %p4472_p4 = pnand %p4470_p3, %p4467_p2 }
  0x2d   :  { %4475 = shalt.err (!%p4472_p4)
}
  0x2e   :  { %s4476_s26 = scalar_lea.vmem %s34_s24, 128  ;;  %p4481_p6 = scmp.lt.s32.totalorder %s34_s24, %s34_s24 }
  0x2f   :  { %p4477_p5 = scmp.ne.s32.totalorder %s34_s24, %s4476_s26  ;;  %p4482_p7 = scmp.lt.s32.totalorder %s4476_s26, %s4476_s26 }
  0x31   :  { %p4483_p8 = por %p4482_p7, %p4481_p6 }
  0x33   :  { %p4484_p9 = pnand %p4483_p8, %p4477_p5 }
  0x35   :  { %4487 = shalt.err (!%p4484_p9)
}
  0x36   :  { %36 = dma.hbm_to_vmem [thread:$0]  %s6812_s1, 128, %s34_s24, [#allocation3]  }
  0x37   :  { %s4567_s27 = smov [#allocation6]   ;;  %s4568_s29 = smov [#allocation9]  }
  0x38   :  { %s57_s28 = sshll.u32 %s4567_s27, 4  ;;  %s87_s30 = sshll.u32 %s4568_s29, 4  ;;  %s58_s28 = int_to_ptr.vmem [resolvable:$true] %s57_s28  ;;  %s88_s30 = int_to_ptr.vmem [resolvable:$true] %s87_s30 }
  0x39   :  { %s4488_s0 = scalar_lea.hbm %s6815_s4, 256 }
  0x3a   :  { %p4489_p10 = scmp.ne.s32.totalorder %s6815_s4, %s4488_s0  ;;  %p4492_p11 = scmp.lt.u32.totalorder %s4488_s0, %s6815_s4 }
  0x3c   :  { %p4494_p12 = pnand %p4492_p11, %p4489_p10 }
  0x3e   :  { %4497 = shalt.err (!%p4494_p12)
}
  0x3f   :  { %s4498_s1 = scalar_lea.vmem %s58_s28, 256  ;;  %p4503_p0 = scmp.lt.s32.totalorder %s58_s28, %s58_s28 }
  0x40   :  { %p4499_p13 = scmp.ne.s32.totalorder %s58_s28, %s4498_s1  ;;  %p4504_p1 = scmp.lt.s32.totalorder %s4498_s1, %s4498_s1 }
  0x42   :  { %p4505_p2 = por %p4504_p1, %p4503_p0 }
  0x44   :  { %p4506_p3 = pnand %p4505_p2, %p4499_p13 }
  0x46   :  { %4509 = shalt.err (!%p4506_p3)
}
  0x47   :  { %60 = dma.hbm_to_vmem [thread:$0]  %s6815_s4, 256, %s58_s28, [#allocation5]  }
  0x48   :  { %s4510_s26 = scalar_lea.hbm %s6822_s11, 16 }
  0x49   :  { %p4511_p4 = scmp.ne.s32.totalorder %s6822_s11, %s4510_s26  ;;  %p4514_p5 = scmp.lt.u32.totalorder %s4510_s26, %s6822_s11 }
  0x4b   :  { %p4516_p6 = pnand %p4514_p5, %p4511_p4 }
  0x4d   :  { %4519 = shalt.err (!%p4516_p6)
}
  0x4e   :  { %s4520_s3 = scalar_lea.vmem %s88_s30, 16  ;;  %s4524_s22 = scalar_lea.vmem %s88_s30, 32 }
  0x4f   :  { %p4521_p7 = scmp.ne.s32.totalorder %s88_s30, %s4520_s3  ;;  %p4525_p8 = scmp.lt.s32.totalorder %s88_s30, %s88_s30 }
  0x50   :  { %p4526_p9 = scmp.lt.s32.totalorder %s4524_s22, %s4520_s3 }
  0x52   :  { %p4527_p10 = por %p4526_p9, %p4525_p8 }
  0x54   :  { %p4528_p11 = pnand %p4527_p10, %p4521_p7 }
  0x56   :  { %4531 = shalt.err (!%p4528_p11)
}
  0x57   :  { %90 = dma.hbm_to_vmem [thread:$0]  %s6822_s11, 16, %s88_s30, [#allocation8]  }
  0x58   :  { %s4569_s0 = smov [#allocation10]   ;;  %s4532_s16 = scalar_lea.hbm %s6823_s12, 16 }
  0x59   :  { %s97_s17 = sshll.u32 %s4569_s0, 4  ;;  %p4533_p12 = scmp.ne.s32.totalorder %s6823_s12, %s4532_s16  ;;  %s98_s17 = int_to_ptr.vmem [resolvable:$true] %s97_s17 }
  0x5a   :  { %p4536_p13 = scmp.lt.u32.totalorder %s4532_s16, %s6823_s12 }
  0x5c   :  { %p4538_p0 = pnand %p4536_p13, %p4533_p12 }
  0x5e   :  { %4541 = shalt.err (!%p4538_p0)
}
  0x5f   :  { %s4542_s25 = scalar_lea.vmem %s98_s17, 16  ;;  %s4546_s11 = scalar_lea.vmem %s98_s17, 32 }
  0x60   :  { %p4543_p1 = scmp.ne.s32.totalorder %s98_s17, %s4542_s25  ;;  %p4547_p2 = scmp.lt.s32.totalorder %s98_s17, %s98_s17 }
  0x61   :  { %p4548_p3 = scmp.lt.s32.totalorder %s4546_s11, %s4542_s25 }
  0x63   :  { %p4549_p4 = por %p4548_p3, %p4547_p2 }
  0x65   :  { %p4550_p5 = pnand %p4549_p4, %p4543_p1 }
  0x67   :  { %4553 = shalt.err (!%p4550_p5)
}
  0x68   :  { %100 = dma.hbm_to_vmem [thread:$0]  %s6823_s12, 16, %s98_s17, [#allocation11]  }
  0x69   :  { %4554 = dma.done.wait [#allocation3], 128  }
  0x6a   :  { %4555 = vsyncadd [#allocation3], 4294967168 }
  0x6b   :  { %4556 = dma.done.wait [#allocation5], 1024  }
  0x6c   :  { %4557 = vsyncadd [#allocation5], 4294966272 }
  0x6d   :  { %4558 = dma.done.wait [#allocation8], 48  }
  0x6e   :  { %4559 = vsyncadd [#allocation8], 4294967248 }
  0x6f   :  { %4560 = dma.done.wait [#allocation11], 16  }
  0x70   :  { %4561 = vsyncadd [#allocation11], 4294967280  ;;  %vm6851_vm0 = vcmask 1044480   ;;  %vm6850_vm1 = vcmask 39936   ;;  %v136_v0 = vld [vmem:[#allocation2] sm:$0x1f] }
  0x71   :  { %s6859_s27 = sld [smem:[#allocation19_spill]]  ;;  %4086 = vmatprep.subr.msk.mxu0 %vm6851_vm0, %v136_v0  ;;  %v6837_v43 = vmov 683565275   ;;  %v4571_v48 = vmov 2475754826   ;;  %s6933_s11 = sld [smem:[#allocation20_spill]] }
  0x72   :  { %4087 = vmatpush3.msk.msra.mxu0 %vm6851_vm0, %v136_v0  ;;  %v6840_v50 = vmov 2131351028   ;;  %v6835_v52 = vmov 2102212464   ;;  %v6842_v54 = vmov 920167782  }
  0x73   :  { %v6832_v61 = vmov 1326507024  }
  0x77   :  { %v126_v1 = vld [vmem:[%s6859_s27] sm:$0xff]  ;;  %v127_v2 = vld [vmem:[%s6859_s27 + $0x8] sm:$0xff]  ;;  %v128_v3 = vld [vmem:[%s6859_s27 + $0x10] sm:$0xff] }
  0x78   :  { %4088 = vmatprep.mubr.msk.f32.mxu0 %vm6850_vm1, %v126_v1  ;;  %v129_v4 = vld [vmem:[%s6859_s27 + $0x18] sm:$0xff]  ;;  %v130_v5 = vld [vmem:[%s6859_s27 + $0x20] sm:$0xff]  ;;  %v131_v6 = vld [vmem:[%s6859_s27 + $0x28] sm:$0xff] }
  0x79   :  { %4089 = vmatmul.mubr.msk.f32.vlgmr.msra.gmra.mrb[0].mxu0 %vm6850_vm1, %v127_v2  ;;  %v132_v7 = vld [vmem:[%s6859_s27 + $0x30] sm:$0xff]  ;;  %v133_v8 = vld [vmem:[%s6859_s27 + $0x38] sm:$0xff]  ;;  %v134_v9 = vld [vmem:[%s6859_s27 + $0x40] sm:$0xff] }
  0x7a   :  { %4091 = vmatprep.mubr.msk.f32.mxu0 %vm6850_vm1, %v128_v3  ;;  %v135_v10 = vld [vmem:[%s6859_s27 + $0x48] sm:$0xff] }
  0x7d   :  { %4092 = vmatmul.mubr.msk.f32.gmra.mrb[2].mxu0 %vm6850_vm1, %v129_v4 }
  0x7e   :  { %4094 = vmatprep.mubr.msk.f32.mxu0 %vm6850_vm1, %v130_v5 }
  0x81   :  { %4095 = vmatmul.mubr.msk.f32.gmra.mrb[4].mxu0 %vm6850_vm1, %v131_v6 }
  0x82   :  { %4097 = vmatprep.mubr.msk.f32.mxu0 %vm6850_vm1, %v132_v7 }
  0x85   :  { %4098 = vmatmul.mubr.msk.f32.gmra.mrb[6].mxu0 %vm6850_vm1, %v133_v8 }
  0x86   :  { %4100 = vmatprep.mubr.msk.f32.mxu0 %vm6850_vm1, %v134_v9 }
  0x89   :  { %4101 = vmatmul.mubr.msk.f32.gmra.mrb[8].mxu0 %vm6850_vm1, %v135_v10 }
 0x14c   :  { %v4778_v11 = vpop.f32.mrb[0].mxu0 }
 0x14d   :  { %v390_v12 = vand.u32 2147483647, %v4778_v11  ;;  %v393_v13 = vand.u32 2139095040, %v4778_v11  ;;  %v4782_v14 = vpop.f32.mrb[1].mxu0 }
 0x14e   :  { %v287_v15 = vand.u32 2147483647, %v4782_v14  ;;  %v290_v16 = vand.u32 2139095040, %v4782_v14 }
 0x14f   :  { %v394_v17 = vshrl.u32 %v393_v13, 23  ;;  %v397_v18 = vand.u32 8388607, %v390_v12 }
 0x150   :  { %v291_v19 = vshrl.u32 %v290_v16, 23  ;;  %v294_v20 = vand.u32 8388607, %v287_v15  ;;  %v4790_v21 = vpop.f32.mrb[2].mxu0 }
 0x151   :  { %v3922_v22 = vadd.s32 4294967169, %v394_v17  ;;  %v4792_v23 = vpop.f32.mrb[3].mxu0  ;;  %v599_v25 = vand.u32 2139095040, %v4790_v21  ;;  %v398_v27 = vor.u32 8388608, %v397_v18 }
 0x152   :  { %v3918_v24 = vadd.s32 4294967169, %v291_v19  ;;  %v295_v28 = vor.u32 8388608, %v294_v20 }
 0x153   :  { %v400_v26 = vadd.s32 1, %v3922_v22  ;;  %v600_v30 = vshrl.u32 %v599_v25, 23  ;;  %v4799_v38 = vshll.u32 %v398_v27, 8 }
 0x154   :  { %v297_v29 = vadd.s32 1, %v3918_v24  ;;  %v4795_v31 = vpop.f32.mrb[4].mxu0  ;;  %v4803_v40 = vshll.u32 %v295_v28, 8 }
 0x155   :  { %6860 = vst [vmem:[#allocation16_spill] sm:$0xff] %v4795_v31  ;;  %vm401_vm2 = vcmp.gt.s32.totalorder %v400_v26, 0  ;;  %v4797_v32 = vpop.f32.mrb[5].mxu0  ;;  %v3930_v34 = vadd.s32 4294967169, %v600_v30 }
 0x156   :  { %v402_v33 = vsel %vm401_vm2, %v400_v26, 0  ;;  %vm298_vm3 = vcmp.gt.s32.totalorder %v297_v29, 0 }
 0x157   :  { %v403_v35 = vshrl.u32 %v402_v33, 5  ;;  %v404_v36 = vand.u32 31, %v402_v33  ;;  %v299_v37 = vsel %vm298_vm3, %v297_v29, 0  ;;  %v4808_v46 = vadd.s32 1, %v3930_v34 }
 0x158   :  { %v4801_v39 = vshrl.u32 %v299_v37, 5  ;;  %v4805_v41 = vpop.f32.mrb[6].mxu0  ;;  %v301_v45 = vand.u32 31, %v299_v37 }
 0x159   :  { %6861 = vst [vmem:[#allocation17_spill] sm:$0xff] %v4805_v41  ;;  %v405_v42 = vsub.s32 32, %v404_v36  ;;  %v407_v44 = vshll.u32 %v6837_v43, %v404_v36  ;;  %v4810_v47 = vpop.f32.mrb[7].mxu0  ;;  %v410_v49 = vshll.u32 %v4571_v48, %v404_v36  ;;  %v413_v51 = vshll.u32 %v6840_v50, %v404_v36 }
 0x15a   :  { %v416_v53 = vshll.u32 %v6835_v52, %v404_v36  ;;  %v419_v55 = vshll.u32 %v6842_v54, %v404_v36  ;;  %vm422_vm4 = vcmp.lt.s32.totalorder %v403_v35, 1  ;;  %vm423_vm5 = vcmp.lt.s32.totalorder %v403_v35, 2 }
 0x15b   :  { %v408_v56 = vshrl.u32 %v4571_v48, %v405_v42  ;;  %v411_v57 = vshrl.u32 %v6840_v50, %v405_v42  ;;  %v414_v58 = vshrl.u32 %v6835_v52, %v405_v42  ;;  %v406_v59 = vshrl.u32 %v6837_v43, %v405_v42 }
 0x15c   :  { %v417_v60 = vshrl.u32 %v6842_v54, %v405_v42  ;;  %v420_v62 = vshrl.u32 %v6832_v61, %v405_v42  ;;  %v302_v2 = vsub.s32 32, %v301_v45  ;;  %v4822_v3 = vpop.f32.mrb[8].mxu0  ;;  %vm424_vm6 = vcmp.lt.s32.totalorder %v403_v35, 3 }
 0x15d   :  { %v409_v63 = vor.u32 %v408_v56, %v407_v44  ;;  %v412_v0 = vor.u32 %v411_v57, %v410_v49  ;;  %v415_v1 = vor.u32 %v414_v58, %v413_v51  ;;  %vm425_vm7 = vcmp.lt.s32.totalorder %v403_v35, 4 }
 0x15e   :  { %v418_v4 = vor.u32 %v417_v60, %v416_v53  ;;  %v421_v5 = vor.u32 %v420_v62, %v419_v55  ;;  %v304_v17 = vshll.u32 %v6837_v43, %v301_v45  ;;  %v305_v20 = vshrl.u32 %v4571_v48, %v302_v2 }
 0x15f   :  { %v426_v6 = vsel %vm422_vm4, %v406_v59, %v409_v63  ;;  %v427_v7 = vsel %vm425_vm7, %v415_v1, 2102212464  ;;  %v430_v8 = vsel %vm422_vm4, %v409_v63, %v412_v0  ;;  %v434_v9 = vsel %vm422_vm4, %v412_v0, %v415_v1 }
 0x160   :  { %v428_v10 = vsel %vm424_vm6, %v412_v0, %v427_v7  ;;  %v431_v13 = vsel %vm425_vm7, %v418_v4, 920167782  ;;  %v435_v16 = vsel %vm425_vm7, %v421_v5, 1326507024  ;;  %v307_v22 = vshll.u32 %v4571_v48, %v301_v45 }
 0x161   :  { %v432_v18 = vsel %vm424_vm6, %v415_v1, %v431_v13  ;;  %v436_v19 = vsel %vm424_vm6, %v418_v4, %v435_v16  ;;  %v429_v24 = vsel %vm423_vm5, %v426_v6, %v428_v10  ;;  %v308_v27 = vshrl.u32 %v6840_v50, %v302_v2 }
 0x162   :  { %v433_v25 = vsel %vm423_vm5, %v430_v8, %v432_v18  ;;  %v437_v26 = vsel %vm423_vm5, %v434_v9, %v436_v19  ;;  %v306_v34 = vor.u32 %v305_v20, %v304_v17  ;;  %v310_v37 = vshll.u32 %v6840_v50, %v301_v45 }
 0x163   :  { %v4835_v28 = vmul.u32.u64.low %v4799_v38, %v437_v26  ;;  %v4836_v29 = vmul.u32.u64.high %v4799_v38, %v437_v26, %v4835_v28  ;;  %v4839_v30 = vmul.u32.u64.low %v4799_v38, %v433_v25  ;;  %v4840_v33 = vmul.u32.u64.high %v4799_v38, %v433_v25, %v4839_v30  ;;  %v4879_v25 = vpop.f32.mrb[9].mxu0 }
 0x164   :  { %v309_v36 = vor.u32 %v308_v27, %v307_v22  ;;  %v311_v42 = vshrl.u32 %v6835_v52, %v302_v2  ;;  %v303_v35 = vshrl.u32 %v6837_v43, %v302_v2  ;;  %v313_v44 = vshll.u32 %v6835_v52, %v301_v45 }
 0x165   :  { %v314_v49 = vshrl.u32 %v6842_v54, %v302_v2  ;;  %v317_v51 = vshrl.u32 %v6832_v61, %v302_v2  ;;  %v445_v53 = vmul.u32 %v4799_v38, %v429_v24  ;;  %v316_v56 = vshll.u32 %v6842_v54, %v301_v45 }
 0x166   :  { %v312_v55 = vor.u32 %v311_v42, %v310_v37  ;;  %vm319_vm8 = vcmp.lt.s32.totalorder %v4801_v39, 1  ;;  %vm447_vm9 = vc.u32 %v4836_v29, %v4839_v30  ;;  %v448_v57 = vadd.s32 1, %v4840_v33 }
 0x167   :  { %v315_v58 = vor.u32 %v314_v49, %v313_v44  ;;  %vm320_vm10 = vcmp.lt.s32.totalorder %v4801_v39, 2  ;;  %v318_v59 = vor.u32 %v317_v51, %v316_v56  ;;  %vm321_vm11 = vcmp.lt.s32.totalorder %v4801_v39, 3 }
 0x168   :  { %vm322_vm12 = vcmp.lt.s32.totalorder %v4801_v39, 4  ;;  %v327_v60 = vsel %vm319_vm8, %v306_v34, %v309_v36  ;;  %v449_v38 = vsel %vm447_vm9, %v448_v57, %v4840_v33  ;;  %v331_v63 = vsel %vm319_vm8, %v309_v36, %v312_v55 }
 0x169   :  { %v324_v62 = vsel %vm322_vm12, %v312_v55, 2102212464  ;;  %v328_v45 = vsel %vm322_vm12, %v315_v58, 920167782  ;;  %v450_v0 = vadd.s32 %v449_v38, %v445_v53  ;;  %v323_v1 = vsel %vm319_vm8, %v303_v35, %v306_v34 }
 0x16a   :  { %v329_v2 = vsel %vm321_vm11, %v312_v55, %v328_v45  ;;  %v332_v4 = vsel %vm322_vm12, %v318_v59, 1326507024  ;;  %v325_v5 = vsel %vm321_vm11, %v309_v36, %v324_v62  ;;  %vm607_vm13 = vcmp.gt.s32.totalorder %v4808_v46, 0 }
 0x16b   :  { %v330_v6 = vsel %vm320_vm10, %v327_v60, %v329_v2  ;;  %v333_v7 = vsel %vm321_vm11, %v315_v58, %v332_v4  ;;  %v451_v8 = vadd.s32 536870912, %v450_v0  ;;  %v608_v18 = vsel %vm607_vm13, %v4808_v46, 0 }
 0x16c   :  { %v334_v9 = vsel %vm320_vm10, %v331_v63, %v333_v7  ;;  %v4865_v10 = vmul.u32.u64.low %v4803_v40, %v330_v6  ;;  %v4866_v13 = vmul.u32.u64.high %v4803_v40, %v330_v6, %v4865_v10  ;;  %v326_v20 = vsel %vm320_vm10, %v323_v1, %v325_v5 }
 0x16d   :  { %v4870_v16 = vmul.u32.u64.low %v4803_v40, %v334_v9  ;;  %v4871_v17 = vmul.u32.u64.high %v4803_v40, %v334_v9, %v4870_v16  ;;  %v4874_v19 = vshrl.u32 %v451_v8, 30  ;;  %v596_v22 = vand.u32 2147483647, %v4790_v21 }
 0x16e   :  { %v610_v24 = vand.u32 31, %v608_v18  ;;  %v345_v27 = vadd.s32 1, %v4866_v13  ;;  %v342_v33 = vmul.u32 %v4803_v40, %v326_v20  ;;  %v493_v39 = vand.u32 2147483647, %v4792_v23 }
 0x16f   :  { %v453_v26 = vshll.u32 %v4874_v19, 30  ;;  %vm344_vm14 = vc.u32 %v4871_v17, %v4865_v10  ;;  %v603_v37 = vand.u32 8388607, %v596_v22  ;;  %v496_v49 = vand.u32 2139095040, %v4792_v23 }
 0x170   :  { %v611_v28 = vsub.s32 32, %v610_v24  ;;  %v613_v46 = vshll.u32 %v6837_v43, %v610_v24  ;;  %v346_v36 = vsel %vm344_vm14, %v345_v27, %v4866_v13  ;;  %v616_v42 = vshll.u32 %v4571_v48, %v610_v24 }
 0x171   :  { %v4888_v34 = vsub.s32 %v450_v0, %v453_v26  ;;  %v347_v35 = vadd.s32 %v346_v36, %v342_v33  ;;  %v619_v53 = vshll.u32 %v6840_v50, %v610_v24  ;;  %v622_v56 = vshll.u32 %v6835_v52, %v610_v24 }
 0x172   :  { %v614_v44 = vshrl.u32 %v4571_v48, %v611_v28  ;;  %v617_v40 = vshrl.u32 %v6840_v50, %v611_v28  ;;  %v620_v55 = vshrl.u32 %v6835_v52, %v611_v28  ;;  %v609_v58 = vshrl.u32 %v608_v18, 5 }
 0x173   :  { %v456_v51 = vsub.s32 0, %v4888_v34  ;;  %v348_v57 = vadd.s32 536870912, %v347_v35  ;;  %v623_v60 = vshrl.u32 %v6842_v54, %v611_v28  ;;  %v625_v45 = vshll.u32 %v6842_v54, %v610_v24 }
 0x174   :  { %v615_v59 = vor.u32 %v614_v44, %v613_v46  ;;  %v618_v62 = vor.u32 %v617_v40, %v616_v42  ;;  %v626_v63 = vshrl.u32 %v6832_v61, %v611_v28  ;;  %v604_v1 = vor.u32 8388608, %v603_v37 }
 0x175   :  { %v3923_v38 = vmin.u32 %v456_v51, %v4888_v34  ;;  %v4905_v0 = vshrl.u32 %v348_v57, 30  ;;  %v621_v2 = vor.u32 %v620_v55, %v619_v53  ;;  %v624_v4 = vor.u32 %v623_v60, %v622_v56 }
 0x176   :  { %v612_v6 = vshrl.u32 %v6837_v43, %v611_v28  ;;  %v497_v7 = vshrl.u32 %v496_v49, 23  ;;  %v4910_v8 = vand.u32 8388607, %v493_v39  ;;  %v627_v13 = vor.u32 %v626_v63, %v625_v45 }
 0x177   :  { %v458_v5 = vclz %v3923_v38  ;;  %v350_v9 = vshll.u32 %v4905_v0, 30  ;;  %vm628_vm15 = vcmp.lt.s32.totalorder %v609_v58, 1  ;;  %vm631_vm2 = vcmp.lt.s32.totalorder %v609_v58, 4 }
 0x178   :  { %vm630_vm3 = vcmp.lt.s32.totalorder %v609_v58, 3  ;;  %v636_v18 = vsel %vm628_vm15, %v615_v59, %v618_v62  ;;  %v637_v20 = vsel %vm631_vm2, %v624_v4, 920167782  ;;  %vm629_vm4 = vcmp.lt.s32.totalorder %v609_v58, 2 }
 0x179   :  { %v3924_v16 = vadd.s32 4294967294, %v458_v5  ;;  %v4914_v24 = vsub.s32 %v347_v35, %v350_v9  ;;  %v633_v26 = vsel %vm631_vm2, %v621_v2, 2102212464  ;;  %v638_v27 = vsel %vm630_vm3, %v621_v2, %v637_v20 }
 0x17a   :  { %v639_v28 = vsel %vm629_vm4, %v636_v18, %v638_v27  ;;  %v640_v33 = vsel %vm628_vm15, %v618_v62, %v621_v2  ;;  %v644_v46 = vshll.u32 %v604_v1, 8  ;;  %v641_v42 = vsel %vm631_vm2, %v627_v13, 1326507024 }
 0x17b   :  { %vm3925_vm5 = vcmp.lt.s32.totalorder %v3924_v16, 0  ;;  %v353_v37 = vsub.s32 0, %v4914_v24  ;;  %v3926_v44 = vadd.s32 4294967169, %v497_v7  ;;  %v632_v49 = vsel %vm628_vm15, %v612_v6, %v615_v59 }
 0x17c   :  { %v461_v36 = vsel %vm3925_vm5, 0, %v3924_v16  ;;  %v634_v35 = vsel %vm630_vm3, %v618_v62, %v633_v26  ;;  %v642_v51 = vsel %vm630_vm3, %v624_v4, %v641_v42  ;;  %v476_v1 = vsub.s32 4, %v4874_v19 }
 0x17d   :  { %v466_v40 = vsub.s32 4294967266, %v461_v36  ;;  %v3919_v53 = vmin.u32 %v353_v37, %v4914_v24  ;;  %v643_v55 = vsel %vm629_vm4, %v640_v33, %v642_v51  ;;  %v462_v60 = vsub.s32 32, %v461_v36 }
 0x17e   :  { %v4925_v56 = vmul.u32.u64.low %v644_v46, %v639_v28  ;;  %v4926_v57 = vmul.u32.u64.high %v644_v46, %v639_v28, %v4925_v56  ;;  %v4929_v45 = vmul.u32.u64.low %v644_v46, %v643_v55  ;;  %v4930_v63 = vmul.u32.u64.high %v644_v46, %v643_v55, %v4929_v45 }
 0x17f   :  { %v467_v38 = vadd.s32 127, %v466_v40  ;;  %v355_v59 = vclz %v3919_v53  ;;  %v635_v62 = vsel %vm629_vm4, %v632_v49, %v634_v35  ;;  %v503_v2 = vadd.s32 1, %v3926_v44 }
 0x180   :  { %vm4936_vm6 = vcmp.le.f32.partialorder %v390_v12, 0.7853982  ;;  %vm392_vm7 = vcmp.lt.s32.totalorder %v4778_v11, 0  ;;  %v446_v5 = vadd.s32 %v4839_v30, %v4836_v29  ;;  %v654_v9 = vadd.s32 1, %v4926_v57 }
 0x181   :  { %v468_v6 = vshll.u32 %v467_v38, 23  ;;  %v3920_v7 = vadd.s32 4294967294, %v355_v59  ;;  %v501_v13 = vor.u32 8388608, %v4910_v8  ;;  %vm504_vm8 = vcmp.gt.s32.totalorder %v503_v2, 0 }
 0x182   :  { %v464_v58 = vshrl.u32 %v446_v5, %v462_v60  ;;  %v651_v16 = vmul.u32 %v644_v46, %v635_v62  ;;  %vm653_vm9 = vc.u32 %v4930_v63, %v4925_v56  ;;  %v805_v12 = vand.u32 2139095040, %v4795_v31 }
 0x183   :  { %v477_v18 = vsel %vm392_vm7, %v476_v1, %v4874_v19  ;;  %vm3921_vm10 = vcmp.lt.s32.totalorder %v3920_v7, 0  ;;  %v655_v29 = vsel %vm653_vm9, %v654_v9, %v4926_v57  ;;  %v505_v30 = vsel %vm504_vm8, %v503_v2, 0 }
 0x184   :  { %v463_v20 = vshll.u32 %v4888_v34, %v461_v36  ;;  %v469_v26 = vor.u32 4788187, %v468_v6  ;;  %v358_v8 = vsel %vm3921_vm10, 0, %v3920_v7  ;;  %v656_v27 = vadd.s32 %v655_v29, %v651_v16 }
 0x185   :  { %v359_v28 = vsub.s32 32, %v358_v8  ;;  %v363_v33 = vsub.s32 4294967266, %v358_v8  ;;  %v507_v46 = vand.u32 31, %v505_v30  ;;  %v802_v37 = vand.u32 2147483647, %v4795_v31 }
 0x186   :  { %v465_v42 = vor.u32 %v464_v58, %v463_v20  ;;  %v4956_v44 = vsel %vm4936_vm6, 0, %v477_v18  ;;  %v343_v19 = vadd.s32 %v4865_v10, %v4871_v17  ;;  %v657_v40 = vadd.s32 536870912, %v656_v27 }
 0x187   :  { %v364_v49 = vadd.s32 127, %v363_v33  ;;  %v373_v34 = vsub.s32 4, %v4905_v0  ;;  %v508_v36 = vsub.s32 32, %v507_v46  ;;  %v806_v35 = vshrl.u32 %v805_v12, 23 }
 0x188   :  { %v470_v51 = vand.u32 2147483647, %v469_v26  ;;  %v361_v53 = vshrl.u32 %v343_v19, %v359_v28  ;;  %v4961_v55 = vshrl.u32 %v657_v40, 30  ;;  %v506_v57 = vshrl.u32 %v505_v30, 5 }
 0x189   :  { %v365_v60 = vshll.u32 %v364_v49, 23  ;;  %v510_v38 = vshll.u32 %v6837_v43, %v507_v46  ;;  %v511_v45 = vshrl.u32 %v4571_v48, %v508_v36  ;;  %v513_v1 = vshll.u32 %v4571_v48, %v507_v46 }
 0x18a   :  { %v472_v59 = vcvt.s32.f32 %v465_v42  ;;  %v659_v10 = vshll.u32 %v4961_v55, 30  ;;  %v514_v17 = vshrl.u32 %v6840_v50, %v508_v36  ;;  %v4968_v62 = vshll.u32 %v501_v13, 8 }
 0x18b   :  { %v360_v2 = vshll.u32 %v4914_v24, %v358_v8  ;;  %v366_v5 = vor.u32 4788187, %v365_v60  ;;  %v516_v6 = vshll.u32 %v6840_v50, %v507_v46  ;;  %v3938_v7 = vadd.s32 4294967169, %v806_v35 }
 0x18c   :  { %v473_v9 = vmul.f32 %v472_v59, %v470_v51  ;;  %vm289_vm11 = vcmp.lt.s32.totalorder %v4782_v14, 0  ;;  %v4973_v58 = vsub.s32 %v656_v27, %v659_v10  ;;  %vm525_vm12 = vcmp.lt.s32.totalorder %v506_v57, 1 }
 0x18d   :  { %vm526_vm13 = vcmp.lt.s32.totalorder %v506_v57, 2  ;;  %v362_v16 = vor.u32 %v361_v53, %v360_v2  ;;  %v512_v12 = vor.u32 %v511_v45, %v510_v38  ;;  %v515_v18 = vor.u32 %v514_v17, %v513_v1 }
 0x18e   :  { %v517_v29 = vshrl.u32 %v6835_v52, %v508_v36  ;;  %v662_v13 = vsub.s32 0, %v4973_v58  ;;  %v519_v24 = vshll.u32 %v6835_v52, %v507_v46  ;;  %v520_v30 = vshrl.u32 %v6842_v54, %v508_v36 }
 0x18f   :  { %v522_v20 = vshll.u32 %v6842_v54, %v507_v46  ;;  %vm4982_vm14 = vcmp.le.f32.partialorder %v287_v15, 0.7853982  ;;  %v367_v8 = vand.u32 2147483647, %v366_v5  ;;  %v509_v27 = vshrl.u32 %v6837_v43, %v508_v36 }
 0x190   :  { %v518_v28 = vor.u32 %v517_v29, %v516_v6  ;;  %v523_v33 = vshrl.u32 %v6832_v61, %v508_v36  ;;  %v474_v42 = vxor.u32 2147483648, %v473_v9  ;;  %v3931_v19 = vmin.u32 %v662_v13, %v4973_v58 }
 0x191   :  { %v521_v40 = vor.u32 %v520_v30, %v519_v24  ;;  %vm528_vm15 = vcmp.lt.s32.totalorder %v506_v57, 4  ;;  %v369_v49 = vcvt.s32.f32 %v362_v16  ;;  %v533_v51 = vsel %vm525_vm12, %v512_v12, %v515_v18 }
 0x192   :  { %v524_v35 = vor.u32 %v523_v33, %v522_v20  ;;  %v530_v46 = vsel %vm528_vm15, %v518_v28, 2102212464  ;;  %v664_v15 = vclz %v3931_v19  ;;  %vm527_vm2 = vcmp.lt.s32.totalorder %v506_v57, 3 }
 0x193   :  { %v534_v53 = vsel %vm528_vm15, %v521_v40, 920167782  ;;  %v537_v60 = vsel %vm525_vm12, %v515_v18, %v518_v28  ;;  %v370_v38 = vmul.f32 %v369_v49, %v367_v8  ;;  %v529_v45 = vsel %vm525_vm12, %v509_v27, %v512_v12 }
 0x194   :  { %v535_v1 = vsel %vm527_vm2, %v518_v28, %v534_v53  ;;  %v538_v36 = vsel %vm528_vm15, %v524_v35, 1326507024  ;;  %vm598_vm3 = vcmp.lt.s32.totalorder %v4790_v21, 0  ;;  %v3932_v59 = vadd.s32 4294967294, %v664_v15 }
 0x195   :  { %v531_v10 = vsel %vm527_vm2, %v515_v18, %v530_v46  ;;  %v536_v17 = vsel %vm526_vm13, %v533_v51, %v535_v1  ;;  %v539_v2 = vsel %vm527_vm2, %v521_v40, %v538_v36  ;;  %v374_v5 = vsel %vm289_vm11, %v373_v34, %v4905_v0 }
 0x196   :  { %v540_v6 = vsel %vm526_vm13, %v537_v60, %v539_v2  ;;  %v4999_v16 = vmul.u32.u64.low %v4968_v62, %v536_v17  ;;  %v5000_v29 = vmul.u32.u64.high %v4968_v62, %v536_v17, %v4999_v16  ;;  %v475_v12 = vsel %vm392_vm7, %v474_v42, %v473_v9 }
 0x197   :  { %vm3933_vm4 = vcmp.lt.s32.totalorder %v3932_v59, 0  ;;  %v5006_v18 = vmul.u32.u64.low %v4968_v62, %v540_v6  ;;  %v5007_v13 = vmul.u32.u64.high %v4968_v62, %v540_v6, %v5006_v18  ;;  %v371_v24 = vxor.u32 2147483648, %v370_v38 }
 0x198   :  { %v667_v30 = vsel %vm3933_vm4, 0, %v3932_v59  ;;  %v532_v20 = vsel %vm526_vm13, %v529_v45, %v531_v10  ;;  %v812_v0 = vadd.s32 1, %v3938_v7  ;;  %v5012_v34 = vsel %vm4982_vm14, 0, %v374_v5 }
 0x199   :  { %v652_v8 = vadd.s32 %v4925_v56, %v4930_v63  ;;  %v668_v27 = vsub.s32 32, %v667_v30  ;;  %v672_v28 = vsub.s32 4294967266, %v667_v30  ;;  %v478_v9 = vsel %vm4936_vm6, %v4778_v11, %v475_v12 }
 0x19a   :  { %v682_v33 = vsub.s32 4, %v4961_v55  ;;  %v551_v42 = vadd.s32 1, %v5000_v29  ;;  %vm813_vm5 = vcmp.gt.s32.totalorder %v812_v0, 0  ;;  %v548_v7 = vmul.u32 %v4968_v62, %v532_v20 }
 0x19b   :  { %v673_v57 = vadd.s32 127, %v672_v28  ;;  %vm550_vm7 = vc.u32 %v5007_v13, %v4999_v16  ;;  %v809_v56 = vand.u32 8388607, %v802_v37  ;;  %v372_v63 = vsel %vm289_vm11, %v371_v24, %v370_v38 }
 0x19c   :  { %v670_v19 = vshrl.u32 %v652_v8, %v668_v27  ;;  %v552_v4 = vsel %vm550_vm7, %v551_v42, %v5000_v29  ;;  %v814_v40 = vsel %vm813_vm5, %v812_v0, 0  ;;  %4312 = vcosq.f32 %v478_v9 }
 0x19d   :  { %v5030_v49 = vand.u32 3, %v5012_v34  ;;  %vm5034_vm6 = vcmp.le.f32.partialorder %v596_v22, 0.7853982  ;;  %v674_v35 = vshll.u32 %v673_v57, 23  ;;  %v553_v46 = vadd.s32 %v552_v4, %v548_v7 }
 0x19e   :  { %4314 = vsinq.f32 %v478_v9  ;;  %v669_v51 = vshll.u32 %v4973_v58, %v667_v30  ;;  %v683_v15 = vsel %vm598_vm3, %v682_v33, %v4961_v55  ;;  %v816_v53 = vand.u32 31, %v814_v40 }
 0x19f   :  { %v375_v60 = vsel %vm4982_vm14, %v4782_v14, %v372_v63  ;;  %v675_v38 = vor.u32 4788187, %v674_v35  ;;  %v554_v45 = vadd.s32 536870912, %v553_v46  ;;  %v810_v22 = vor.u32 8388608, %v809_v56 }
 0x1a0   :  { %v671_v1 = vor.u32 %v670_v19, %v669_v51  ;;  %v817_v36 = vsub.s32 32, %v816_v53  ;;  %v819_v59 = vshll.u32 %v6837_v43, %v816_v53  ;;  %v822_v10 = vshll.u32 %v4571_v48, %v816_v53 }
 0x1a1   :  { %v5047_v17 = vshrl.u32 %v554_v45, 30  ;;  %v815_v58 = vshrl.u32 %v814_v40, 5  ;;  %v825_v2 = vshll.u32 %v6840_v50, %v816_v53  ;;  %v828_v55 = vshll.u32 %v6835_v52, %v816_v53 }
 0x1a2   :  { %v676_v5 = vand.u32 2147483647, %v675_v38  ;;  %v820_v26 = vshrl.u32 %v4571_v48, %v817_v36  ;;  %v823_v6 = vshrl.u32 %v6840_v50, %v817_v36  ;;  %v826_v29 = vshrl.u32 %v6835_v52, %v817_v36 }
 0x1a3   :  { %v556_v12 = vshll.u32 %v5047_v17, 30  ;;  %v829_v18 = vshrl.u32 %v6842_v54, %v817_v36  ;;  %v831_v24 = vshll.u32 %v6842_v54, %v816_v53  ;;  %v702_v30 = vand.u32 2139095040, %v4797_v32 }
 0x1a4   :  { %v678_v20 = vcvt.s32.f32 %v671_v1  ;;  %v821_v0 = vor.u32 %v820_v26, %v819_v59  ;;  %v824_v8 = vor.u32 %v823_v6, %v822_v10  ;;  %v832_v27 = vshrl.u32 %v6832_v61, %v817_v36 }
 0x1a5   :  { %v5059_v28 = vsub.s32 %v553_v46, %v556_v12  ;;  %v827_v9 = vor.u32 %v826_v29, %v825_v2  ;;  %v830_v33 = vor.u32 %v829_v18, %v828_v55  ;;  %vm834_vm8 = vcmp.lt.s32.totalorder %v815_v58, 1 }
 0x1a6   :  { %4316 = vcosq.f32 %v375_v60  ;;  %v679_v42 = vmul.f32 %v678_v20, %v676_v5  ;;  %v5063_v57 = vsel %vm5034_vm6, 0, %v683_v15  ;;  %vm836_vm9 = vcmp.lt.s32.totalorder %v815_v58, 3  ;;  %v5065_v7 = vpop.eup %4312 }
 0x1a7   :  { %v559_v56 = vsub.s32 0, %v5059_v28  ;;  %v833_v63 = vor.u32 %v832_v27, %v831_v24  ;;  %vm835_vm10 = vcmp.lt.s32.totalorder %v815_v58, 2  ;;  %vm837_vm11 = vcmp.lt.s32.totalorder %v815_v58, 4 }
 0x1a8   :  { %v5068_v19 = vpop.eup %4314  ;;  %vm495_vm12 = vcmp.lt.s32.totalorder %v4792_v23, 0  ;;  %v818_v4 = vshrl.u32 %v6837_v43, %v817_v36  ;;  %v842_v40 = vsel %vm834_vm8, %v821_v0, %v824_v8  ;;  %v843_v35 = vsel %vm837_vm11, %v830_v33, 920167782 }
 0x1a9   :  { %v703_v46 = vshrl.u32 %v702_v30, 23  ;;  %v3927_v51 = vmin.u32 %v559_v56, %v5059_v28  ;;  %v839_v15 = vsel %vm837_vm11, %v827_v9, 2102212464  ;;  %v844_v53 = vsel %vm836_vm9, %v827_v9, %v843_v35 }
 0x1aa   :  { %v850_v38 = vshll.u32 %v810_v22, 8  ;;  %v680_v45 = vxor.u32 2147483648, %v679_v42  ;;  %v845_v1 = vsel %vm835_vm10, %v842_v40, %v844_v53  ;;  %v846_v59 = vsel %vm834_vm8, %v824_v8, %v827_v9 }
 0x1ab   :  { %v699_v10 = vand.u32 2147483647, %v4797_v32  ;;  %v561_v36 = vclz %v3927_v51  ;;  %v847_v2 = vsel %vm837_vm11, %v833_v63, 1326507024  ;;  %v838_v26 = vsel %vm834_vm8, %v818_v4, %v821_v0 }
 0x1ac   :  { %v5081_v55 = vmul.u32.u64.low %v850_v38, %v845_v1  ;;  %v5082_v5 = vmul.u32.u64.high %v850_v38, %v845_v1, %v5081_v55  ;;  %v840_v6 = vsel %vm836_vm9, %v824_v8, %v839_v15  ;;  %v848_v22 = vsel %vm836_vm9, %v830_v33, %v847_v2 }
 0x1ad   :  { %v3934_v29 = vadd.s32 4294967169, %v703_v46  ;;  %4318 = vsinq.f32 %v375_v60  ;;  %v3928_v12 = vadd.s32 4294967294, %v561_v36  ;;  %v579_v18 = vsub.s32 4, %v5047_v17 }
 0x1ae   :  { %v849_v24 = vsel %vm835_vm10, %v846_v59, %v848_v22  ;;  %v549_v30 = vadd.s32 %v4999_v16, %v5007_v13  ;;  %v681_v0 = vsel %vm598_vm3, %v680_v45, %v679_v42  ;;  %v841_v8 = vsel %vm835_vm10, %v838_v26, %v840_v6 }
 0x1af   :  { %v5092_v20 = vmul.u32.u64.low %v850_v38, %v849_v24  ;;  %v5093_v27 = vmul.u32.u64.high %v850_v38, %v849_v24, %v5092_v20  ;;  %v709_v9 = vadd.s32 1, %v3934_v29  ;;  %vm3929_vm13 = vcmp.lt.s32.totalorder %v3928_v12, 0 }
 0x1b0   :  { %v860_v60 = vadd.s32 1, %v5082_v5  ;;  %v5099_v33 = vpop.eup %4316  ;;  %v564_v56 = vsel %vm3929_vm13, 0, %v3928_v12  ;;  %v706_v63 = vand.u32 8388607, %v699_v10  ;;  %v6831_v16 = vand.u32 2147483647, %v4805_v41 }
 0x1b1   :  { %vm710_vm14 = vcmp.gt.s32.totalorder %v709_v9, 0  ;;  %v565_v13 = vsub.s32 32, %v564_v56  ;;  %v569_v4 = vsub.s32 4294967266, %v564_v56  ;;  %v5107_v42 = vsel %vm495_vm12, %v579_v18, %v5047_v17 }
 0x1b2   :  { %v711_v58 = vsel %vm710_vm14, %v709_v9, 0  ;;  %v5112_v40 = vsel %vm5034_vm6, %v4790_v21, %v681_v0  ;;  %v857_v35 = vmul.u32 %v850_v38, %v841_v8  ;;  %vm859_vm15 = vc.u32 %v5093_v27, %v5081_v55 }
 0x1b3   :  { %v713_v46 = vand.u32 31, %v711_v58  ;;  %v566_v51 = vshll.u32 %v5059_v28, %v564_v56  ;;  %v567_v15 = vshrl.u32 %v549_v30, %v565_v13  ;;  %v570_v53 = vadd.s32 127, %v569_v4 }
 0x1b4   :  { %v861_v45 = vsel %vm859_vm15, %v860_v60, %v5082_v5  ;;  %v5118_v17 = vshrl.u32 %v711_v58, 5  ;;  %v707_v18 = vor.u32 8388608, %v706_v63  ;;  %vm5134_vm2 = vcmp.le.f32.partialorder %v493_v39, 0.7853982 }
 0x1b5   :  { %v862_v1 = vadd.s32 %v861_v45, %v857_v35  ;;  %v714_v59 = vsub.s32 32, %v713_v46  ;;  %v716_v36 = vshll.u32 %v6837_v43, %v713_v46  ;;  %v568_v62 = vor.u32 %v567_v15, %v566_v51 }
 0x1b6   :  { %v571_v2 = vshll.u32 %v570_v53, 23  ;;  %v719_v38 = vshll.u32 %v4571_v48, %v713_v46  ;;  %v722_v26 = vshll.u32 %v6840_v50, %v713_v46  ;;  %v725_v29 = vshll.u32 %v6835_v52, %v713_v46 }
 0x1b7   :  { %v863_v6 = vadd.s32 536870912, %v862_v1  ;;  %v717_v22 = vshrl.u32 %v4571_v48, %v714_v59  ;;  %v720_v28 = vshrl.u32 %v6840_v50, %v714_v59  ;;  %v5126_v5 = vpop.eup %4318  ;;  %v723_v24 = vshrl.u32 %v6835_v52, %v714_v59 }
 0x1b8   :  { %v572_v12 = vor.u32 4788187, %v571_v2  ;;  %v726_v30 = vshrl.u32 %v6842_v54, %v714_v59  ;;  %v575_v20 = vcvt.s32.f32 %v568_v62  ;;  %v728_v8 = vshll.u32 %v6842_v54, %v713_v46 }
 0x1b9   :  { %v864_v9 = vshrl.u32 %v863_v6, 30  ;;  %v718_v0 = vor.u32 %v717_v22, %v716_v36  ;;  %v721_v56 = vor.u32 %v720_v28, %v719_v38  ;;  %v724_v13 = vor.u32 %v723_v24, %v722_v26 }
 0x1ba   :  { %v573_v60 = vand.u32 2147483647, %v572_v12  ;;  %v729_v4 = vshrl.u32 %v6832_v61, %v714_v59  ;;  %v727_v35 = vor.u32 %v726_v30, %v725_v29  ;;  %vm731_vm3 = vcmp.lt.s32.totalorder %v5118_v17, 1 }
 0x1bb   :  { %v865_v63 = vshll.u32 %v864_v9, 30  ;;  %v1011_v51 = vand.u32 2139095040, %v4805_v41  ;;  %v715_v46 = vshrl.u32 %v6837_v43, %v714_v59  ;;  %vm734_vm4 = vcmp.lt.s32.totalorder %v5118_v17, 4 }
 0x1bc   :  { %v576_v15 = vmul.f32 %v575_v20, %v573_v60  ;;  %v730_v53 = vor.u32 %v729_v4, %v728_v8  ;;  %4320 = vcosq.f32 %v5112_v40  ;;  %vm804_vm5 = vcmp.lt.s32.totalorder %v4795_v31, 0 }
 0x1bd   :  { %v5144_v39 = vsub.s32 %v862_v1, %v865_v63  ;;  %vm733_vm7 = vcmp.lt.s32.totalorder %v5118_v17, 3  ;;  %v736_v45 = vsel %vm734_vm4, %v724_v13, 2102212464  ;;  %vm732_vm6 = vcmp.lt.s32.totalorder %v5118_v17, 2 }
 0x1be   :  { %v577_v36 = vxor.u32 2147483648, %v576_v15  ;;  %v739_v59 = vsel %vm731_vm3, %v718_v0, %v721_v56  ;;  %v747_v62 = vshll.u32 %v707_v18, 8  ;;  %v740_v38 = vsel %vm734_vm4, %v727_v35, 920167782 }
 0x1bf   :  { %v868_v2 = vsub.s32 0, %v5144_v39  ;;  %v743_v1 = vsel %vm731_vm3, %v721_v56, %v724_v13  ;;  %v1012_v26 = vshrl.u32 %v1011_v51, 23  ;;  %v735_v6 = vsel %vm731_vm3, %v715_v46, %v718_v0 }
 0x1c0   :  { %v737_v22 = vsel %vm733_vm7, %v721_v56, %v736_v45  ;;  %v741_v28 = vsel %vm733_vm7, %v724_v13, %v740_v38  ;;  %v744_v29 = vsel %vm734_vm4, %v730_v53, 1326507024  ;;  %v578_v12 = vsel %vm495_vm12, %v577_v36, %v576_v15 }
 0x1c1   :  { %vm5169_vm8 = vcmp.le.f32.partialorder %v802_v37, 0.7853982  ;;  %v3939_v24 = vmin.u32 %v868_v2, %v5144_v39  ;;  %v742_v30 = vsel %vm732_vm6, %v739_v59, %v741_v28  ;;  %v745_v20 = vsel %vm733_vm7, %v727_v35, %v744_v29 }
 0x1c2   :  { %v888_v0 = vsub.s32 4, %v864_v9  ;;  %v746_v8 = vsel %vm732_vm6, %v743_v1, %v745_v20  ;;  %v5180_v60 = vmul.u32.u64.low %v747_v62, %v742_v30  ;;  %v5181_v56 = vmul.u32.u64.high %v747_v62, %v742_v30, %v5180_v60 }
 0x1c3   :  { %v870_v13 = vclz %v3939_v24  ;;  %v5183_v37 = vmul.u32.u64.low %v747_v62, %v746_v8  ;;  %v5184_v4 = vmul.u32.u64.high %v747_v62, %v746_v8, %v5183_v37  ;;  %v1015_v63 = vand.u32 8388607, %v6831_v16 }
 0x1c4   :  { %v581_v51 = vsel %vm5134_vm2, %v4792_v23, %v578_v12  ;;  %v738_v35 = vsel %vm732_vm6, %v735_v6, %v737_v22  ;;  %v3946_v15 = vadd.s32 4294967169, %v1012_v26  ;;  %v908_v46 = vand.u32 2139095040, %v4810_v47 }
 0x1c5   :  { %4322 = vsinq.f32 %v5112_v40  ;;  %v858_v53 = vadd.s32 %v5081_v55, %v5093_v27  ;;  %v3940_v45 = vadd.s32 4294967294, %v870_v13  ;;  %v6830_v36 = vand.u32 2147483647, %v4810_v47 }
 0x1c6   :  { %v889_v59 = vsel %vm804_vm5, %v888_v0, %v864_v9  ;;  %v757_v2 = vadd.s32 1, %v5181_v56  ;;  %v1018_v38 = vadd.s32 1, %v3946_v15  ;;  %v909_v1 = vshrl.u32 %v908_v46, 23  ;;  %v5201_v17 = vpop.eup %4320 }
 0x1c7   :  { %4324 = vcosq.f32 %v581_v51  ;;  %vm3941_vm9 = vcmp.lt.s32.totalorder %v3940_v45, 0  ;;  %v754_v26 = vmul.u32 %v747_v62, %v738_v35  ;;  %vm756_vm10 = vc.u32 %v5184_v4, %v5180_v60 }
 0x1c8   :  { %v873_v40 = vsel %vm3941_vm9, 0, %v3940_v45  ;;  %v758_v55 = vsel %vm756_vm10, %v757_v2, %v5181_v56  ;;  %v1016_v27 = vor.u32 8388608, %v1015_v63  ;;  %vm1019_vm11 = vcmp.gt.s32.totalorder %v1018_v38, 0 }
 0x1c9   :  { %v874_v6 = vsub.s32 32, %v873_v40  ;;  %v878_v22 = vsub.s32 4294967266, %v873_v40  ;;  %v759_v28 = vadd.s32 %v758_v55, %v754_v26  ;;  %v3942_v9 = vadd.s32 4294967169, %v909_v1 }
 0x1ca   :  { %v5208_v29 = vsel %vm5134_vm2, 0, %v5107_v42  ;;  %4326 = vsinq.f32 %v581_v51  ;;  %v5212_v62 = vsel %vm5169_vm8, 0, %v889_v59  ;;  %v1020_v12 = vsel %vm1019_vm11, %v1018_v38, 0 }
 0x1cb   :  { %v876_v24 = vshrl.u32 %v858_v53, %v874_v6  ;;  %v879_v30 = vadd.s32 127, %v878_v22  ;;  %v760_v20 = vadd.s32 536870912, %v759_v28  ;;  %v5216_v0 = vand.u32 8388607, %v6830_v36 }
 0x1cc   :  { %v875_v8 = vshll.u32 %v5144_v39, %v873_v40  ;;  %v1022_v56 = vand.u32 31, %v1020_v12  ;;  %v5219_v13 = vshll.u32 %v1016_v27, 8  ;;  %v6834_v42 = vand.u32 2147483647, %v4822_v3 }
 0x1cd   :  { %v880_v58 = vshll.u32 %v879_v30, 23  ;;  %v761_v37 = vshrl.u32 %v760_v20, 30  ;;  %v1021_v63 = vshrl.u32 %v1020_v12, 5  ;;  %v5222_v51 = vadd.s32 1, %v3942_v9 }
 0x1ce   :  { %v1023_v35 = vsub.s32 32, %v1022_v56  ;;  %v1025_v15 = vshll.u32 %v6837_v43, %v1022_v56  ;;  %v1028_v46 = vshll.u32 %v4571_v48, %v1022_v56  ;;  %v1031_v53 = vshll.u32 %v6840_v50, %v1022_v56 }
 0x1cf   :  { %v5227_v45 = vpop.eup %4322  ;;  %v877_v39 = vor.u32 %v876_v24, %v875_v8  ;;  %v881_v59 = vor.u32 4788187, %v880_v58  ;;  %v5230_v2 = vadd.s32 %v5180_v60, %v5184_v4  ;;  %v762_v38 = vshll.u32 %v761_v37, 30 }
 0x1d0   :  { %v1026_v1 = vshrl.u32 %v4571_v48, %v1023_v35  ;;  %v1029_v26 = vshrl.u32 %v6840_v50, %v1023_v35  ;;  %v1032_v40 = vshrl.u32 %v6835_v52, %v1023_v35  ;;  %v913_v55 = vor.u32 8388608, %v5216_v0 }
 0x1d1   :  { %v5236_v27 = vpop.eup %4324  ;;  %v882_v6 = vand.u32 2147483647, %v881_v59  ;;  %vm701_vm12 = vcmp.lt.s32.totalorder %v4797_v32, 0  ;;  %v5239_v22 = vsub.s32 %v759_v28, %v762_v38  ;;  %v1034_v9 = vshll.u32 %v6835_v52, %v1022_v56 }
 0x1d2   :  { %vm916_vm13 = vcmp.gt.s32.totalorder %v5222_v51, 0  ;;  %v1027_v60 = vor.u32 %v1026_v1, %v1025_v15  ;;  %v1030_v4 = vor.u32 %v1029_v26, %v1028_v46  ;;  %v1033_v12 = vor.u32 %v1032_v40, %v1031_v53 }
 0x1d3   :  { %vm1040_vm14 = vcmp.lt.s32.totalorder %v1021_v63, 1  ;;  %v884_v24 = vcvt.s32.f32 %v877_v39  ;;  %v765_v30 = vsub.s32 0, %v5239_v22  ;;  %v1035_v20 = vshrl.u32 %v6842_v54, %v1023_v35 }
 0x1d4   :  { %v1037_v0 = vshll.u32 %v6842_v54, %v1022_v56  ;;  %v5246_v8 = vpop.eup %4326  ;;  %vm5250_vm15 = vcmp.le.f32.partialorder %v699_v10, 0.7853982  ;;  %v785_v58 = vsub.s32 4, %v761_v37  ;;  %v1024_v15 = vshrl.u32 %v6837_v43, %v1023_v35 }
 0x1d5   :  { %v1038_v46 = vshrl.u32 %v6832_v61, %v1023_v35  ;;  %vm1043_vm2 = vcmp.lt.s32.totalorder %v1021_v63, 4  ;;  %v885_v53 = vmul.f32 %v884_v24, %v882_v6  ;;  %v3935_v39 = vmin.u32 %v765_v30, %v5239_v22 }
 0x1d6   :  { %v1036_v59 = vor.u32 %v1035_v20, %v1034_v9  ;;  %vm1042_vm3 = vcmp.lt.s32.totalorder %v1021_v63, 3  ;;  %vm1041_vm4 = vcmp.lt.s32.totalorder %v1021_v63, 2  ;;  %v1045_v38 = vsel %vm1043_vm2, %v1033_v12, 2102212464 }
 0x1d7   :  { %v1039_v56 = vor.u32 %v1038_v46, %v1037_v0  ;;  %v1048_v10 = vsel %vm1040_vm14, %v1027_v60, %v1030_v4  ;;  %v767_v1 = vclz %v3935_v39  ;;  %v1052_v40 = vsel %vm1040_vm14, %v1030_v4, %v1033_v12 }
 0x1d8   :  { %v1049_v26 = vsel %vm1043_vm2, %v1036_v59, 920167782  ;;  %v1217_v36 = vand.u32 2139095040, %v4822_v3  ;;  %v1044_v35 = vsel %vm1040_vm14, %v1024_v15, %v1027_v60  ;;  %v1046_v6 = vsel %vm1042_vm3, %v1030_v4, %v1045_v38 }
 0x1d9   :  { %v1050_v9 = vsel %vm1042_vm3, %v1033_v12, %v1049_v26  ;;  %v1053_v24 = vsel %vm1043_vm2, %v1039_v56, 1326507024  ;;  %v886_v30 = vxor.u32 2147483648, %v885_v53  ;;  %v3936_v20 = vadd.s32 4294967294, %v767_v1 }
 0x1da   :  { %v1051_v0 = vsel %vm1041_vm4, %v1048_v10, %v1050_v9  ;;  %v1054_v46 = vsel %vm1042_vm3, %v1036_v59, %v1053_v24  ;;  %v786_v39 = vsel %vm701_vm12, %v785_v58, %v761_v37  ;;  %v1047_v4 = vsel %vm1041_vm4, %v1044_v35, %v1046_v6 }
 0x1db   :  { %v1055_v16 = vsel %vm1041_vm4, %v1052_v40, %v1054_v46  ;;  %v5272_v61 = vmul.u32.u64.low %v5219_v13, %v1051_v0  ;;  %v5273_v60 = vmul.u32.u64.high %v5219_v13, %v1051_v0, %v5272_v61  ;;  %vm3937_vm7 = vcmp.lt.s32.totalorder %v3936_v20, 0 }
 0x1dc   :  { %v5278_v12 = vmul.u32.u64.low %v5219_v13, %v1055_v16  ;;  %v5279_v15 = vmul.u32.u64.high %v5219_v13, %v1055_v16, %v5278_v12  ;;  %v770_v56 = vsel %vm3937_vm7, 0, %v3936_v20  ;;  %v917_v59 = vsel %vm916_vm13, %v5222_v51, 0 }
 0x1dd   :  { %v5284_v37 = vshll.u32 %v913_v55, 8  ;;  %v5288_v58 = vand.u32 8388607, %v6834_v42  ;;  %v887_v38 = vsel %vm804_vm5, %v886_v30, %v885_v53  ;;  %v771_v63 = vsub.s32 32, %v770_v56 }
 0x1de   :  { %v775_v10 = vsub.s32 4294967266, %v770_v56  ;;  %v5294_v16 = vsel %vm5250_vm15, 0, %v786_v39  ;;  %v1063_v1 = vmul.u32 %v5219_v13, %v1047_v4  ;;  %v1066_v26 = vadd.s32 1, %v5273_v60 }
 0x1df   :  { %v919_v51 = vand.u32 31, %v917_v59  ;;  %v1218_v55 = vshrl.u32 %v1217_v36, 23  ;;  %v772_v40 = vshll.u32 %v5239_v22, %v770_v56  ;;  %v773_v35 = vshrl.u32 %v5230_v2, %v771_v63 }
 0x1e0   :  { %v776_v6 = vadd.s32 127, %v775_v10  ;;  %vm1065_vm5 = vc.u32 %v5279_v15, %v5272_v61  ;;  %v918_v46 = vshrl.u32 %v917_v59, 5  ;;  %vm1010_vm6 = vcmp.lt.s32.totalorder %v4805_v41, 0 }
 0x1e1   :  { %v1067_v53 = vsel %vm1065_vm5, %v1066_v26, %v5273_v60  ;;  %v920_v9 = vsub.s32 32, %v919_v51  ;;  %v922_v24 = vshll.u32 %v6837_v43, %v919_v51  ;;  %v925_v30 = vshll.u32 %v4571_v48, %v919_v51 }
 0x1e2   :  { %v774_v13 = vor.u32 %v773_v35, %v772_v40  ;;  %v777_v20 = vshll.u32 %v776_v6, 23  ;;  %v1068_v0 = vadd.s32 %v1067_v53, %v1063_v1  ;;  %v928_v36 = vshll.u32 %v6840_v50, %v919_v51 }
 0x1e3   :  { %v923_v22 = vshrl.u32 %v4571_v48, %v920_v9  ;;  %v926_v2 = vshrl.u32 %v6840_v50, %v920_v9  ;;  %v929_v39 = vshrl.u32 %v6835_v52, %v920_v9  ;;  %v931_v56 = vshll.u32 %v6835_v52, %v919_v51 }
 0x1e4   :  { %v778_v4 = vor.u32 4788187, %v777_v20  ;;  %v781_v12 = vcvt.s32.f32 %v774_v13  ;;  %v1069_v60 = vadd.s32 536870912, %v1068_v0  ;;  %v932_v1 = vshrl.u32 %v6842_v54, %v920_v9 }
 0x1e5   :  { %v924_v63 = vor.u32 %v923_v22, %v922_v24  ;;  %v927_v10 = vor.u32 %v926_v2, %v925_v30  ;;  %v930_v26 = vor.u32 %v929_v39, %v928_v36  ;;  %v934_v35 = vshll.u32 %v6842_v54, %v919_v51 }
 0x1e6   :  { %v779_v40 = vand.u32 2147483647, %v778_v4  ;;  %v1070_v59 = vshrl.u32 %v1069_v60, 30  ;;  %v6874_v6 = vmov 1326507024   ;;  %v890_v13 = vsel %vm5169_vm8, %v4795_v31, %v887_v38 }
 0x1e7   :  { %v935_v53 = vshrl.u32 %v6874_v6, %v920_v9  ;;  %v921_v20 = vshrl.u32 %v6837_v43, %v920_v9  ;;  %v933_v42 = vor.u32 %v932_v1, %v931_v56  ;;  %vm937_vm9 = vcmp.lt.s32.totalorder %v918_v46, 1 }
 0x1e8   :  { %v782_v52 = vmul.f32 %v781_v12, %v779_v40  ;;  %v1071_v24 = vshll.u32 %v1070_v59, 30  ;;  %v3954_v36 = vadd.s32 4294967169, %v1218_v55  ;;  %v6875_v22 = vand.u32 2147483647, %v4805_v41 }
 0x1e9   :  { %v936_v30 = vor.u32 %v935_v53, %v934_v35  ;;  %v1094_v51 = vsub.s32 4, %v1070_v59  ;;  %vm938_vm11 = vcmp.lt.s32.totalorder %v918_v46, 2  ;;  %vm939_vm13 = vcmp.lt.s32.totalorder %v918_v46, 3 }
 0x1ea   :  { %vm5320_vm10 = vcmp.le.f32.partialorder %v6875_v22, 0.7853982  ;;  %vm940_vm14 = vcmp.lt.s32.totalorder %v918_v46, 4  ;;  %v783_v18 = vxor.u32 2147483648, %v782_v52  ;;  %v5324_v38 = vsub.s32 %v1068_v0, %v1071_v24 }
 0x1eb   :  { %v942_v9 = vsel %vm940_vm14, %v930_v26, 2102212464  ;;  %v945_v39 = vsel %vm937_vm9, %v924_v63, %v927_v10  ;;  %v941_v4 = vsel %vm937_vm9, %v921_v20, %v924_v63  ;;  %v946_v12 = vsel %vm940_vm14, %v933_v42, 920167782 }
 0x1ec   :  { %v949_v55 = vsel %vm937_vm9, %v927_v10, %v930_v26  ;;  %v950_v60 = vsel %vm940_vm14, %v936_v30, 1326507024  ;;  %v784_v56 = vsel %vm701_vm12, %v783_v18, %v782_v52  ;;  %v1074_v1 = vsub.s32 0, %v5324_v38 }
 0x1ed   :  { %v943_v40 = vsel %vm939_vm13, %v927_v10, %v942_v9  ;;  %v947_v35 = vsel %vm939_vm13, %v930_v26, %v946_v12  ;;  %4328 = vcosq.f32 %v890_v13  ;;  %v951_v53 = vsel %vm939_vm13, %v933_v42, %v950_v60 }
 0x1ee   :  { %v948_v0 = vsel %vm938_vm11, %v945_v39, %v947_v35  ;;  %v1222_v63 = vor.u32 8388608, %v5288_v58  ;;  %v3947_v20 = vmin.u32 %v1074_v1, %v5324_v38  ;;  %v1095_v24 = vsel %vm1010_vm6, %v1094_v51, %v1070_v59  ;;  %v2364_v59 = vld [vmem:[#allocation4 + $0x8] sm:$0xff] }
 0x1ef   :  { %v952_v52 = vsel %vm938_vm11, %v949_v55, %v951_v53  ;;  %v1224_v30 = vadd.s32 1, %v3954_v36  ;;  %v5344_v10 = vsel %vm5250_vm15, %v4797_v32, %v784_v56  ;;  %v944_v26 = vsel %vm938_vm11, %v941_v4, %v943_v40  ;;  %v2366_v36 = vld [vmem:[#allocation4 + $0x18] sm:$0xff] }
 0x1f0   :  { %v5348_v22 = vmul.u32.u64.low %v5284_v37, %v952_v52  ;;  %v5349_v42 = vmul.u32.u64.high %v5284_v37, %v952_v52, %v5348_v22  ;;  %v1076_v58 = vclz %v3947_v20  ;;  %4330 = vsinq.f32 %v890_v13 }
 0x1f1   :  { %v5352_v18 = vmul.u32.u64.low %v5284_v37, %v948_v0  ;;  %v5353_v9 = vmul.u32.u64.high %v5284_v37, %v948_v0, %v5352_v18  ;;  %vm1225_vm8 = vcmp.gt.s32.totalorder %v1224_v30, 0  ;;  %v1064_v28 = vadd.s32 %v5272_v61, %v5279_v15 }
 0x1f2   :  { %v1226_v51 = vsel %vm1225_vm8, %v1224_v30, 0  ;;  %v5358_v46 = vshll.u32 %v1222_v63, 8  ;;  %v3948_v39 = vadd.s32 4294967294, %v1076_v58  ;;  %v5362_v4 = vsel %vm5320_vm10, 0, %v1095_v24 }
 0x1f3   :  { %6878 = vst [vmem:[#allocation18_spill] sm:$0xff] %v5362_v4  ;;  %v960_v12 = vmul.u32 %v5284_v37, %v944_v26  ;;  %v1228_v55 = vand.u32 31, %v1226_v51  ;;  %4332 = vcosq.f32 %v5344_v10  ;;  %vm962_vm12 = vc.u32 %v5349_v42, %v5352_v18 }
 0x1f4   :  { %v4127_v60 = vpack.c.bf16 %v2366_v36, %v2364_v59  ;;  %vm3949_vm15 = vcmp.lt.s32.totalorder %v3948_v39, 0  ;;  %v963_v61 = vadd.s32 1, %v5353_v9  ;;  %v5370_v15 = vshrl.u32 %v1226_v51, 5 }
 0x1f5   :  { %v1229_v56 = vsub.s32 32, %v1228_v55  ;;  %v1079_v1 = vsel %vm3949_vm15, 0, %v3948_v39  ;;  %v1231_v40 = vshll.u32 %v6837_v43, %v1228_v55  ;;  %v1234_v37 = vshll.u32 %v4571_v48, %v1228_v55 }
 0x1f6   :  { %v1237_v35 = vshll.u32 %v6840_v50, %v1228_v55  ;;  %4128 = vmatprep.subr.bf16.mxu1 %v4127_v60  ;;  %v1080_v0 = vsub.s32 32, %v1079_v1  ;;  %v1084_v53 = vsub.s32 4294967266, %v1079_v1  ;;  %v964_v63 = vsel %vm962_vm12, %v963_v61, %v5353_v9 }
 0x1f7   :  { %v6879_v20 = vmov 2102212464   ;;  %v5377_v52 = vpop.eup %4328  ;;  %v1081_v30 = vshll.u32 %v5324_v38, %v1079_v1  ;;  %v965_v26 = vadd.s32 %v964_v63, %v960_v12  ;;  %v1232_v22 = vshrl.u32 %v4571_v48, %v1229_v56 }
 0x1f8   :  { %v1240_v24 = vshll.u32 %v6879_v20, %v1228_v55  ;;  %v1235_v58 = vshrl.u32 %v6840_v50, %v1229_v56  ;;  %v1082_v59 = vshrl.u32 %v1064_v28, %v1080_v0  ;;  %v1085_v36 = vadd.s32 127, %v1084_v53 }
 0x1f9   :  { %v1238_v51 = vshrl.u32 %v6879_v20, %v1229_v56  ;;  %v1241_v39 = vshrl.u32 %v6842_v54, %v1229_v56  ;;  %v966_v60 = vadd.s32 536870912, %v965_v26  ;;  %v1233_v13 = vor.u32 %v1232_v22, %v1231_v40 }
 0x1fa   :  { %v1243_v9 = vshll.u32 %v6842_v54, %v1228_v55  ;;  %v1114_v61 = vand.u32 2139095040, %v4879_v25  ;;  %v1083_v43 = vor.u32 %v1082_v59, %v1081_v30  ;;  %v1086_v4 = vshll.u32 %v1085_v36, 23  ;;  %v5386_v1 = vpop.eup %4330 }
 0x1fb   :  { %v1236_v38 = vor.u32 %v1235_v58, %v1234_v37  ;;  %v1242_v12 = vor.u32 %v1241_v39, %v1240_v24  ;;  %v967_v63 = vshrl.u32 %v966_v60, 30  ;;  %v1239_v50 = vor.u32 %v1238_v51, %v1237_v35 }
 0x1fc   :  { %v1244_v28 = vshrl.u32 %v6874_v6, %v1229_v56  ;;  %vm1246_vm2 = vcmp.lt.s32.totalorder %v5370_v15, 1  ;;  %v1087_v0 = vor.u32 4788187, %v1086_v4  ;;  %vm907_vm3 = vcmp.lt.s32.totalorder %v4810_v47, 0 }
 0x1fd   :  { %v6880_v40 = vmov 683565275   ;;  %vm1248_vm4 = vcmp.lt.s32.totalorder %v5370_v15, 3  ;;  %vm1249_vm7 = vcmp.lt.s32.totalorder %v5370_v15, 4  ;;  %v5394_v55 = vpop.eup %4332  ;;  %v1090_v37 = vcvt.s32.f32 %v1083_v43 }
 0x1fe   :  { %v1230_v53 = vshrl.u32 %v6880_v40, %v1229_v56  ;;  %v968_v24 = vshll.u32 %v967_v63, 30  ;;  %v1245_v30 = vor.u32 %v1244_v28, %v1243_v9  ;;  %vm1247_vm5 = vcmp.lt.s32.totalorder %v5370_v15, 2  ;;  %v1317_v9 = vld [vmem:[%s6813_s2] sm:$0xff] }
 0x1ff   :  { %v1088_v35 = vand.u32 2147483647, %v1087_v0  ;;  %v1251_v22 = vsel %vm1249_vm7, %v1239_v50, 2102212464  ;;  %v1254_v4 = vsel %vm1246_vm2, %v1233_v13, %v1236_v38  ;;  %v1255_v56 = vsel %vm1249_vm7, %v1242_v12, 920167782 }
 0x200   :  { %v5403_v58 = vsub.s32 %v965_v26, %v968_v24  ;;  %v1256_v59 = vsel %vm1248_vm4, %v1239_v50, %v1255_v56  ;;  %v1115_v43 = vshrl.u32 %v1114_v61, 23  ;;  %v6881_v36 = vand.u32 2147483647, %v4879_v25  ;;  %v2363_v56 = vld [vmem:[#allocation4] sm:$0xff] }
 0x201   :  { %v1091_v39 = vmul.f32 %v1090_v37, %v1088_v35  ;;  %v6882_v60 = vand.u32 2147483647, %v4810_v47  ;;  %v991_v28 = vsub.s32 4, %v967_v63  ;;  %v1250_v0 = vsel %vm1246_vm2, %v1230_v53, %v1233_v13 }
 0x202   :  { %v1118_v51 = vand.u32 8388607, %v6881_v36  ;;  %v1257_v26 = vsel %vm1247_vm5, %v1254_v4, %v1256_v59  ;;  %v971_v24 = vsub.s32 0, %v5403_v58  ;;  %v1252_v61 = vsel %vm1248_vm4, %v1236_v38, %v1251_v22  ;;  %v2365_v36 = vld [vmem:[#allocation4 + $0x10] sm:$0xff] }
 0x203   :  { %vm5411_vm9 = vcmp.le.f32.partialorder %v6882_v60, 0.7853982  ;;  %v1258_v37 = vsel %vm1246_vm2, %v1236_v38, %v1239_v50  ;;  %v1259_v35 = vsel %vm1249_vm7, %v1245_v30, 1326507024  ;;  %v1092_v60 = vxor.u32 2147483648, %v1091_v39 }
 0x204   :  { %v1260_v13 = vsel %vm1248_vm4, %v1242_v12, %v1259_v35  ;;  %v5429_v53 = vmul.u32.u64.low %v5358_v46, %v1257_v26  ;;  %v5430_v4 = vmul.u32.u64.high %v5358_v46, %v1257_v26, %v5429_v53  ;;  %4334 = vsinq.f32 %v5344_v10  ;;  %v2368_v35 = vld [vmem:[#allocation4 + $0x28] sm:$0xf]  ;;  %v1318_v26 = vld [vmem:[%s6813_s2 + $0x8] sm:$0xff]  ;;  %v1320_v10 = vld [vmem:[%s6813_s2 + $0x18] sm:$0xff] }
 0x205   :  { %v3943_v22 = vmin.u32 %v971_v24, %v5403_v58  ;;  %v1261_v50 = vsel %vm1247_vm5, %v1258_v37, %v1260_v13  ;;  %v3950_v38 = vadd.s32 4294967169, %v1115_v43  ;;  %v1093_v30 = vsel %vm1010_vm6, %v1092_v60, %v1091_v39 }
 0x206   :  { %v5440_v59 = vmul.u32.u64.low %v5358_v46, %v1261_v50  ;;  %v5441_v54 = vmul.u32.u64.high %v5358_v46, %v1261_v50, %v5440_v59  ;;  %v4129_v12 = vpack.c.bf16 %v2365_v36, %v2363_v56  ;;  %v992_v43 = vsel %vm907_vm3, %v991_v28, %v967_v63 }
 0x207   :  { %v973_v24 = vclz %v3943_v22  ;;  %v1253_v39 = vsel %vm1247_vm5, %v1250_v0, %v1252_v61  ;;  %v1121_v37 = vadd.s32 1, %v3950_v38  ;;  %v1272_v60 = vadd.s32 1, %v5430_v4  ;;  %v2367_v22 = vld [vmem:[#allocation4 + $0x20] sm:$0xf] }
 0x208   :  { %v1119_v56 = vor.u32 8388608, %v1118_v51  ;;  %4130 = vmatpush1.bf16.msra.mxu1 %v4129_v12  ;;  %vm2400_vm6 = vcmask 1043456   ;;  %v1096_v36 = vsel %vm5320_vm10, %v4805_v41, %v1093_v30  ;;  %v6844_v50 = vmov 0.0  }
 0x209   :  { %v3944_v13 = vadd.s32 4294967294, %v973_v24  ;;  %vm1122_vm11 = vcmp.gt.s32.totalorder %v1121_v37, 0  ;;  %3998 = vmatprep.subr.msk.mxu1 %vm2400_vm6, %v2368_v35  ;;  %2471 = vmatprep.mubr.f32.mxu1 %v6844_v50  ;;  %v4131_v15 = vpack.c.bf16 %v1320_v10, %v1318_v26  ;;  %v961_v63 = vadd.s32 %v5352_v18, %v5349_v42 }
 0x20a   :  { %v1269_v51 = vmul.u32 %v5358_v46, %v1253_v39  ;;  %vm1271_vm13 = vc.u32 %v5441_v54, %v5429_v53  ;;  %v1123_v28 = vsel %vm1122_vm11, %v1121_v37, 0  ;;  %v5466_v2 = vsel %vm5411_vm9, 0, %v992_v43 }
 0x20b   :  { %vm3945_vm14 = vcmp.lt.s32.totalorder %v3944_v13, 0  ;;  %v1273_v0 = vsel %vm1271_vm13, %v1272_v60, %v5430_v4  ;;  %v1125_v61 = vand.u32 31, %v1123_v28  ;;  %4336 = vcosq.f32 %v1096_v36 }
 0x20c   :  { %v976_v38 = vsel %vm3945_vm14, 0, %v3944_v13  ;;  %v1274_v30 = vadd.s32 %v1273_v0, %v1269_v51  ;;  %v5469_v59 = vshll.u32 %v1119_v56, 8  ;;  %3999 = vmatpush1.msk.msra.mxu1 %vm2400_vm6, %v2367_v22  ;;  %v1124_v46 = vshrl.u32 %v1123_v28, 5 }
 0x20d   :  { %v977_v42 = vsub.s32 32, %v976_v38  ;;  %v981_v18 = vsub.s32 4294967266, %v976_v38  ;;  %v1126_v12 = vsub.s32 32, %v1125_v61  ;;  %4132 = vmatprep.subr.bf16.mxu1 %v4131_v15  ;;  %v978_v35 = vshll.u32 %v5403_v58, %v976_v38 }
 0x20e   :  { %v1275_v26 = vadd.s32 536870912, %v1274_v30  ;;  %v1128_v10 = vshll.u32 %v6880_v40, %v1125_v61  ;;  %v1131_v4 = vshll.u32 %v4571_v48, %v1125_v61  ;;  %v5475_v24 = vpop.eup %4334  ;;  %v6885_v60 = vmov 2131351028  }
 0x20f   :  { %v979_v43 = vshrl.u32 %v961_v63, %v977_v42  ;;  %v982_v39 = vadd.s32 127, %v981_v18  ;;  %v1129_v37 = vshrl.u32 %v4571_v48, %v1126_v12  ;;  %v1134_v56 = vshll.u32 %v6885_v60, %v1125_v61 }
 0x210   :  { %v5479_v13 = vshrl.u32 %v1275_v26, 30  ;;  %v1132_v22 = vshrl.u32 %v6885_v60, %v1126_v12  ;;  %v1135_v15 = vshrl.u32 %v6879_v20, %v1126_v12  ;;  %v1137_v58 = vshll.u32 %v6879_v20, %v1125_v61 }
 0x211   :  { %4338 = vsinq.f32 %v1096_v36  ;;  %v980_v51 = vor.u32 %v979_v43, %v978_v35  ;;  %v983_v28 = vshll.u32 %v982_v39, 23  ;;  %v6886_v0 = vmov 920167782  }
 0x212   :  { %v1138_v38 = vshrl.u32 %v6886_v0, %v1126_v12  ;;  %v1277_v63 = vshll.u32 %v5479_v13, 30  ;;  %v1127_v42 = vshrl.u32 %v6880_v40, %v1126_v12  ;;  %v1130_v48 = vor.u32 %v1129_v37, %v1128_v10 }
 0x213   :  { %v1133_v18 = vor.u32 %v1132_v22, %v1131_v4  ;;  %v984_v50 = vor.u32 4788187, %v983_v28  ;;  %v1136_v26 = vor.u32 %v1135_v15, %v1134_v56  ;;  %v1140_v60 = vshll.u32 %v6886_v0, %v1125_v61 }
 0x214   :  { %v1139_v41 = vor.u32 %v1138_v38, %v1137_v58  ;;  %v1270_v31 = vadd.s32 %v5429_v53, %v5441_v54  ;;  %v5490_v20 = vsub.s32 %v1274_v30, %v1277_v63  ;;  %v1141_v36 = vshrl.u32 %v6874_v6, %v1126_v12 }
 0x215   :  { %vm1143_vm10 = vcmp.lt.s32.totalorder %v1124_v46, 1  ;;  %v985_v35 = vand.u32 2147483647, %v984_v50  ;;  %v987_v43 = vcvt.s32.f32 %v980_v51  ;;  %vm1144_vm8 = vcmp.lt.s32.totalorder %v1124_v46, 2  ;;  %v5493_v40 = vpop.eup %4336 }
 0x216   :  { %vm1145_vm12 = vcmp.lt.s32.totalorder %v1124_v46, 3  ;;  %v1280_v10 = vsub.s32 0, %v5490_v20  ;;  %v1142_v4 = vor.u32 %v1141_v36, %v1140_v60  ;;  %vm1146_vm15 = vcmp.lt.s32.totalorder %v1124_v46, 4 }
 0x217   :  { %v1147_v61 = vsel %vm1143_vm10, %v1127_v42, %v1130_v48  ;;  %v988_v39 = vmul.f32 %v987_v43, %v985_v35  ;;  %v1148_v37 = vsel %vm1146_vm15, %v1136_v26, 2102212464  ;;  %v1151_v54 = vsel %vm1143_vm10, %v1130_v48, %v1133_v18 }
 0x218   :  { %v1152_v53 = vsel %vm1146_vm15, %v1139_v41, 920167782  ;;  %v3955_v6 = vmin.u32 %v1280_v10, %v5490_v20  ;;  %v1149_v50 = vsel %vm1145_vm12, %v1133_v18, %v1148_v37  ;;  %v1155_v12 = vsel %vm1143_vm10, %v1133_v18, %v1136_v26  ;;  %v1319_v10 = vld [vmem:[%s6813_s2 + $0x10] sm:$0xff] }
 0x219   :  { %v1153_v30 = vsel %vm1145_vm12, %v1136_v26, %v1152_v53  ;;  %v989_v56 = vxor.u32 2147483648, %v988_v39  ;;  %v1156_v15 = vsel %vm1146_vm15, %v1142_v4, 1326507024  ;;  %vm379_vm2 = vweird.f32 %v4782_v14 }
 0x21a   :  { %v1154_v22 = vsel %vm1144_vm8, %v1151_v54, %v1153_v30  ;;  %vm382_vm4 = vcmp.eq.s32.totalorder %v5030_v49, 0  ;;  %v1282_v58 = vclz %v3955_v6  ;;  %v1157_v51 = vsel %vm1145_vm12, %v1139_v41, %v1156_v15 }
 0x21b   :  { %v5507_v28 = vmul.u32.u64.low %v5469_v59, %v1154_v22  ;;  %v5508_v0 = vmul.u32.u64.high %v5469_v59, %v1154_v22, %v5507_v28  ;;  %v5510_v38 = vpop.eup %4338  ;;  %v990_v63 = vsel %vm907_vm3, %v989_v56, %v988_v39  ;;  %v1150_v42 = vsel %vm1144_vm8, %v1147_v61, %v1149_v50 }
 0x21c   :  { %v1158_v48 = vsel %vm1144_vm8, %v1155_v12, %v1157_v51  ;;  %v383_v18 = vxor.u32 2147483648, %v5126_v5  ;;  %v993_v26 = vsel %vm5411_vm9, %v4810_v47, %v990_v63  ;;  %vm1216_vm7 = vcmp.lt.s32.totalorder %v4822_v3, 0 }
 0x21d   :  { %v3956_v41 = vadd.s32 4294967294, %v1282_v58  ;;  %v5522_v60 = vmul.u32.u64.low %v5469_v59, %v1158_v48  ;;  %v5523_v36 = vmul.u32.u64.high %v5469_v59, %v1158_v48, %v5522_v60  ;;  %v1300_v35 = vsub.s32 4, %v5479_v13 }
 0x21e   :  { %vm381_vm3 = vcmp.lt.s32.totalorder %v5030_v49, 2  ;;  %v384_v46 = vsel %vm382_vm4, %v5099_v33, %v383_v18  ;;  %v386_v43 = vxor.u32 2147483648, %v5099_v33  ;;  %v1169_v4 = vadd.s32 1, %v5508_v0 }
 0x21f   :  { %vm3957_vm5 = vcmp.lt.s32.totalorder %v3956_v41, 0  ;;  %vm385_vm9 = vcmp.eq.s32.totalorder %v5030_v49, 2  ;;  %v1416_v61 = vadd.s32 3, %v5012_v34  ;;  %4340 = vcosq.f32 %v993_v26 }
 0x220   :  { %v1285_v39 = vsel %vm3957_vm5, 0, %v3956_v41  ;;  %v1166_v37 = vmul.u32 %v5469_v59, %v1150_v42  ;;  %v387_v54 = vsel %vm385_vm9, %v386_v43, %v5126_v5  ;;  %vm6853_vm11 = vcmask 162816  }
 0x221   :  { %v1286_v53 = vsub.s32 32, %v1285_v39  ;;  %v1290_v6 = vsub.s32 4294967266, %v1285_v39  ;;  %v4133_v50 = vpack.c.bf16 %v1319_v10, %v1317_v9  ;;  %v1287_v30 = vshll.u32 %v5490_v20, %v1285_v39 }
 0x222   :  { %vm1168_vm13 = vc.u32 %v5523_v36, %v5507_v28  ;;  %v388_v12 = vsel %vm381_vm3, %v384_v46, %v387_v54  ;;  %v1417_v56 = vand.u32 3, %v1416_v61  ;;  %4342 = vsinq.f32 %v993_v26 }
 0x223   :  { %v1288_v22 = vshrl.u32 %v1270_v31, %v1286_v53  ;;  %v1291_v34 = vadd.s32 127, %v1290_v6  ;;  %v1170_v15 = vsel %vm1168_vm13, %v1169_v4, %v5508_v0  ;;  %v5549_v59 = vsel %vm379_vm2, nan, %v388_v12  ;;  %v2694_v6 = vld [vmem:[#allocation6 + $0x8] sm:$0x1f] }
 0x224   :  { %v1171_v58 = vadd.s32 %v1170_v15, %v1166_v37  ;;  %vm1418_vm14 = vcmp.lt.s32.totalorder %v1417_v56, 2  ;;  %vm1419_vm10 = vcmp.eq.s32.totalorder %v1417_v56, 0  ;;  %vm1422_vm8 = vcmp.eq.s32.totalorder %v1417_v56, 2  ;;  %v1321_v37 = vld [vmem:[%s6813_s2 + $0x20] sm:$0xf] }
 0x225   :  { %v1289_v51 = vor.u32 %v1288_v22, %v1287_v30  ;;  %v1292_v20 = vshll.u32 %v1291_v34, 23  ;;  %v1421_v63 = vsel %vm1419_vm10, %v5099_v33, %v383_v18  ;;  %v1424_v49 = vsel %vm1422_vm8, %v386_v43, %v5126_v5 }
 0x226   :  { %v5556_v31 = vsel %vm1216_vm7, %v1300_v35, %v5479_v13  ;;  %v1172_v0 = vadd.s32 536870912, %v1171_v58  ;;  %v1425_v42 = vsel %vm1418_vm14, %v1421_v63, %v1424_v49  ;;  %v6887_v48 = vand.u32 2147483647, %v4822_v3  ;;  %v1322_v13 = vld [vmem:[%s6813_s2 + $0x28] sm:$0xf] }
 0x227   :  { %v1293_v60 = vor.u32 4788187, %v1292_v20  ;;  %v5565_v46 = vadd.s32 %v5507_v28, %v5523_v36  ;;  %v1426_v33 = vsel %vm379_vm2, nan, %v1425_v42  ;;  %v1520_v5 = vadd.s32 3, %v4956_v44 }
 0x228   :  { %vm5560_vm12 = vcmp.le.f32.partialorder %v6887_v48, 0.7853982  ;;  %vm1113_vm15 = vcmp.lt.s32.totalorder %v4879_v25, 0  ;;  %v1173_v18 = vshrl.u32 %v1172_v0, 30  ;;  %4000 = vmatmul.mubr.msk.f32.vlgmr.msra.gmra.mrb[0].mxu1 %vm6853_vm11, %v1426_v33  ;;  %vm482_vm4 = vweird.f32 %v4778_v11 }
 0x229   :  { %v486_v26 = vxor.u32 2147483648, %v5068_v19  ;;  %v489_v28 = vxor.u32 2147483648, %v5065_v7  ;;  %v1294_v36 = vand.u32 2147483647, %v1293_v60  ;;  %v1296_v14 = vcvt.s32.f32 %v1289_v51  ;;  %4134 = vmatpush1.bf16.msra.mxu1 %v4133_v50  ;;  %v5580_v10 = vpop.eup %4340 }
 0x22a   :  { %v6890_v35 = vmov 0.0   ;;  %v1521_v43 = vand.u32 3, %v1520_v5  ;;  %v1624_v9 = vadd.s32 3, %v5208_v29  ;;  %v1174_v4 = vshll.u32 %v1173_v18, 30  ;;  %4010 = vmatprep.subr.msk.mxu1 %vm2400_vm6, %v1322_v13 }
 0x22b   :  { %2477 = vmatprep.mubr.f32.mxu1 %v6890_v35  ;;  %vm585_vm2 = vweird.f32 %v4792_v23  ;;  %v589_v61 = vxor.u32 2147483648, %v5246_v8  ;;  %v592_v39 = vxor.u32 2147483648, %v5236_v27  ;;  %v1297_v54 = vmul.f32 %v1296_v14, %v1294_v36 }
 0x22c   :  { %v1197_v53 = vsub.s32 4, %v1173_v18  ;;  %vm1523_vm3 = vcmp.eq.s32.totalorder %v1521_v43, 0  ;;  %vm1526_vm5 = vcmp.eq.s32.totalorder %v1521_v43, 2  ;;  %v5589_v50 = vsub.s32 %v1171_v58, %v1174_v4  ;;  %v5608_v0 = vpop.eup %4342 }
 0x22d   :  { %vm1522_vm9 = vcmp.lt.s32.totalorder %v1521_v43, 2  ;;  %v1525_v30 = vsel %vm1523_vm3, %v5065_v7, %v486_v26  ;;  %v1528_v12 = vsel %vm1526_vm5, %v489_v28, %v5068_v19  ;;  %v1298_v56 = vxor.u32 2147483648, %v1297_v54  ;;  %4011 = vmatpush1.msk.msra.mxu1 %vm2400_vm6, %v1321_v37 }
 0x22e   :  { %v1529_v22 = vsel %vm1522_vm9, %v1525_v30, %v1528_v12  ;;  %v1625_v34 = vand.u32 3, %v1624_v9  ;;  %v692_v15 = vxor.u32 2147483648, %v5227_v45  ;;  %v1177_v51 = vsub.s32 0, %v5589_v50  ;;  %4022 = vmatprep.subr.msk.mxu1 %vm6851_vm0, %v2694_v6 }
 0x22f   :  { %v1530_v58 = vsel %vm482_vm4, nan, %v1529_v22  ;;  %v695_v20 = vxor.u32 2147483648, %v5201_v17  ;;  %v1728_v63 = vadd.s32 3, %v5063_v57  ;;  %v1299_v49 = vsel %vm1216_vm7, %v1298_v56, %v1297_v54 }
 0x230   :  { %4001 = vmatmul.mubr.msk.f32.gmra.mrb[2].mxu1 %vm6853_vm11, %v1530_v58  ;;  %vm1626_vm13 = vcmp.lt.s32.totalorder %v1625_v34, 2  ;;  %vm1627_vm14 = vcmp.eq.s32.totalorder %v1625_v34, 0  ;;  %vm1630_vm10 = vcmp.eq.s32.totalorder %v1625_v34, 2  ;;  %v1302_v42 = vsel %vm5560_vm12, %v4822_v3, %v1299_v49 }
 0x231   :  { %v3951_v48 = vmin.u32 %v1177_v51, %v5589_v50  ;;  %2483 = vmatprep.mubr.f32.mxu1 %v6890_v35  ;;  %v1629_v60 = vsel %vm1627_vm14, %v5236_v27, %v589_v61  ;;  %v1632_v33 = vsel %vm1630_vm10, %v592_v39, %v5246_v8  ;;  %v1198_v5 = vsel %vm1113_vm15, %v1197_v53, %v1173_v18 }
 0x232   :  { %v1633_v13 = vsel %vm1626_vm13, %v1629_v60, %v1632_v33  ;;  %vm688_vm6 = vweird.f32 %v4790_v21  ;;  %v1729_v36 = vand.u32 3, %v1728_v63  ;;  %4344 = vcosq.f32 %v1302_v42 }
 0x233   :  { %v1179_v14 = vclz %v3951_v48  ;;  %v1634_v43 = vsel %vm585_vm2, nan, %v1633_v13  ;;  %vm791_vm7 = vweird.f32 %v4797_v32  ;;  %v795_v9 = vxor.u32 2147483648, %v5475_v24 }
 0x234   :  { %4346 = vsinq.f32 %v1302_v42  ;;  %4002 = vmatmul.mubr.msk.f32.gmra.mrb[4].mxu1 %vm6853_vm11, %v1634_v43  ;;  %vm1731_vm8 = vcmp.eq.s32.totalorder %v1729_v36, 0  ;;  %vm1734_vm3 = vcmp.eq.s32.totalorder %v1729_v36, 2  ;;  %v1832_v18 = vadd.s32 3, %v5294_v16 }
 0x235   :  { %v6891_v4 = vand.u32 2147483647, %v4879_v25  ;;  %v3952_v54 = vadd.s32 4294967294, %v1179_v14  ;;  %2489 = vmatprep.mubr.f32.mxu1 %v6890_v35  ;;  %vm1730_vm9 = vcmp.lt.s32.totalorder %v1729_v36, 2  ;;  %v1733_v53 = vsel %vm1731_vm8, %v5201_v17, %v692_v15 }
 0x236   :  { %v1736_v6 = vsel %vm1734_vm3, %v695_v20, %v5227_v45  ;;  %v798_v12 = vxor.u32 2147483648, %v5394_v55  ;;  %v1833_v56 = vand.u32 3, %v1832_v18  ;;  %v898_v22 = vxor.u32 2147483648, %v5386_v1 }
 0x237   :  { %vm5632_vm5 = vcmp.le.f32.partialorder %v6891_v4, 0.7853982  ;;  %v1737_v30 = vsel %vm1730_vm9, %v1733_v53, %v1736_v6  ;;  %vm3953_vm13 = vcmp.lt.s32.totalorder %v3952_v54, 0  ;;  %v901_v51 = vxor.u32 2147483648, %v5377_v52 }
 0x238   :  { %v1738_v34 = vsel %vm688_vm6, nan, %v1737_v30  ;;  %v1936_v58 = vadd.s32 3, %v5212_v62  ;;  %v1182_v63 = vsel %vm3953_vm13, 0, %v3952_v54  ;;  %vm1834_vm14 = vcmp.lt.s32.totalorder %v1833_v56, 2 }
 0x239   :  { %4003 = vmatmul.mubr.msk.f32.gmra.mrb[6].mxu1 %vm6853_vm11, %v1738_v34  ;;  %vm1835_vm10 = vcmp.eq.s32.totalorder %v1833_v56, 0  ;;  %vm1838_vm8 = vcmp.eq.s32.totalorder %v1833_v56, 2  ;;  %v1183_v49 = vsub.s32 32, %v1182_v63  ;;  %v1184_v42 = vshll.u32 %v5589_v50, %v1182_v63 }
 0x23a   :  { %v1187_v48 = vsub.s32 4294967266, %v1182_v63  ;;  %2495 = vmatprep.mubr.f32.mxu1 %v6890_v35  ;;  %v1837_v60 = vsel %vm1835_vm10, %v5394_v55, %v795_v9  ;;  %v1840_v33 = vsel %vm1838_vm8, %v798_v12, %v5475_v24  ;;  %v1937_v13 = vand.u32 3, %v1936_v58  ;;  %v6894_v63 = vld [vmem:[#allocation16_spill] sm:$0xff] }
 0x23b   :  { %v1001_v36 = vxor.u32 2147483648, %v5608_v0  ;;  %v1004_v14 = vxor.u32 2147483648, %v5580_v10  ;;  %v1185_v43 = vshrl.u32 %v5565_v46, %v1183_v49  ;;  %v1841_v50 = vsel %vm1834_vm14, %v1837_v60, %v1840_v33 }
 0x23c   :  { %v1188_v18 = vadd.s32 127, %v1187_v48  ;;  %v2040_v4 = vadd.s32 3, %v5466_v2  ;;  %v1842_v54 = vsel %vm791_vm7, nan, %v1841_v50  ;;  %vm1938_vm3 = vcmp.lt.s32.totalorder %v1937_v13, 2  ;;  %v5664_v53 = vpop.eup %4344 }
 0x23d   :  { %vm1939_vm9 = vcmp.eq.s32.totalorder %v1937_v13, 0  ;;  %vm1942_vm13 = vcmp.eq.s32.totalorder %v1937_v13, 2  ;;  %v1186_v6 = vor.u32 %v1185_v43, %v1184_v42  ;;  %4004 = vmatmul.mubr.msk.f32.gmra.mrb[8].mxu1 %vm6853_vm11, %v1842_v54  ;;  %v5677_v58 = vsel %vm5632_vm5, 0, %v1198_v5 }
 0x23e   :  { %v1189_v30 = vshll.u32 %v1188_v18, 23  ;;  %v1941_v46 = vsel %vm1939_vm9, %v5377_v52, %v898_v22  ;;  %v1944_v56 = vsel %vm1942_vm13, %v901_v51, %v5386_v1  ;;  %v5673_v34 = vpop.eup %4346  ;;  %2501 = vmatprep.mubr.f32.mxu1 %v6890_v35  ;;  %vm894_vm14 = vweird.f32 %v6894_v63  ;;  %v6895_v18 = vld [vmem:[#allocation18_spill] sm:$0xff] }
 0x23f   :  { %v1945_v49 = vsel %vm1938_vm3, %v1941_v46, %v1944_v56  ;;  %v2041_v42 = vand.u32 3, %v2040_v4  ;;  %v1193_v60 = vcvt.s32.f32 %v1186_v6  ;;  %v1104_v13 = vxor.u32 2147483648, %v5510_v38 }
 0x240   :  { %v1190_v48 = vor.u32 4788187, %v1189_v30  ;;  %v1946_v33 = vsel %vm894_vm14, nan, %v1945_v49  ;;  %v1107_v43 = vxor.u32 2147483648, %v5493_v40  ;;  %v2144_v5 = vadd.s32 3, %v6895_v18 }
 0x241   :  { %vm2043_vm10 = vcmp.eq.s32.totalorder %v2041_v42, 0  ;;  %vm2046_vm8 = vcmp.eq.s32.totalorder %v2041_v42, 2  ;;  %4005 = vmatmul.mubr.msk.f32.gmra.mrb[10].mxu1 %vm6853_vm11, %v1946_v33  ;;  %vm2042_vm9 = vcmp.lt.s32.totalorder %v2041_v42, 2  ;;  %v5696_v6 = vsel %vm5560_vm12, 0, %v5556_v31 }
 0x242   :  { %v1191_v50 = vand.u32 2147483647, %v1190_v48  ;;  %v2045_v4 = vsel %vm2043_vm10, %v5580_v10, %v1001_v36  ;;  %v2048_v54 = vsel %vm2046_vm8, %v1004_v14, %v5608_v0  ;;  %2507 = vmatprep.mubr.f32.mxu1 %v6890_v35  ;;  %v2145_v46 = vand.u32 3, %v2144_v5 }
 0x243   :  { %v2049_v30 = vsel %vm2042_vm9, %v2045_v4, %v2048_v54  ;;  %vm6854_vm3 = vweird.f32 %v4810_v47  ;;  %v2248_v49 = vadd.s32 3, %v5677_v58  ;;  %v483_v54 = vand.u32 3, %v4956_v44 }
 0x244   :  { %v1194_v56 = vmul.f32 %v1193_v60, %v1191_v50  ;;  %v2050_v42 = vsel %vm6854_vm3, nan, %v2049_v30  ;;  %vm2146_vm13 = vcmp.lt.s32.totalorder %v2145_v46, 2  ;;  %vm2147_vm10 = vcmp.eq.s32.totalorder %v2145_v46, 0  ;;  %v6896_v50 = vld [vmem:[#allocation17_spill] sm:$0xff] }
 0x245   :  { %vm2150_vm8 = vcmp.eq.s32.totalorder %v2145_v46, 2  ;;  %4006 = vmatmul.mubr.msk.f32.gmra.mrb[12].mxu1 %vm6853_vm11, %v2050_v42  ;;  %v2149_v31 = vsel %vm2147_vm10, %v5493_v40, %v1104_v13  ;;  %v2352_v60 = vadd.s32 3, %v5696_v6  ;;  %vm6852_vm12 = vweird.f32 %v6896_v50 }
 0x246   :  { %v1195_v48 = vxor.u32 2147483648, %v1194_v56  ;;  %v2152_v41 = vsel %vm2150_vm8, %v1107_v43, %v5510_v38  ;;  %2513 = vmatprep.mubr.f32.mxu1 %v6890_v35  ;;  %v586_v42 = vand.u32 3, %v5208_v29  ;;  %v1310_v44 = vxor.u32 2147483648, %v5673_v34 }
 0x247   :  { %v2153_v33 = vsel %vm2146_vm13, %v2149_v31, %v2152_v41  ;;  %v5715_v4 = vand.u32 3, %v2352_v60  ;;  %v5725_v31 = vand.u32 3, %v2248_v49  ;;  %v1313_v37 = vxor.u32 2147483648, %v5664_v53 }
 0x248   :  { %v1196_v5 = vsel %vm1113_vm15, %v1195_v48, %v1194_v56  ;;  %v2154_v46 = vsel %vm6852_vm12, nan, %v2153_v33  ;;  %v689_v56 = vand.u32 3, %v5063_v57  ;;  %v792_v48 = vand.u32 3, %v5294_v16  ;;  %v2881_v33 = vld [vmem:[%s6817_s6 + $0x18] sm:$0xff] }
 0x249   :  { %v1199_v30 = vsel %vm5632_vm5, %v4879_v25, %v1196_v5  ;;  %4007 = vmatmul.mubr.msk.f32.gmra.mrb[14].mxu1 %vm6853_vm11, %v2154_v46  ;;  %vm2355_vm15 = vcmp.eq.s32.totalorder %v5715_v4, 0  ;;  %vm484_vm5 = vcmp.lt.s32.totalorder %v483_v54, 2  ;;  %vm485_vm9 = vcmp.eq.s32.totalorder %v483_v54, 0  ;;  %v2878_v5 = vld [vmem:[%s6817_s6] sm:$0xff] }
 0x24a   :  { %4348 = vcosq.f32 %v1199_v30  ;;  %2519 = vmatprep.mubr.f32.mxu1 %v6890_v35  ;;  %vm488_vm13 = vcmp.eq.s32.totalorder %v483_v54, 2  ;;  %v487_v29 = vsel %vm485_vm9, %v5065_v7, %v486_v26  ;;  %vm587_vm10 = vcmp.lt.s32.totalorder %v586_v42, 2  ;;  %v2880_v54 = vld [vmem:[%s6817_s6 + $0x10] sm:$0xff] }
 0x24b   :  { %4350 = vsinq.f32 %v1199_v30  ;;  %v490_v57 = vsel %vm488_vm13, %v489_v28, %v5068_v19  ;;  %vm588_vm8 = vcmp.eq.s32.totalorder %v586_v42, 0  ;;  %vm2254_vm1 = vcmp.eq.s32.totalorder %v5725_v31, 2 }
 0x24c   :  { %v491_v49 = vsel %vm484_vm5, %v487_v29, %v490_v57  ;;  %v590_v16 = vsel %vm588_vm8, %v5236_v27, %v589_v61  ;;  %vm591_vm0 = vcmp.eq.s32.totalorder %v586_v42, 2  ;;  %vm690_vm12 = vcmp.lt.s32.totalorder %v689_v56, 2  ;;  %v2883_v42 = vld [vmem:[%s6817_s6 + $0x28] sm:$0xff]  ;;  %v2889_v57 = vld [vmem:[%s6817_s6 + $0x58] sm:$0xff] }
 0x24d   :  { %vm2251_vm11 = vcmp.eq.s32.totalorder %v5725_v31, 0  ;;  %v5747_v26 = vsel %vm482_vm4, nan, %v491_v49  ;;  %v593_v7 = vsel %vm591_vm0, %v592_v39, %v5246_v8  ;;  %vm691_vm9 = vcmp.eq.s32.totalorder %v689_v56, 0  ;;  %v2887_v29 = vld [vmem:[%s6817_s6 + $0x48] sm:$0xff] }
 0x24e   :  { %vm694_vm5 = vcmp.eq.s32.totalorder %v689_v56, 2  ;;  %vm2250_vm13 = vcmp.lt.s32.totalorder %v5725_v31, 2  ;;  %v594_v19 = vsel %vm587_vm10, %v590_v16, %v593_v7  ;;  %v693_v28 = vsel %vm691_vm9, %v5201_v17, %v692_v15  ;;  %v2885_v31 = vld [vmem:[%s6817_s6 + $0x38] sm:$0xff]  ;;  %v2884_v56 = vld [vmem:[%s6817_s6 + $0x30] sm:$0xff]  ;;  %v2886_v16 = vld [vmem:[%s6817_s6 + $0x40] sm:$0xff] }
 0x24f   :  { %v696_v61 = vsel %vm694_vm5, %v695_v20, %v5227_v45  ;;  %vm793_vm8 = vcmp.lt.s32.totalorder %v792_v48, 2  ;;  %vm1203_vm4 = vweird.f32 %v4879_v25  ;;  %v5762_v11 = vsel %vm585_vm2, nan, %v594_v19  ;;  %v2888_v7 = vld [vmem:[%s6817_s6 + $0x50] sm:$0xff]  ;;  %v2693_v19 = vld [vmem:[#allocation6] sm:$0x1f]  ;;  %v4413_v25 = vld [vmem:[%s6859_s27 + $0x8] sm:$0xff] }
 0x250   :  { %v697_v27 = vsel %vm690_vm12, %v693_v28, %v696_v61  ;;  %vm794_vm0 = vcmp.eq.s32.totalorder %v792_v48, 0  ;;  %vm797_vm3 = vcmp.eq.s32.totalorder %v792_v48, 2  ;;  %v895_v45 = vand.u32 3, %v5212_v62  ;;  %v2891_v61 = vld [vmem:[%s6817_s6 + $0x68] sm:$0xff] }
 0x251   :  { %v5766_v8 = vsel %vm688_vm6, nan, %v697_v27  ;;  %v796_v39 = vsel %vm794_vm0, %v5394_v55, %v795_v9  ;;  %v799_v17 = vsel %vm797_vm3, %v798_v12, %v5475_v24  ;;  %v2357_v23 = vsel %vm2355_vm15, %v5664_v53, %v1310_v44  ;;  %v2893_v27 = vld [vmem:[%s6817_s6 + $0x78] sm:$0xff] }
 0x252   :  { %v800_v15 = vsel %vm793_vm8, %v796_v39, %v799_v17  ;;  %v998_v21 = vand.u32 3, %v5466_v2  ;;  %v1101_v20 = vand.u32 3, %v6895_v18  ;;  %vm896_vm2 = vcmp.lt.s32.totalorder %v895_v45, 2 }
 0x253   :  { %v5786_v9 = vsel %vm791_vm7, nan, %v800_v15  ;;  %vm897_vm6 = vcmp.eq.s32.totalorder %v895_v45, 0  ;;  %vm900_vm3 = vcmp.eq.s32.totalorder %v895_v45, 2  ;;  %vm6898_vm10 = vweird.f32 %v4810_v47  ;;  %v2890_v45 = vld [vmem:[%s6817_s6 + $0x60] sm:$0xff]  ;;  %v2897_v15 = vld [vmem:[%s6817_s6 + $0x98] sm:$0xff] }
 0x254   :  { %v5782_v41 = vpop.eup %4348  ;;  %v899_v24 = vsel %vm897_vm6, %v5377_v52, %v898_v22  ;;  %v902_v2 = vsel %vm900_vm3, %v901_v51, %v5386_v1  ;;  %vm999_vm12 = vcmp.lt.s32.totalorder %v998_v21, 2  ;;  %vm1000_vm7 = vcmp.eq.s32.totalorder %v998_v21, 0 }
 0x255   :  { %v5788_v62 = vpop.eup %4350  ;;  %v1210_v55 = vxor.u32 2147483648, %v5782_v41  ;;  %v903_v12 = vsel %vm896_vm2, %v899_v24, %v902_v2  ;;  %vm1003_vm15 = vcmp.eq.s32.totalorder %v998_v21, 2  ;;  %v1002_v52 = vsel %vm1000_vm7, %v5580_v10, %v1001_v36  ;;  %v2879_v36 = vld [vmem:[%s6817_s6 + $0x8] sm:$0xff]  ;;  %v2894_v24 = vld [vmem:[%s6817_s6 + $0x80] sm:$0xff]  ;;  %v2896_v2 = vld [vmem:[%s6817_s6 + $0x90] sm:$0xff] }
 0x256   :  { %v1207_v32 = vxor.u32 2147483648, %v5788_v62  ;;  %v5805_v60 = vsel %vm894_vm14, nan, %v903_v12  ;;  %v1005_v1 = vsel %vm1003_vm15, %v1004_v14, %v5608_v0  ;;  %vm1103_vm14 = vcmp.eq.s32.totalorder %v1101_v20, 0  ;;  %v2901_v12 = vld [vmem:[%s6817_s6 + $0xb8] sm:$0xff] }
 0x257   :  { %v2256_v18 = vsel %vm2254_vm1, %v1210_v55, %v5788_v62  ;;  %vm6897_vm1 = vcmp.eq.s32.totalorder %v5715_v4, 2  ;;  %v1006_v63 = vsel %vm999_vm12, %v1002_v52, %v1005_v1  ;;  %v1105_v14 = vsel %vm1103_vm14, %v5493_v40, %v1104_v13  ;;  %v2898_v1 = vld [vmem:[%s6817_s6 + $0xa0] sm:$0xff] }
 0x258   :  { %v2253_v22 = vsel %vm2251_vm11, %v5782_v41, %v1207_v32  ;;  %v2360_v51 = vsel %vm6897_vm1, %v1313_v37, %v5673_v34  ;;  %v5830_v0 = vsel %vm6898_vm10, nan, %v1006_v63  ;;  %vm1106_vm11 = vcmp.eq.s32.totalorder %v1101_v20, 2 }
 0x259   :  { %v2257_v10 = vsel %vm2250_vm13, %v2253_v22, %v2256_v18  ;;  %vm2354_vm9 = vcmp.lt.s32.totalorder %v5715_v4, 2  ;;  %vm1102_vm5 = vcmp.lt.s32.totalorder %v1101_v20, 2  ;;  %v1108_v13 = vsel %vm1106_vm11, %v1107_v43, %v5510_v38  ;;  %v2882_v43 = vld [vmem:[%s6817_s6 + $0x20] sm:$0xff]  ;;  %v2900_v22 = vld [vmem:[%s6817_s6 + $0xb0] sm:$0xff] }
 0x25a   :  { %v2258_v47 = vsel %vm1203_vm4, nan, %v2257_v10  ;;  %vm6899_vm13 = vcmask 162816   ;;  %v2361_v30 = vsel %vm2354_vm9, %v2357_v23, %v2360_v51  ;;  %v1109_v46 = vsel %vm1102_vm5, %v1105_v14, %v1108_v13  ;;  %v2892_v23 = vld [vmem:[%s6817_s6 + $0x70] sm:$0xff]  ;;  %v2905_v51 = vld [vmem:[%s6817_s6 + $0xd8] sm:$0xff]  ;;  %v2902_v10 = vld [vmem:[%s6817_s6 + $0xc0] sm:$0xff] }
 0x25b   :  { %4008 = vmatmul.mubr.msk.f32.gmra.mrb[16].mxu1 %vm6899_vm13, %v2258_v47  ;;  %vm6900_vm8 = vweird.f32 %v6896_v50  ;;  %v5862_v40 = vpack.c.bf16 %v2881_v33, %v2879_v36  ;;  %v5864_v38 = vpack.c.bf16 %v2880_v54, %v2878_v5  ;;  %vm1306_vm0 = vweird.f32 %v4822_v3  ;;  %vm6901_vm2 = vmmov %vm6899_vm13  ;;  %v2904_v14 = vld [vmem:[%s6817_s6 + $0xd0] sm:$0xff]  ;;  %v2909_v33 = vld [vmem:[%s6817_s6 + $0xf8] sm:$0xff] }
 0x25c   :  { %2525 = vmatprep.mubr.f32.mxu1 %v6890_v35  ;;  %v5860_v4 = vsel %vm6900_vm8, nan, %v1109_v46  ;;  %v2362_v48 = vsel %vm1306_vm0, nan, %v2361_v30  ;;  %v5876_v50 = vpack.c.bf16 %v2885_v31, %v2883_v42  ;;  %v5886_v49 = vpack.c.bf16 %v2884_v56, %v2882_v43  ;;  %vm6902_vm6 = vmmov %vm6901_vm2  ;;  %v2906_v47 = vld [vmem:[%s6817_s6 + $0xe0] sm:$0xff]  ;;  %v2908_v13 = vld [vmem:[%s6817_s6 + $0xf0] sm:$0xff] }
 0x25d   :  { %4136 = vmatprep.subr.bf16.mxu0 %v5862_v40  ;;  %v5896_v28 = vpack.c.bf16 %v2889_v57, %v2887_v29  ;;  %v5907_v39 = vpack.c.bf16 %v2888_v7, %v2886_v16  ;;  %vm6903_vm3 = vcmask 1044480   ;;  %v5911_v17 = vpack.c.bf16 %v2893_v27, %v2891_v61  ;;  %vm6904_vm12 = vmmov %vm6901_vm2  ;;  %v2913_v30 = vld [vmem:[%s6817_s6 + $0x118] sm:$0xff]  ;;  %v2910_v43 = vld [vmem:[%s6817_s6 + $0x100] sm:$0xff] }
 0x25e   :  { %4138 = vmatpush1.bf16.msra.mxu0 %v5864_v38  ;;  %v5930_v21 = vpack.c.bf16 %v2892_v23, %v2890_v45  ;;  %vm6905_vm7 = vmmov %vm6901_vm2  ;;  %v5951_v18 = vpack.c.bf16 %v2896_v2, %v2894_v24  ;;  %v5972_v63 = vpack.c.bf16 %v2900_v22, %v2898_v1  ;;  %v5993_v5 = vpack.c.bf16 %v2904_v14, %v2902_v10  ;;  %v4414_v3 = vld [vmem:[%s6859_s27 + $0x10] sm:$0xff]  ;;  %v4419_v57 = vld [vmem:[%s6859_s27 + $0x38] sm:$0xff] }
 0x25f   :  { %4009 = vmatmul.mubr.msk.f32.gmra.mrb[18].mxu1 %vm6901_vm2, %v2362_v48  ;;  %4140 = vmatprep.subr.bf16.mxu0 %v5876_v50  ;;  %vm6906_vm15 = vmmov %vm6901_vm2  ;;  %v1204_v46 = vand.u32 3, %v5677_v58  ;;  %v6015_v42 = vpack.c.bf16 %v2908_v13, %v2906_v47  ;;  %v1307_v58 = vand.u32 3, %v5696_v6  ;;  %v4420_v16 = vld [vmem:[%s6859_s27 + $0x40] sm:$0xff]  ;;  %v4421_v7 = vld [vmem:[%s6859_s27 + $0x48] sm:$0xff] }
 0x260   :  { %2632 = vmatprep.mubr.f32.mxu1 %v6890_v35  ;;  %vm6907_vm1 = vmmov %vm6901_vm2  ;;  %v2917_v61 = vld [vmem:[%s6817_s6 + $0x138] sm:$0xff]  ;;  %v2914_v27 = vld [vmem:[%s6817_s6 + $0x120] sm:$0xff] }
 0x261   :  { %vm6908_vm14 = vmmov %vm6907_vm1  ;;  %vm1206_vm11 = vcmp.eq.s32.totalorder %v1204_v46, 0  ;;  %vm1209_vm9 = vcmp.eq.s32.totalorder %v1204_v46, 2  ;;  %vm1205_vm5 = vcmp.lt.s32.totalorder %v1204_v46, 2  ;;  %vm1309_vm8 = vcmp.eq.s32.totalorder %v1307_v58, 0  ;;  %v2916_v45 = vld [vmem:[%s6817_s6 + $0x130] sm:$0xff] }
 0x262   :  { %4142 = vmatpush1.bf16.msra.mxu0 %v5886_v49  ;;  %vm6909_vm10 = vmmov %vm6907_vm1  ;;  %v1208_v48 = vsel %vm1206_vm11, %v5782_v41, %v1207_v32  ;;  %v1211_v29 = vsel %vm1209_vm9, %v1210_v55, %v5788_v62  ;;  %vm1312_vm2 = vcmp.eq.s32.totalorder %v1307_v58, 2  ;;  %v1311_v32 = vsel %vm1309_vm8, %v5664_v53, %v1310_v44  ;;  %v4412_v53 = vld [vmem:[%s6859_s27] sm:$0xff] }
 0x263   :  { %4012 = vmatmul.mubr.msk.f32.vlgmr.msra.gmra.mrb[0].mxu1 %vm6902_vm6, %v5549_v59  ;;  %4144 = vmatprep.subr.bf16.mxu0 %v5896_v28  ;;  %v2895_v59 = vld [vmem:[%s6817_s6 + $0x88] sm:$0xff]  ;;  %vm6910_vm13 = vmmov %vm6907_vm1  ;;  %v1212_v6 = vsel %vm1205_vm5, %v1208_v48, %v1211_v29  ;;  %v1314_v41 = vsel %vm1312_vm2, %v1313_v37, %v5673_v34  ;;  %vm1308_vm6 = vcmp.lt.s32.totalorder %v1307_v58, 2  ;;  %v4415_v34 = vld [vmem:[%s6859_s27 + $0x18] sm:$0xff]  ;;  %vm4578_vm8 = vmmov 0  }
 0x264   :  { %4023 = vmatpush1.msk.msra.mxu1 %vm6903_vm3, %v2693_v19  ;;  %2638 = vmatprep.mubr.f32.mxu1 %v6890_v35  ;;  %v5934_v20 = vpack.c.bf16 %v2897_v15, %v2895_v59  ;;  %v1213_v62 = vsel %vm1203_vm4, nan, %v1212_v6  ;;  %vm6911_vm3 = vmmov %vm6907_vm1  ;;  %v1315_v55 = vsel %vm1308_vm6, %v1311_v32, %v1314_v41  ;;  %v4416_v44 = vld [vmem:[%s6859_s27 + $0x20] sm:$0xff]  ;;  %v4417_v37 = vld [vmem:[%s6859_s27 + $0x28] sm:$0xff]  ;;  %v6122_v59 = vpack.c.bf16 %v2916_v45, %v2914_v27 }
 0x265   :  { %4103 = vmatprep.subr.bf16.mxu1 %v6890_v35  ;;  %v2915_v19 = vld [vmem:[%s6817_s6 + $0x128] sm:$0xff]  ;;  %v2848_v15 = vlaneseq }
 0x266   :  { %4146 = vmatpush1.bf16.msra.mxu0 %v5907_v39  ;;  %v6120_v23 = vpack.c.bf16 %v2917_v61, %v2915_v19 }
 0x267   :  { %4013 = vmatmul.mubr.msk.f32.gmra.mrb[2].mxu1 %vm6904_vm12, %v5747_v26  ;;  %4148 = vmatprep.subr.bf16.mxu0 %v5911_v17  ;;  %v2899_v26 = vld [vmem:[%s6817_s6 + $0xa8] sm:$0xff]  ;;  %vm6912_vm12 = vmmov %vm6907_vm1  ;;  %v2849_v24 = vshrl.u32 %v2848_v15, 7 }
 0x268   :  { %2644 = vmatprep.mubr.f32.mxu1 %v6890_v35  ;;  %v5955_v52 = vpack.c.bf16 %v2901_v12, %v2899_v26  ;;  %v2846_v26 = vld [vmem:[%s6816_s5] sm:$0x3] }
 0x269   :  { %v6127_v2 = vsub.s32 1, %v2849_v24  ;;  %v6132_v12 = vsub.s32 0, %v2849_v24 }
 0x26a   :  { %4150 = vmatpush1.bf16.msra.mxu0 %v5930_v21 }
 0x26b   :  { %4014 = vmatmul.mubr.msk.f32.gmra.mrb[4].mxu1 %vm6905_vm7, %v5762_v11  ;;  %4152 = vmatprep.subr.bf16.mxu0 %v5934_v20  ;;  %v2903_v11 = vld [vmem:[%s6817_s6 + $0xc8] sm:$0xff]  ;;  %vm6913_vm7 = vcmask 39936   ;;  %v6135_v1 = vrot.slane %v2846_v26, %v6127_v2  ;;  %v6138_v22 = vrot.slane %v2846_v26, %v6132_v12 }
 0x26c   :  { %2650 = vmatprep.mubr.f32.mxu1 %v6890_v35  ;;  %v5976_v36 = vpack.c.bf16 %v2905_v51, %v2903_v11  ;;  %vm6914_vm4 = vmmov %vm6913_vm7 }
 0x26e   :  { %4154 = vmatpush1.bf16.msra.mxu0 %v5951_v18 }
 0x26f   :  { %4015 = vmatmul.mubr.msk.f32.gmra.mrb[6].mxu1 %vm6906_vm15, %v5766_v8  ;;  %4156 = vmatprep.subr.bf16.mxu0 %v5955_v52  ;;  %v2907_v8 = vld [vmem:[%s6817_s6 + $0xe8] sm:$0xff] }
 0x270   :  { %2656 = vmatprep.mubr.f32.mxu1 %v6890_v35  ;;  %v5997_v54 = vpack.c.bf16 %v2909_v33, %v2907_v8 }
 0x272   :  { %4158 = vmatpush1.bf16.msra.mxu0 %v5972_v63 }
 0x273   :  { %4016 = vmatmul.mubr.msk.f32.gmra.mrb[8].mxu1 %vm6907_vm1, %v5786_v9  ;;  %4160 = vmatprep.subr.bf16.mxu0 %v5976_v36  ;;  %v2911_v9 = vld [vmem:[%s6817_s6 + $0x108] sm:$0xff] }
 0x274   :  { %2662 = vmatprep.mubr.f32.mxu1 %v6890_v35  ;;  %v6019_v31 = vpack.c.bf16 %v2913_v30, %v2911_v9 }
 0x276   :  { %4162 = vmatpush1.bf16.msra.mxu0 %v5993_v5 }
 0x277   :  { %4017 = vmatmul.mubr.msk.f32.gmra.mrb[10].mxu1 %vm6908_vm14, %v5805_v60  ;;  %4164 = vmatprep.subr.bf16.mxu0 %v5997_v54  ;;  %v2912_v60 = vld [vmem:[%s6817_s6 + $0x110] sm:$0xff] }
 0x278   :  { %2668 = vmatprep.mubr.f32.mxu1 %v6890_v35  ;;  %v6031_v56 = vpack.c.bf16 %v2912_v60, %v2910_v43 }
 0x27a   :  { %4166 = vmatpush1.bf16.msra.mxu0 %v6015_v42 }
 0x27b   :  { %4018 = vmatmul.mubr.msk.f32.gmra.mrb[12].mxu1 %vm6909_vm10, %v5830_v0  ;;  %4168 = vmatprep.subr.bf16.mxu0 %v6019_v31  ;;  %v1316_v0 = vsel %vm1306_vm0, nan, %v1315_v55  ;;  %vm6915_vm0 = vmmov %vm6914_vm4 }
 0x27c   :  { %2674 = vmatprep.mubr.f32.mxu1 %v6890_v35  ;;  %vm6916_vm15 = vmmov %vm6915_vm0 }
 0x27d   :  { %vm6917_vm1 = vmmov %vm6915_vm0 }
 0x27e   :  { %4170 = vmatpush1.bf16.msra.mxu0 %v6031_v56  ;;  %vm6918_vm14 = vmmov %vm6915_vm0 }
 0x27f   :  { %4019 = vmatmul.mubr.msk.f32.gmra.mrb[14].mxu1 %vm6910_vm13, %v5860_v4  ;;  %v4418_v4 = vld [vmem:[%s6859_s27 + $0x30] sm:$0xff]  ;;  %vm6919_vm10 = vmmov %vm6915_vm0  ;;  %4172 = vmatprep.subr.bf16.mxu0 %v6120_v23  ;;  %vm2918_vm13 = vcmask 261120  }
 0x280   :  { %2680 = vmatprep.mubr.f32.mxu1 %v6890_v35  ;;  %vm6920_vm11 = vmmov %vm6915_vm0 }
 0x281   :  { %vm6921_vm9 = vmmov %vm6915_vm0 }
 0x282   :  { %vm6922_vm5 = vmmov %vm6915_vm0  ;;  %4174 = vmatpush1.bf16.msra.mxu0 %v6122_v59 }
 0x283   :  { %4020 = vmatmul.mubr.msk.f32.gmra.mrb[16].mxu1 %vm6911_vm3, %v1213_v62  ;;  %4176 = vmatprep.subr.bf16.mxu0 %v5862_v40 }
 0x284   :  { %2686 = vmatprep.mubr.f32.mxu1 %v6890_v35 }
 0x287   :  { %4021 = vmatmul.mubr.msk.f32.gmra.mrb[18].mxu1 %vm6912_vm12, %v1316_v0 }
 0x288   :  { %2765 = vmatprep.mubr.f32.mxu1 %v6890_v35 }
 0x28b   :  { %4024 = vmatmul.mubr.msk.f32.vlgmr.msra.gmra.mrb[0].mxu1 %vm6913_vm7, %v4412_v53 }
 0x28c   :  { %2771 = vmatprep.mubr.f32.mxu1 %v6890_v35 }
 0x28f   :  { %4025 = vmatmul.mubr.msk.f32.gmra.mrb[2].mxu1 %vm6914_vm4, %v4413_v25 }
 0x290   :  { %2777 = vmatprep.mubr.f32.mxu1 %v6890_v35 }
 0x293   :  { %4026 = vmatmul.mubr.msk.f32.gmra.mrb[4].mxu1 %vm6915_vm0, %v4414_v3 }
 0x294   :  { %2783 = vmatprep.mubr.f32.mxu1 %v6890_v35 }
 0x297   :  { %4027 = vmatmul.mubr.msk.f32.gmra.mrb[6].mxu1 %vm6916_vm15, %v4415_v34 }
 0x298   :  { %2789 = vmatprep.mubr.f32.mxu1 %v6890_v35 }
 0x29b   :  { %4028 = vmatmul.mubr.msk.f32.gmra.mrb[8].mxu1 %vm6917_vm1, %v4416_v44 }
 0x29c   :  { %2795 = vmatprep.mubr.f32.mxu1 %v6890_v35 }
 0x29f   :  { %4029 = vmatmul.mubr.msk.f32.gmra.mrb[10].mxu1 %vm6918_vm14, %v4417_v37 }
 0x2a0   :  { %2801 = vmatprep.mubr.f32.mxu1 %v6890_v35 }
 0x2a3   :  { %4030 = vmatmul.mubr.msk.f32.gmra.mrb[12].mxu1 %vm6919_vm10, %v4418_v4 }
 0x2a4   :  { %2807 = vmatprep.mubr.f32.mxu1 %v6890_v35 }
 0x2a7   :  { %4031 = vmatmul.mubr.msk.f32.gmra.mrb[14].mxu1 %vm6920_vm11, %v4419_v57 }
 0x2a8   :  { %2813 = vmatprep.mubr.f32.mxu1 %v6890_v35 }
 0x2ab   :  { %4032 = vmatmul.mubr.msk.f32.gmra.mrb[16].mxu1 %vm6921_vm9, %v4420_v16 }
 0x2ac   :  { %2819 = vmatprep.mubr.f32.mxu1 %v6890_v35 }
 0x2af   :  { %4033 = vmatmul.mubr.msk.f32.gmra.mrb[18].mxu1 %vm6922_vm5, %v4421_v7 }
 0x35e   :  { %v2767_v11 = vpop.f32.mrb[0].mxu1 }
 0x35f   :  { %v2769_v51 = vpop.f32.mrb[1].mxu1  ;;  %v6144_v10 = vadd.f32 %v6138_v22, %v2767_v11  ;;  %v3453_v11 = vld [vmem:[%s6820_s9] sm:$0xff] }
 0x360   :  { %v6141_v40 = vadd.f32 %v6135_v1, %v2769_v51  ;;  %v3454_v51 = vld [vmem:[%s6820_s9 + $0x8] sm:$0xff] }
 0x362   :  { %v2773_v14 = vpop.f32.mrb[2].mxu1  ;;  %4034 = vmatprep.mubr.msk.f32.mxu0 %vm2918_vm13, %v6141_v40 }
 0x363   :  { %v2775_v8 = vpop.f32.mrb[3].mxu1  ;;  %3014 = vmatmul.mubr.f32.vlgmr.msra.gmra.mrb[10].mxu0 %v6144_v10  ;;  %v6154_v47 = vadd.f32 %v6138_v22, %v2773_v14  ;;  %v3483_v14 = vpack.c.bf16 %v3454_v51, %v3453_v11 }
 0x364   :  { %v6150_v33 = vadd.f32 %v6135_v1, %v2775_v8  ;;  %4178 = vmatpush1.bf16.msra.mxu0 %v5864_v38  ;;  %v3455_v8 = vld [vmem:[%s6820_s9 + $0x10] sm:$0xff] }
 0x365   :  { %4180 = vmatprep.subr.bf16.mxu0 %v5876_v50  ;;  %v3076_v34 = vmul.f32 %v6154_v47, %v6154_v47 }
 0x366   :  { %v2779_v13 = vpop.f32.mrb[4].mxu1  ;;  %4035 = vmatprep.mubr.msk.f32.mxu0 %vm2918_vm13, %v6150_v33 }
 0x367   :  { %v2781_v9 = vpop.f32.mrb[5].mxu1  ;;  %3020 = vmatmul.mubr.f32.gmra.mrb[12].mxu0 %v6154_v47  ;;  %v6165_v46 = vadd.f32 %v6138_v22, %v2779_v13  ;;  %v3456_v13 = vld [vmem:[%s6820_s9 + $0x18] sm:$0xff] }
 0x368   :  { %v6161_v30 = vadd.f32 %v6135_v1, %v2781_v9  ;;  %4182 = vmatpush1.bf16.msra.mxu0 %v5886_v49  ;;  %v3484_v9 = vpack.c.bf16 %v3456_v13, %v3455_v8 }
 0x369   :  { %4184 = vmatprep.subr.bf16.mxu0 %v5896_v28  ;;  %v3078_v37 = vmul.f32 %v6165_v46, %v6165_v46 }
 0x36a   :  { %v2785_v38 = vpop.f32.mrb[6].mxu1  ;;  %4036 = vmatprep.mubr.msk.f32.mxu0 %vm2918_vm13, %v6161_v30  ;;  %v3079_v44 = vmul.f32 %v6161_v30, %v6161_v30 }
 0x36b   :  { %v2787_v50 = vpop.f32.mrb[7].mxu1  ;;  %3026 = vmatmul.mubr.f32.gmra.mrb[14].mxu0 %v6165_v46  ;;  %v6176_v60 = vadd.f32 %v6138_v22, %v2785_v38  ;;  %v3457_v38 = vld [vmem:[%s6820_s9 + $0x20] sm:$0xff] }
 0x36c   :  { %v6172_v43 = vadd.f32 %v6135_v1, %v2787_v50  ;;  %4186 = vmatpush1.bf16.msra.mxu0 %v5907_v39  ;;  %v3458_v50 = vld [vmem:[%s6820_s9 + $0x28] sm:$0xff] }
 0x36d   :  { %4188 = vmatprep.subr.bf16.mxu0 %v5911_v17  ;;  %v3080_v57 = vmul.f32 %v6176_v60, %v6176_v60 }
 0x36e   :  { %v2791_v49 = vpop.f32.mrb[8].mxu1  ;;  %4037 = vmatprep.mubr.msk.f32.mxu0 %vm2918_vm13, %v6172_v43  ;;  %v3081_v4 = vmul.f32 %v6172_v43, %v6172_v43 }
 0x36f   :  { %v2793_v28 = vpop.f32.mrb[9].mxu1  ;;  %3032 = vmatmul.mubr.f32.gmra.mrb[16].mxu0 %v6176_v60  ;;  %v6187_v48 = vadd.f32 %v6138_v22, %v2791_v49  ;;  %v3485_v49 = vpack.c.bf16 %v3458_v50, %v3457_v38 }
 0x370   :  { %v6183_v58 = vadd.f32 %v6135_v1, %v2793_v28  ;;  %4190 = vmatpush1.bf16.msra.mxu0 %v5930_v21  ;;  %v3459_v28 = vld [vmem:[%s6820_s9 + $0x30] sm:$0xff] }
 0x371   :  { %4192 = vmatprep.subr.bf16.mxu0 %v5934_v20  ;;  %v3082_v7 = vmul.f32 %v6187_v48, %v6187_v48 }
 0x372   :  { %v2797_v39 = vpop.f32.mrb[10].mxu1  ;;  %4038 = vmatprep.mubr.msk.f32.mxu0 %vm2918_vm13, %v6183_v58  ;;  %v3083_v16 = vmul.f32 %v6183_v58, %v6183_v58 }
 0x373   :  { %v2799_v17 = vpop.f32.mrb[11].mxu1  ;;  %3038 = vmatmul.mubr.f32.gmra.mrb[18].mxu0 %v6187_v48  ;;  %v6198_v6 = vadd.f32 %v6138_v22, %v2797_v39  ;;  %v3460_v39 = vld [vmem:[%s6820_s9 + $0x38] sm:$0xff] }
 0x374   :  { %v6194_v29 = vadd.f32 %v6135_v1, %v2799_v17  ;;  %4194 = vmatpush1.bf16.msra.mxu0 %v5951_v18  ;;  %v3461_v17 = vld [vmem:[%s6820_s9 + $0x40] sm:$0xff] }
 0x375   :  { %4196 = vmatprep.subr.bf16.mxu0 %v5955_v52  ;;  %v3084_v61 = vmul.f32 %v6198_v6, %v6198_v6 }
 0x376   :  { %v2803_v21 = vpop.f32.mrb[12].mxu1  ;;  %4039 = vmatprep.mubr.msk.f32.mxu0 %vm2918_vm13, %v6194_v29  ;;  %v3085_v19 = vmul.f32 %v6194_v29, %v6194_v29 }
 0x377   :  { %v2805_v20 = vpop.f32.mrb[13].mxu1  ;;  %3044 = vmatmul.mubr.f32.gmra.mrb[20].mxu0 %v6198_v6  ;;  %v6209_v41 = vadd.f32 %v6138_v22, %v2803_v21  ;;  %v3486_v21 = vpack.c.bf16 %v3460_v39, %v3459_v28 }
 0x378   :  { %v6205_v32 = vadd.f32 %v6135_v1, %v2805_v20  ;;  %4198 = vmatpush1.bf16.msra.mxu0 %v5972_v63  ;;  %v3462_v20 = vld [vmem:[%s6820_s9 + $0x48] sm:$0xff] }
 0x379   :  { %4200 = vmatprep.subr.bf16.mxu0 %v5976_v36  ;;  %v3086_v45 = vmul.f32 %v6209_v41, %v6209_v41 }
 0x37a   :  { %v2809_v18 = vpop.f32.mrb[14].mxu1  ;;  %4040 = vmatprep.mubr.msk.f32.mxu0 %vm2918_vm13, %v6205_v32  ;;  %v3087_v27 = vmul.f32 %v6205_v32, %v6205_v32 }
 0x37b   :  { %v2811_v52 = vpop.f32.mrb[15].mxu1  ;;  %3050 = vmatmul.mubr.f32.gmra.mrb[22].mxu0 %v6209_v41  ;;  %v6220_v55 = vadd.f32 %v6138_v22, %v2809_v18  ;;  %v3487_v18 = vpack.c.bf16 %v3462_v20, %v3461_v17 }
 0x37c   :  { %v6216_v62 = vadd.f32 %v6135_v1, %v2811_v52  ;;  %4202 = vmatpush1.bf16.msra.mxu0 %v5993_v5  ;;  %v3463_v52 = vld [vmem:[%s6820_s9 + $0x50] sm:$0xff] }
 0x37d   :  { %4204 = vmatprep.subr.bf16.mxu0 %v5997_v54 }
 0x37e   :  { %v2815_v63 = vpop.f32.mrb[16].mxu1  ;;  %4041 = vmatprep.mubr.msk.f32.mxu0 %vm2918_vm13, %v6216_v62 }
 0x37f   :  { %v2817_v36 = vpop.f32.mrb[17].mxu1  ;;  %3056 = vmatmul.mubr.f32.gmra.mrb[24].mxu0 %v6220_v55  ;;  %v6231_v53 = vadd.f32 %v6138_v22, %v2815_v63  ;;  %v3464_v63 = vld [vmem:[%s6820_s9 + $0x58] sm:$0xff] }
 0x380   :  { %v6227_v0 = vadd.f32 %v6135_v1, %v2817_v36  ;;  %4206 = vmatpush1.bf16.msra.mxu0 %v6015_v42  ;;  %v3075_v42 = vmul.f32 %v6141_v40, %v6141_v40  ;;  %v3488_v36 = vpack.c.bf16 %v3464_v63, %v3463_v52 }
 0x381   :  { %4208 = vmatprep.subr.bf16.mxu0 %v6019_v31  ;;  %v3074_v31 = vmul.f32 %v6144_v10, %v6144_v10  ;;  %v3090_v24 = vmul.f32 %v6231_v53, %v6231_v53 }
 0x382   :  { %v2821_v5 = vpop.f32.mrb[18].mxu1  ;;  %4042 = vmatprep.mubr.msk.f32.mxu0 %vm2918_vm13, %v6227_v0  ;;  %v3091_v15 = vmul.f32 %v6227_v0, %v6227_v0 }
 0x383   :  { %v2823_v54 = vpop.f32.mrb[19].mxu1  ;;  %3062 = vmatmul.mubr.f32.gmra.mrb[26].mxu0 %v6231_v53  ;;  %v6242_v3 = vadd.f32 %v6138_v22, %v2821_v5  ;;  %v4577_v22 = vmov 0   ;;  %v3465_v5 = vld [vmem:[%s6820_s9 + $0x60] sm:$0xff] }
 0x384   :  { %v6238_v25 = vadd.f32 %v6135_v1, %v2823_v54  ;;  %4210 = vmatpush1.bf16.msra.mxu0 %v6031_v56  ;;  %v3077_v56 = vmul.f32 %v6150_v33, %v6150_v33  ;;  %v3466_v54 = vld [vmem:[%s6820_s9 + $0x68] sm:$0xff] }
 0x385   :  { %4212 = vmatprep.subr.bf16.mxu0 %v6120_v23  ;;  %v3089_v23 = vmul.f32 %v6216_v62, %v6216_v62  ;;  %v3092_v1 = vmul.f32 %v6242_v3, %v6242_v3 }
 0x386   :  { %6923 = vst [vmem:[#allocation16_spill] sm:$0xff] %v6238_v25  ;;  %4043 = vmatprep.mubr.msk.f32.mxu0 %vm2918_vm13, %v6238_v25  ;;  %v3093_v26 = vmul.f32 %v6238_v25, %v6238_v25 }
 0x387   :  { %3068 = vmatmul.mubr.f32.gmra.mrb[28].mxu0 %v6242_v3 }
 0x388   :  { %4214 = vmatpush1.bf16.msra.mxu0 %v6122_v59  ;;  %4044 = vmatprep.mubr.msk.f32.mxu0 %vm2918_vm13, %v3075_v42  ;;  %v3088_v59 = vmul.f32 %v6220_v55, %v6220_v55  ;;  %v3489_v42 = vpack.c.bf16 %v3466_v54, %v3465_v5 }
 0x389   :  { %3515 = vmatprep.subr.bf16.mxu0 %v4577_v22 }
 0x38b   :  { %3189 = vmatmul.mubr.f32.vlgmr.msra.gmra.mrb[30].mxu0 %v3074_v31  ;;  %v3467_v31 = vld [vmem:[%s6820_s9 + $0x70] sm:$0xff] }
 0x38c   :  { %4045 = vmatprep.mubr.msk.f32.mxu0 %vm2918_vm13, %v3077_v56  ;;  %3516 = vmatpush1.bf16.msra.mxu0 %v3483_v14  ;;  %v3468_v56 = vld [vmem:[%s6820_s9 + $0x78] sm:$0xff] }
 0x38d   :  { %3517 = vmatprep.subr.bf16.mxu0 %v4577_v22 }
 0x38f   :  { %3195 = vmatmul.mubr.f32.gmra.mrb[32].mxu0 %v3076_v34  ;;  %v3490_v34 = vpack.c.bf16 %v3468_v56, %v3467_v31  ;;  %v3401_v31 = vld [vmem:[#allocation7] sm:$0x3] }
 0x390   :  { %4046 = vmatprep.mubr.msk.f32.mxu0 %vm2918_vm13, %v3079_v44  ;;  %3518 = vmatpush1.bf16.msra.mxu0 %v3484_v9  ;;  %v3469_v44 = vld [vmem:[%s6820_s9 + $0x80] sm:$0xff] }
 0x391   :  { %3519 = vmatprep.subr.bf16.mxu0 %v4577_v22 }
 0x393   :  { %3201 = vmatmul.mubr.f32.gmra.mrb[34].mxu0 %v3078_v37  ;;  %v3470_v37 = vld [vmem:[%s6820_s9 + $0x88] sm:$0xff] }
 0x394   :  { %4047 = vmatprep.mubr.msk.f32.mxu0 %vm2918_vm13, %v3081_v4  ;;  %3520 = vmatpush1.bf16.msra.mxu0 %v3485_v49  ;;  %v3491_v4 = vpack.c.bf16 %v3470_v37, %v3469_v44 }
 0x395   :  { %3521 = vmatprep.subr.bf16.mxu0 %v4577_v22 }
 0x397   :  { %3207 = vmatmul.mubr.f32.gmra.mrb[36].mxu0 %v3080_v57  ;;  %v3471_v57 = vld [vmem:[%s6820_s9 + $0x90] sm:$0xff] }
 0x398   :  { %4048 = vmatprep.mubr.msk.f32.mxu0 %vm2918_vm13, %v3083_v16  ;;  %3522 = vmatpush1.bf16.msra.mxu0 %v3486_v21  ;;  %v3472_v16 = vld [vmem:[%s6820_s9 + $0x98] sm:$0xff] }
 0x399   :  { %3523 = vmatprep.subr.bf16.mxu0 %v4577_v22 }
 0x39b   :  { %3213 = vmatmul.mubr.f32.gmra.mrb[38].mxu0 %v3082_v7  ;;  %v3492_v7 = vpack.c.bf16 %v3472_v16, %v3471_v57  ;;  %v6416_v16 = vrot.slane %v3401_v31, %v6132_v12 }
 0x39c   :  { %4049 = vmatprep.mubr.msk.f32.mxu0 %vm2918_vm13, %v3085_v19  ;;  %3524 = vmatpush1.bf16.msra.mxu0 %v3487_v18 }
 0x39d   :  { %3525 = vmatprep.subr.bf16.mxu0 %v4577_v22 }
 0x39f   :  { %3219 = vmatmul.mubr.f32.gmra.mrb[40].mxu0 %v3084_v61 }
 0x3a0   :  { %4050 = vmatprep.mubr.msk.f32.mxu0 %vm2918_vm13, %v3087_v27  ;;  %3526 = vmatpush1.bf16.msra.mxu0 %v3488_v36 }
 0x3a1   :  { %3527 = vmatprep.subr.bf16.mxu0 %v4577_v22 }
 0x3a3   :  { %3225 = vmatmul.mubr.f32.gmra.mrb[42].mxu0 %v3086_v45 }
 0x3a4   :  { %4051 = vmatprep.mubr.msk.f32.mxu0 %vm2918_vm13, %v3089_v23  ;;  %3528 = vmatpush1.bf16.msra.mxu0 %v3489_v42  ;;  %v3369_v42 = vld [vmem:[%s6818_s7] sm:$0x3] }
 0x3a5   :  { %3529 = vmatprep.subr.bf16.mxu0 %v4577_v22  ;;  %v6413_v57 = vrot.slane %v3369_v42, %v6132_v12 }
 0x3a7   :  { %3231 = vmatmul.mubr.f32.gmra.mrb[44].mxu0 %v3088_v59 }
 0x3a8   :  { %4052 = vmatprep.mubr.msk.f32.mxu0 %vm2918_vm13, %v3091_v15  ;;  %3530 = vmatpush1.bf16.msra.mxu0 %v3490_v34 }
 0x3a9   :  { %3531 = vmatprep.subr.bf16.mxu0 %v4577_v22 }
 0x3ab   :  { %3237 = vmatmul.mubr.f32.gmra.mrb[46].mxu0 %v3090_v24 }
 0x3ac   :  { %4053 = vmatprep.mubr.msk.f32.mxu0 %vm2918_vm13, %v3093_v26  ;;  %3532 = vmatpush1.bf16.msra.mxu0 %v3491_v4 }
 0x3ad   :  { %3533 = vmatprep.subr.bf16.mxu0 %v4577_v22 }
 0x3af   :  { %3243 = vmatmul.mubr.f32.gmra.mrb[48].mxu0 %v3092_v1 }
 0x3b0   :  { %3534 = vmatpush1.bf16.msra.mxu0 %v3492_v7 }
 0x436   :  { %v6359_v19 = vpop.f32.mrb[10].mxu0 }
 0x437   :  { %v6361_v61 = vpop.f32.mrb[11].mxu0  ;;  %v3249_v28 = vmul.f32 %v6359_v19, %v6359_v19 }
 0x438   :  { %v3250_v39 = vmul.f32 %v6361_v61, %v6361_v61  ;;  %v3290_v12 = vsub.f32 %v6141_v40, %v6361_v61 }
 0x43a   :  { %v6363_v27 = vpop.f32.mrb[12].mxu0 }
 0x43b   :  { %v6365_v45 = vpop.f32.mrb[13].mxu0  ;;  %v3251_v52 = vmul.f32 %v6363_v27, %v6363_v27 }
 0x43c   :  { %v3252_v36 = vmul.f32 %v6365_v45, %v6365_v45 }
 0x43e   :  { %v6367_v23 = vpop.f32.mrb[14].mxu0 }
 0x43f   :  { %v6369_v59 = vpop.f32.mrb[15].mxu0  ;;  %v3253_v37 = vmul.f32 %v6367_v23, %v6367_v23 }
 0x440   :  { %v3254_v7 = vmul.f32 %v6369_v59, %v6369_v59 }
 0x442   :  { %v6371_v15 = vpop.f32.mrb[16].mxu0 }
 0x443   :  { %v6373_v24 = vpop.f32.mrb[17].mxu0 }
 0x444   :  { %v3256_v40 = vmul.f32 %v6373_v24, %v6373_v24 }
 0x446   :  { %v6375_v26 = vpop.f32.mrb[18].mxu0 }
 0x447   :  { %v6377_v1 = vpop.f32.mrb[19].mxu0 }
 0x44a   :  { %v6379_v22 = vpop.f32.mrb[20].mxu0 }
 0x44b   :  { %v6381_v11 = vpop.f32.mrb[21].mxu0 }
 0x44e   :  { %v6383_v51 = vpop.f32.mrb[22].mxu0 }
 0x44f   :  { %v6385_v14 = vpop.f32.mrb[23].mxu0 }
 0x452   :  { %v6387_v8 = vpop.f32.mrb[24].mxu0 }
 0x453   :  { %v6389_v13 = vpop.f32.mrb[25].mxu0 }
 0x456   :  { %v6391_v9 = vpop.f32.mrb[26].mxu0 }
 0x457   :  { %v6393_v38 = vpop.f32.mrb[27].mxu0 }
 0x45a   :  { %v6395_v50 = vpop.f32.mrb[28].mxu0 }
 0x45b   :  { %v6397_v49 = vpop.f32.mrb[29].mxu0 }
 0x45e   :  { %v3190_v17 = vpop.f32.mrb[30].mxu0 }
 0x45f   :  { %v3269_v21 = vsub.f32 %v3190_v17, %v3249_v28  ;;  %v3192_v20 = vpop.f32.mrb[31].mxu0  ;;  %v6421_v17 = vrot.slane %v3369_v42, %v6127_v2  ;;  %v3293_v42 = vsub.f32 %v6165_v46, %v6367_v23 }
 0x460   :  { %v3270_v18 = vsub.f32 %v3192_v20, %v3250_v39 }
 0x461   :  { %v3309_v63 = vadd.f32 1e-05, %v3269_v21  ;;  %v6424_v21 = vrot.slane %v3401_v31, %v6127_v2  ;;  %v3255_v2 = vmul.f32 %v6371_v15, %v6371_v15  ;;  %v3257_v31 = vmul.f32 %v6375_v26, %v6375_v26 }
 0x462   :  { %v3310_v5 = vadd.f32 1e-05, %v3270_v18  ;;  %v3196_v54 = vpop.f32.mrb[32].mxu0 }
 0x463   :  { %4352 = vrsqrt.f32 %v3309_v63  ;;  %v3271_v56 = vsub.f32 %v3196_v54, %v3251_v52  ;;  %v3198_v34 = vpop.f32.mrb[33].mxu0  ;;  %v3289_v52 = vsub.f32 %v6144_v10, %v6359_v19  ;;  %v3294_v10 = vsub.f32 %v6161_v30, %v6369_v59 }
 0x464   :  { %4354 = vrsqrt.f32 %v3310_v5  ;;  %v3272_v44 = vsub.f32 %v3198_v34, %v3252_v36  ;;  %v3291_v36 = vsub.f32 %v6154_v47, %v6363_v27  ;;  %v3292_v5 = vsub.f32 %v6150_v33, %v6365_v45 }
 0x465   :  { %v3311_v4 = vadd.f32 1e-05, %v3271_v56 }
 0x466   :  { %v3312_v28 = vadd.f32 1e-05, %v3272_v44  ;;  %v3202_v39 = vpop.f32.mrb[34].mxu0 }
 0x467   :  { %4356 = vrsqrt.f32 %v3311_v4  ;;  %v3273_v20 = vsub.f32 %v3202_v39, %v3253_v37  ;;  %v3204_v18 = vpop.f32.mrb[35].mxu0  ;;  %v3258_v37 = vmul.f32 %v6377_v1, %v6377_v1 }
 0x468   :  { %4358 = vrsqrt.f32 %v3312_v28  ;;  %v3274_v63 = vsub.f32 %v3204_v18, %v3254_v7  ;;  %v3259_v7 = vmul.f32 %v6379_v22, %v6379_v22  ;;  %v3260_v18 = vmul.f32 %v6381_v11, %v6381_v11 }
 0x469   :  { %v3313_v54 = vadd.f32 1e-05, %v3273_v20 }
 0x46a   :  { %v3314_v19 = vadd.f32 1e-05, %v3274_v63  ;;  %v3208_v61 = vpop.f32.mrb[36].mxu0 }
 0x46b   :  { %4360 = vrsqrt.f32 %v3313_v54  ;;  %v3275_v27 = vsub.f32 %v3208_v61, %v3255_v2  ;;  %v3210_v45 = vpop.f32.mrb[37].mxu0 }
 0x46c   :  { %4362 = vrsqrt.f32 %v3314_v19  ;;  %v3276_v34 = vsub.f32 %v3210_v45, %v3256_v40 }
 0x46d   :  { %v4353_v44 = vpop.eup %4352  ;;  %v3315_v28 = vadd.f32 1e-05, %v3275_v27  ;;  %v3261_v27 = vmul.f32 %v6383_v51, %v6383_v51 }
 0x46e   :  { %v4355_v39 = vpop.eup %4354  ;;  %v3349_v63 = vmul.f32 %v4353_v44, %v3289_v52  ;;  %v3316_v2 = vadd.f32 1e-05, %v3276_v34  ;;  %v3214_v54 = vpop.f32.mrb[38].mxu0  ;;  %v3262_v34 = vmul.f32 %v6385_v14, %v6385_v14 }
 0x46f   :  { %v3350_v19 = vmul.f32 %v4355_v39, %v3290_v12  ;;  %4364 = vrsqrt.f32 %v3315_v28  ;;  %v3277_v61 = vsub.f32 %v3214_v54, %v3257_v31  ;;  %v3216_v45 = vpop.f32.mrb[39].mxu0  ;;  %v3263_v31 = vmul.f32 %v6387_v8, %v6387_v8 }
 0x470   :  { %v3381_v4 = vmul.f32 %v6413_v57, %v3349_v63  ;;  %4366 = vrsqrt.f32 %v3316_v2  ;;  %v3278_v20 = vsub.f32 %v3216_v45, %v3258_v37 }
 0x471   :  { %v4357_v56 = vpop.eup %4356  ;;  %v3317_v44 = vadd.f32 1e-05, %v3277_v61  ;;  %v3382_v12 = vmul.f32 %v6421_v17, %v3350_v19  ;;  %v3264_v61 = vmul.f32 %v6389_v13, %v6389_v13 }
 0x472   :  { %v4359_v28 = vpop.eup %4358  ;;  %v3351_v39 = vmul.f32 %v4357_v56, %v3291_v36  ;;  %v3318_v54 = vadd.f32 1e-05, %v3278_v20  ;;  %v3220_v40 = vpop.f32.mrb[40].mxu0  ;;  %v3413_v63 = vadd.f32 %v6416_v16, %v3381_v4  ;;  %v3265_v36 = vmul.f32 %v6391_v9, %v6391_v9 }
 0x473   :  { %v3352_v37 = vmul.f32 %v4359_v28, %v3292_v5  ;;  %4368 = vrsqrt.f32 %v3317_v44  ;;  %v3279_v2 = vsub.f32 %v3220_v40, %v3259_v7  ;;  %v3222_v45 = vpop.f32.mrb[41].mxu0  ;;  %v3414_v52 = vadd.f32 %v6424_v21, %v3382_v12 }
 0x474   :  { %v3383_v19 = vmul.f32 %v6413_v57, %v3351_v39  ;;  %4370 = vrsqrt.f32 %v3318_v54  ;;  %v3280_v33 = vsub.f32 %v3222_v45, %v3260_v18  ;;  %v6481_v56 = vmul.f32 %v6393_v38, %v6393_v38 }
 0x475   :  { %v4361_v47 = vpop.eup %4360  ;;  %v3319_v5 = vadd.f32 1e-05, %v3279_v2  ;;  %v3384_v4 = vmul.f32 %v6421_v17, %v3352_v37  ;;  %v3433_v12 = vmax.f32 %v3413_v63, 0.0  ;;  %v3434_v35 = vmax.f32 %v3414_v52, 0.0 }
 0x476   :  { %v4363_v7 = vpop.eup %4362  ;;  %v3320_v20 = vadd.f32 1e-05, %v3280_v33  ;;  %v3226_v40 = vpop.f32.mrb[42].mxu0  ;;  %v3415_v44 = vadd.f32 %v6416_v16, %v3383_v19  ;;  %v3353_v18 = vmul.f32 %v4361_v47, %v3293_v42 }
 0x477   :  { %v3354_v28 = vmul.f32 %v4363_v7, %v3294_v10  ;;  %4372 = vrsqrt.f32 %v3319_v5  ;;  %v3281_v39 = vsub.f32 %v3226_v40, %v3261_v27  ;;  %v3228_v54 = vpop.f32.mrb[43].mxu0  ;;  %v3416_v2 = vadd.f32 %v6424_v21, %v3384_v4 }
 0x478   :  { %4374 = vrsqrt.f32 %v3320_v20  ;;  %v3282_v37 = vsub.f32 %v3228_v54, %v3262_v34  ;;  %v3435_v33 = vmax.f32 %v3415_v44, 0.0  ;;  %v3385_v45 = vmul.f32 %v6413_v57, %v3353_v18 }
 0x479   :  { %v4365_v19 = vpop.eup %4364  ;;  %v3321_v63 = vadd.f32 1e-05, %v3281_v39  ;;  %v3436_v25 = vmax.f32 %v3416_v2, 0.0  ;;  %v3386_v46 = vmul.f32 %v6421_v17, %v3354_v28  ;;  %v6924_v10 = vsub.f32 %v6176_v60, %v6371_v15 }
 0x47a   :  { %v4367_v23 = vpop.eup %4366  ;;  %v3322_v42 = vadd.f32 1e-05, %v3282_v37  ;;  %v3232_v30 = vpop.f32.mrb[44].mxu0  ;;  %v3473_v59 = vpack.c.bf16 %v3435_v33, %v3433_v12  ;;  %v3417_v27 = vadd.f32 %v6416_v16, %v3385_v45  ;;  %v6925_v34 = vsub.f32 %v6172_v43, %v6373_v24 }
 0x47b   :  { %v3355_v47 = vmul.f32 %v4365_v19, %v6924_v10  ;;  %4376 = vrsqrt.f32 %v3321_v63  ;;  %v3283_v4 = vsub.f32 %v3232_v30, %v3263_v31  ;;  %v3234_v52 = vpop.f32.mrb[45].mxu0  ;;  %v3474_v7 = vpack.c.bf16 %v3436_v25, %v3434_v35 }
 0x47c   :  { %v3356_v5 = vmul.f32 %v4367_v23, %v6925_v34  ;;  %4378 = vrsqrt.f32 %v3322_v42  ;;  %v3284_v20 = vsub.f32 %v3234_v52, %v3264_v61  ;;  %v3418_v40 = vadd.f32 %v6424_v21, %v3386_v46 }
 0x47d   :  { %v3387_v44 = vmul.f32 %v6413_v57, %v3355_v47  ;;  %v4369_v12 = vpop.eup %4368  ;;  %v3267_v60 = vmul.f32 %v6395_v50, %v6395_v50  ;;  %v3268_v15 = vmul.f32 %v6397_v49, %v6397_v49  ;;  %v3323_v18 = vadd.f32 1e-05, %v3283_v4  ;;  %4055 = vmatprep.mubr.msk.bf16.mxu0 %vm2918_vm13, %v3474_v7 }
 0x47e   :  { %v3388_v43 = vmul.f32 %v6421_v17, %v3356_v5  ;;  %v4371_v24 = vpop.eup %4370  ;;  %v3324_v35 = vadd.f32 1e-05, %v3284_v20  ;;  %v3238_v25 = vpop.f32.mrb[46].mxu0  ;;  %3548 = vmatmul.mubr.bf16.vlgmr.msra.gmra.mrb[52].mxu0 %v3473_v59  ;;  %v3437_v61 = vmax.f32 %v3417_v27, 0.0  ;;  %v6926_v28 = vsub.f32 %v6187_v48, %v6375_v26 }
 0x47f   :  { %v3419_v31 = vadd.f32 %v6416_v16, %v3387_v44  ;;  %v6927_v54 = vsub.f32 %v6183_v58, %v6377_v1  ;;  %4380 = vrsqrt.f32 %v3323_v18  ;;  %v3285_v37 = vsub.f32 %v3238_v25, %v3265_v36  ;;  %v3240_v33 = vpop.f32.mrb[47].mxu0 }
 0x480   :  { %v3357_v39 = vmul.f32 %v4369_v12, %v6926_v28  ;;  %v3420_v45 = vadd.f32 %v6424_v21, %v3388_v43  ;;  %4382 = vrsqrt.f32 %v3324_v35  ;;  %v3286_v19 = vsub.f32 %v3240_v33, %v6481_v56 }
 0x481   :  { %v3358_v2 = vmul.f32 %v4371_v24, %v6927_v54  ;;  %v3439_v63 = vmax.f32 %v3419_v31, 0.0  ;;  %v4373_v23 = vpop.eup %4372  ;;  %v3325_v42 = vadd.f32 1e-05, %v3285_v37  ;;  %v3438_v30 = vmax.f32 %v3418_v40, 0.0 }
 0x482   :  { %v3389_v46 = vmul.f32 %v6413_v57, %v3357_v39  ;;  %v3440_v48 = vmax.f32 %v3420_v45, 0.0  ;;  %v4375_v59 = vpop.eup %4374  ;;  %v3326_v58 = vadd.f32 1e-05, %v3286_v19  ;;  %v3244_v1 = vpop.f32.mrb[48].mxu0  ;;  %v6928_v36 = vsub.f32 %v6198_v6, %v6379_v22 }
 0x483   :  { %v3390_v26 = vmul.f32 %v6421_v17, %v3358_v2  ;;  %v3475_v10 = vpack.c.bf16 %v3439_v63, %v3437_v61  ;;  %v6929_v56 = vsub.f32 %v6194_v29, %v6381_v11  ;;  %4384 = vrsqrt.f32 %v3325_v42  ;;  %v3246_v4 = vpop.f32.mrb[49].mxu0 }
 0x484   :  { %v3359_v47 = vmul.f32 %v4373_v23, %v6928_v36  ;;  %v3421_v27 = vadd.f32 %v6416_v16, %v3389_v46  ;;  %v3287_v5 = vsub.f32 %v3244_v1, %v3267_v60  ;;  %v3476_v52 = vpack.c.bf16 %v3440_v48, %v3438_v30 }
 0x485   :  { %v3360_v34 = vmul.f32 %v4375_v59, %v6929_v56  ;;  %4386 = vrsqrt.f32 %v3326_v58  ;;  %v3288_v7 = vsub.f32 %v3246_v4, %v3268_v15  ;;  %v3422_v20 = vadd.f32 %v6424_v21, %v3390_v26  ;;  %v4377_v44 = vpop.eup %4376 }
 0x486   :  { %v3391_v40 = vmul.f32 %v6413_v57, %v3359_v47  ;;  %v3302_v6 = vsub.f32 %v6205_v32, %v6385_v14  ;;  %v3327_v22 = vadd.f32 1e-05, %v3287_v5  ;;  %4056 = vmatprep.mubr.msk.bf16.mxu0 %vm2918_vm13, %v3476_v52  ;;  %v4379_v11 = vpop.eup %4378  ;;  %v6930_v15 = vsub.f32 %v6209_v41, %v6383_v51 }
 0x487   :  { %v3392_v29 = vmul.f32 %v6421_v17, %v3360_v34  ;;  %v3328_v12 = vadd.f32 1e-05, %v3288_v7  ;;  %3556 = vmatmul.mubr.bf16.gmra.mrb[56].mxu0 %v3475_v10  ;;  %v3303_v43 = vsub.f32 %v6220_v55, %v6387_v8  ;;  %v3441_v14 = vmax.f32 %v3421_v27, 0.0 }
 0x488   :  { %v3423_v60 = vadd.f32 %v6416_v16, %v3391_v40  ;;  %v3361_v18 = vmul.f32 %v4377_v44, %v6930_v15  ;;  %v3362_v24 = vmul.f32 %v4379_v11, %v3302_v6  ;;  %4388 = vrsqrt.f32 %v3327_v22 }
 0x489   :  { %v3424_v32 = vadd.f32 %v6424_v21, %v3392_v29  ;;  %4390 = vrsqrt.f32 %v3328_v12  ;;  %v4381_v31 = vpop.eup %4380  ;;  %v3304_v61 = vsub.f32 %v6216_v62, %v6389_v13  ;;  %v3442_v28 = vmax.f32 %v3422_v20, 0.0 }
 0x48a   :  { %v3443_v35 = vmax.f32 %v3423_v60, 0.0  ;;  %v3393_v25 = vmul.f32 %v6413_v57, %v3361_v18  ;;  %v3394_v41 = vmul.f32 %v6421_v17, %v3362_v24  ;;  %v4383_v51 = vpop.eup %4382  ;;  %v3363_v55 = vmul.f32 %v4381_v31, %v3303_v43  ;;  %v3589_v60 = vld [vmem:[%s6826_s15 + $0x8] sm:$0xff] }
 0x48b   :  { %v3444_v39 = vmax.f32 %v3424_v32, 0.0  ;;  %v3364_v2 = vmul.f32 %v4383_v51, %v3304_v61  ;;  %v3305_v45 = vsub.f32 %v6231_v53, %v6391_v9  ;;  %v3306_v62 = vsub.f32 %v6227_v0, %v6393_v38  ;;  %v6931_v38 = vld [vmem:[#allocation16_spill] sm:$0xff] }
 0x48c   :  { %v3477_v54 = vpack.c.bf16 %v3443_v35, %v3441_v14  ;;  %v3425_v8 = vadd.f32 %v6416_v16, %v3393_v25  ;;  %v3426_v33 = vadd.f32 %v6424_v21, %v3394_v41  ;;  %v3395_v19 = vmul.f32 %v6413_v57, %v3363_v55  ;;  %v3590_v35 = vld [vmem:[%s6826_s15 + $0x10] sm:$0xff] }
 0x48d   :  { %v3478_v37 = vpack.c.bf16 %v3444_v39, %v3442_v28  ;;  %v4385_v63 = vpop.eup %4384  ;;  %v3396_v13 = vmul.f32 %v6421_v17, %v3364_v2  ;;  %v3307_v53 = vsub.f32 %v6242_v3, %v6395_v50  ;;  %v3308_v58 = vsub.f32 %v6931_v38, %v6397_v49  ;;  %v3591_v39 = vld [vmem:[%s6826_s15 + $0x18] sm:$0xff] }
 0x48e   :  { %v3427_v23 = vadd.f32 %v6416_v16, %v3395_v19  ;;  %v3365_v42 = vmul.f32 %v4385_v63, %v3305_v45  ;;  %v3445_v9 = vmax.f32 %v3425_v8, 0.0  ;;  %v3446_v1 = vmax.f32 %v3426_v33, 0.0  ;;  %v3595_v38 = vld [vmem:[%s6826_s15 + $0x38] sm:$0xff] }
 0x48f   :  { %4057 = vmatprep.mubr.msk.bf16.mxu0 %vm2918_vm13, %v3478_v37  ;;  %v4387_v46 = vpop.eup %4386  ;;  %v3428_v48 = vadd.f32 %v6424_v21, %v3396_v13  ;;  %v3592_v37 = vld [vmem:[%s6826_s15 + $0x20] sm:$0xff] }
 0x490   :  { %3564 = vmatmul.mubr.bf16.gmra.mrb[60].mxu0 %v3477_v54  ;;  %v3366_v30 = vmul.f32 %v4387_v46, %v3306_v62  ;;  %v3447_v26 = vmax.f32 %v3427_v23, 0.0  ;;  %v3397_v59 = vmul.f32 %v6413_v57, %v3365_v42  ;;  %v3593_v62 = vld [vmem:[%s6826_s15 + $0x28] sm:$0xff] }
 0x491   :  { %v3448_v10 = vmax.f32 %v3428_v48, 0.0 }
 0x492   :  { %v4389_v0 = vpop.eup %4388  ;;  %v3398_v36 = vmul.f32 %v6421_v17, %v3366_v30  ;;  %v3479_v27 = vpack.c.bf16 %v3447_v26, %v3445_v9  ;;  %v3429_v34 = vadd.f32 %v6416_v16, %v3397_v59  ;;  %v3594_v9 = vld [vmem:[%s6826_s15 + $0x30] sm:$0xff] }
 0x493   :  { %v4391_v47 = vpop.eup %4390  ;;  %v3367_v56 = vmul.f32 %v4389_v0, %v3307_v53  ;;  %v3480_v4 = vpack.c.bf16 %v3448_v10, %v3446_v1 }
 0x494   :  { %v3368_v5 = vmul.f32 %v4391_v47, %v3308_v58  ;;  %v3430_v3 = vadd.f32 %v6424_v21, %v3398_v36  ;;  %v3449_v20 = vmax.f32 %v3429_v34, 0.0  ;;  %v3596_v34 = vld [vmem:[%s6826_s15 + $0x40] sm:$0xff] }
 0x495   :  { %v3399_v50 = vmul.f32 %v6413_v57, %v3367_v56  ;;  %4058 = vmatprep.mubr.msk.bf16.mxu0 %vm2918_vm13, %v3480_v4  ;;  %v6572_v57 = vld [vmem:[%s6821_s10] ss:$0 sm:$0xff] }
 0x496   :  { %v3400_v52 = vmul.f32 %v6421_v17, %v3368_v5  ;;  %v3450_v44 = vmax.f32 %v3430_v3, 0.0 }
 0x497   :  { %v3431_v49 = vadd.f32 %v6416_v16, %v3399_v50  ;;  %v3588_v16 = vld [vmem:[%s6826_s15] sm:$0xff]  ;;  %v3597_v50 = vld [vmem:[%s6826_s15 + $0x48] sm:$0xff] }
 0x498   :  { %3572 = vmatmul.mubr.bf16.gmra.mrb[64].mxu0 %v3479_v27  ;;  %v3432_v7 = vadd.f32 %v6424_v21, %v3400_v52 }
 0x499   :  { %v3451_v40 = vmax.f32 %v3431_v49, 0.0 }
 0x49a   :  { %v3452_v6 = vmax.f32 %v3432_v7, 0.0 }
 0x49b   :  { %v3481_v22 = vpack.c.bf16 %v3451_v40, %v3449_v20 }
 0x49c   :  { %v3482_v29 = vpack.c.bf16 %v3452_v6, %v3450_v44  ;;  %v3783_v6 = vld [vmem:[%s6824_s13] sm:$0xff] }
 0x49e   :  { %4059 = vmatprep.mubr.msk.bf16.mxu0 %vm2918_vm13, %v3482_v29 }
 0x4a0   :  { %3580 = vmatmul.mubr.bf16.gmra.mrb[68].mxu0 %v3481_v22  ;;  %v3784_v22 = vld [vmem:[%s6824_s13 + $0x8] sm:$0xff] }
 0x4a1   :  { %v3792_v29 = vpack.c.bf16 %v3784_v22, %v3783_v6 }
 0x4a3   :  { %4104 = vmatpush3.bf16.msra.mxu1 %v3792_v29 }
 0x551   :  { %v3549_v17 = vpop.f32.mrb[52].mxu0 }
 0x552   :  { %v3550_v21 = vadd.f32 %v6572_v57, %v3549_v17  ;;  %v3551_v11 = vpop.f32.mrb[53].mxu0 }
 0x553   :  { %v3552_v12 = vpop.f32.mrb[54].mxu0 }
 0x554   :  { %v3553_v15 = vadd.f32 %v6572_v57, %v3552_v12  ;;  %v3554_v18 = vpop.f32.mrb[55].mxu0  ;;  %v6582_v43 = vadd.f32 %v3588_v16, %v3550_v21 }
 0x556   :  { %v3610_v24 = vsel %vm2918_vm13, %v6582_v43, 0.0  ;;  %v6586_v32 = vadd.f32 %v3589_v60, %v3553_v15 }
 0x557   :  { %3611 = vadd.xlane.f32.xlu0 %v3610_v24 }
 0x558   :  { %v3613_v61 = vsel %vm2918_vm13, %v6586_v32, 0.0 }
 0x55a   :  { %v3557_v14 = vpop.f32.mrb[56].mxu0 }
 0x55b   :  { %v3558_v25 = vadd.f32 %v6572_v57, %v3557_v14  ;;  %v3559_v31 = vpop.f32.mrb[57].mxu0  ;;  %3614 = vadd.xlane.f32.xlu0 %v3613_v61 }
 0x55c   :  { %v3560_v28 = vpop.f32.mrb[58].mxu0 }
 0x55d   :  { %v3561_v41 = vadd.f32 %v6572_v57, %v3560_v28  ;;  %v3562_v51 = vpop.f32.mrb[59].mxu0  ;;  %v6598_v54 = vadd.f32 %v3590_v35, %v3558_v25 }
 0x55f   :  { %v3616_v55 = vsel %vm2918_vm13, %v6598_v54, 0.0  ;;  %v6602_v8 = vadd.f32 %v3591_v39, %v3561_v41 }
 0x560   :  { %3617 = vadd.xlane.f32.xlu1 %v3616_v55 }
 0x561   :  { %v3619_v19 = vsel %vm2918_vm13, %v6602_v8, 0.0 }
 0x563   :  { %v3565_v2 = vpop.f32.mrb[60].mxu0 }
 0x564   :  { %v3566_v33 = vadd.f32 %v6572_v57, %v3565_v2  ;;  %v3567_v45 = vpop.f32.mrb[61].mxu0  ;;  %3620 = vadd.xlane.f32.xlu1 %v3619_v19 }
 0x565   :  { %v3568_v63 = vpop.f32.mrb[62].mxu0 }
 0x566   :  { %v3569_v13 = vadd.f32 %v6572_v57, %v3568_v63  ;;  %v3570_v46 = vpop.f32.mrb[63].mxu0  ;;  %v6614_v23 = vadd.f32 %v3592_v37, %v3566_v33 }
 0x568   :  { %v3622_v42 = vsel %vm2918_vm13, %v6614_v23, 0.0  ;;  %v6618_v30 = vadd.f32 %v3593_v62, %v3569_v13 }
 0x569   :  { %3623 = vadd.xlane.f32.xlu0 %v3622_v42 }
 0x56a   :  { %v3625_v48 = vsel %vm2918_vm13, %v6618_v30, 0.0 }
 0x56b   :  { %v3573_v53 = vpop.f32.mrb[64].mxu0  ;;  %3626 = vadd.xlane.f32.xlu1 %v3625_v48 }
 0x56c   :  { %v3574_v26 = vadd.f32 %v6572_v57, %v3573_v53  ;;  %v3575_v59 = vpop.f32.mrb[65].mxu0 }
 0x56d   :  { %v3576_v0 = vpop.f32.mrb[66].mxu0 }
 0x56e   :  { %v3577_v58 = vadd.f32 %v6572_v57, %v3576_v0  ;;  %v3578_v1 = vpop.f32.mrb[67].mxu0  ;;  %v6630_v10 = vadd.f32 %v3594_v9, %v3574_v26 }
 0x570   :  { %v3628_v36 = vsel %vm2918_vm13, %v6630_v10, 0.0  ;;  %v6634_v47 = vadd.f32 %v3595_v38, %v3577_v58 }
 0x571   :  { %3629 = vadd.xlane.f32.xlu0 %v3628_v36 }
 0x572   :  { %v3631_v27 = vsel %vm2918_vm13, %v6634_v47, 0.0 }
 0x573   :  { %3632 = vadd.xlane.f32.xlu1 %v3631_v27  ;;  %v3581_v56 = vpop.f32.mrb[68].mxu0 }
 0x574   :  { %v3582_v5 = vadd.f32 %v6572_v57, %v3581_v56  ;;  %v3583_v4 = vpop.f32.mrb[69].mxu0 }
 0x575   :  { %v3584_v3 = vpop.f32.mrb[70].mxu0  ;;  %v3786_v4 = vld [vmem:[%s6824_s13 + $0x18] sm:$0xff] }
 0x576   :  { %v3585_v52 = vadd.f32 %v6572_v57, %v3584_v3  ;;  %v3586_v49 = vpop.f32.mrb[71].mxu0  ;;  %v3606_v7 = vadd.f32 %v3596_v34, %v3582_v5  ;;  %v6932_v57 = vmov 0.0   ;;  %v3785_v5 = vld [vmem:[%s6824_s13 + $0x10] sm:$0xff] }
 0x577   :  { %4105 = vmatprep.subr.bf16.mxu1 %v6932_v57  ;;  %v3793_v3 = vpack.c.bf16 %v3786_v4, %v3785_v5  ;;  %4107 = vmatprep.mubr.msk.bf16.mxu1 %vm4578_vm8, %v6932_v57 }
 0x578   :  { %v3634_v20 = vsel %vm2918_vm13, %v3606_v7, 0.0  ;;  %v3607_v40 = vadd.f32 %v3597_v50, %v3585_v52 }
 0x579   :  { %3635 = vadd.xlane.f32.xlu0 %v3634_v20  ;;  %4106 = vmatpush3.bf16.msra.mxu1 %v3793_v3 }
 0x57a   :  { %v3637_v44 = vsel %vm2918_vm13, %v3607_v40, 0.0 }
 0x57b   :  { %3638 = vadd.xlane.f32.xlu1 %v3637_v44 }
 0x5e4   :  { %v3612_v17 = vpop.xlane.xlu0 %3611 }
 0x5e5   :  { %v3641_v16 = vmul.f32 0.03125, %v3612_v17 }
 0x5e7   :  { %v6656_v21 = vsub.f32 %v6582_v43, %v3641_v16 }
 0x5e8   :  { %v3615_v11 = vpop.xlane.xlu0 %3614 }
 0x5e9   :  { %v3642_v12 = vmul.f32 0.03125, %v3615_v11  ;;  %v3661_v60 = vmul.f32 %v6656_v21, %v6656_v21  ;;  %v6721_v11 = vld [vmem:[#allocation9] ss:$0 sm:$0xff] }
 0x5eb   :  { %v6661_v15 = vsub.f32 %v6586_v32, %v3642_v12  ;;  %v3671_v18 = vsel %vm2918_vm13, %v3661_v60, 0.0 }
 0x5ec   :  { %3672 = vadd.xlane.f32.xlu0 %v3671_v18 }
 0x5ed   :  { %v3618_v24 = vpop.xlane.xlu1 %3617  ;;  %v3662_v35 = vmul.f32 %v6661_v15, %v6661_v15 }
 0x5ee   :  { %v3643_v14 = vmul.f32 0.03125, %v3618_v24 }
 0x5ef   :  { %v3674_v43 = vsel %vm2918_vm13, %v3662_v35, 0.0 }
 0x5f0   :  { %v6667_v25 = vsub.f32 %v6598_v54, %v3643_v14  ;;  %3675 = vadd.xlane.f32.xlu1 %v3674_v43 }
 0x5f1   :  { %v3621_v31 = vpop.xlane.xlu1 %3620 }
 0x5f2   :  { %v3644_v61 = vmul.f32 0.03125, %v3621_v31  ;;  %v3663_v32 = vmul.f32 %v6667_v25, %v6667_v25  ;;  %v6725_v31 = vld [vmem:[#allocation10] ss:$0 sm:$0xff] }
 0x5f4   :  { %v6673_v28 = vsub.f32 %v6602_v8, %v3644_v61  ;;  %v3677_v39 = vsel %vm2918_vm13, %v3663_v32, 0.0 }
 0x5f5   :  { %3678 = vadd.xlane.f32.xlu0 %v3677_v39 }
 0x5f6   :  { %v3624_v41 = vpop.xlane.xlu0 %3623  ;;  %v3664_v54 = vmul.f32 %v6673_v28, %v6673_v28 }
 0x5f7   :  { %v3645_v51 = vmul.f32 0.03125, %v3624_v41 }
 0x5f8   :  { %v3627_v55 = vpop.xlane.xlu1 %3626  ;;  %v3680_v33 = vsel %vm2918_vm13, %v3664_v54, 0.0 }
 0x5f9   :  { %v6679_v2 = vsub.f32 %v6614_v23, %v3645_v51  ;;  %v3646_v37 = vmul.f32 0.03125, %v3627_v55  ;;  %3681 = vadd.xlane.f32.xlu1 %v3680_v33 }
 0x5fb   :  { %v6683_v45 = vsub.f32 %v6618_v30, %v3646_v37  ;;  %v3665_v8 = vmul.f32 %v6679_v2, %v6679_v2 }
 0x5fd   :  { %v3683_v19 = vsel %vm2918_vm13, %v3665_v8, 0.0  ;;  %v3666_v63 = vmul.f32 %v6683_v45, %v6683_v45 }
 0x5fe   :  { %v3630_v62 = vpop.xlane.xlu0 %3629  ;;  %3684 = vadd.xlane.f32.xlu0 %v3683_v19 }
 0x5ff   :  { %v3647_v13 = vmul.f32 0.03125, %v3630_v62  ;;  %v3686_v46 = vsel %vm2918_vm13, %v3666_v63, 0.0 }
 0x600   :  { %v3633_v23 = vpop.xlane.xlu1 %3632  ;;  %3687 = vadd.xlane.f32.xlu1 %v3686_v46 }
 0x601   :  { %v6692_v42 = vsub.f32 %v6630_v10, %v3647_v13  ;;  %v3648_v30 = vmul.f32 0.03125, %v3633_v23 }
 0x603   :  { %v6695_v48 = vsub.f32 %v6634_v47, %v3648_v30  ;;  %v3667_v53 = vmul.f32 %v6692_v42, %v6692_v42 }
 0x605   :  { %v3689_v9 = vsel %vm2918_vm13, %v3667_v53, 0.0  ;;  %v3668_v26 = vmul.f32 %v6695_v48, %v6695_v48 }
 0x606   :  { %3690 = vadd.xlane.f32.xlu0 %v3689_v9  ;;  %v3636_v59 = vpop.xlane.xlu0 %3635 }
 0x607   :  { %v3649_v0 = vmul.f32 0.03125, %v3636_v59  ;;  %v3692_v38 = vsel %vm2918_vm13, %v3668_v26, 0.0 }
 0x608   :  { %3693 = vadd.xlane.f32.xlu1 %v3692_v38  ;;  %v3639_v58 = vpop.xlane.xlu1 %3638 }
 0x609   :  { %v6703_v1 = vsub.f32 %v3606_v7, %v3649_v0  ;;  %v3650_v10 = vmul.f32 0.03125, %v3639_v58 }
 0x60b   :  { %v6705_v36 = vsub.f32 %v3607_v40, %v3650_v10  ;;  %v3669_v47 = vmul.f32 %v6703_v1, %v6703_v1 }
 0x60d   :  { %v3695_v27 = vsel %vm2918_vm13, %v3669_v47, 0.0  ;;  %v3670_v56 = vmul.f32 %v6705_v36, %v6705_v36 }
 0x60e   :  { %3696 = vadd.xlane.f32.xlu0 %v3695_v27 }
 0x60f   :  { %v3698_v34 = vsel %vm2918_vm13, %v3670_v56, 0.0 }
 0x610   :  { %3699 = vadd.xlane.f32.xlu1 %v3698_v34 }
 0x679   :  { %v3673_v50 = vpop.xlane.xlu0 %3672 }
 0x67a   :  { %v3701_v52 = vmul.f32 0.03125, %v3673_v50 }
 0x67c   :  { %v3711_v49 = vadd.f32 1e-05, %v3701_v52 }
 0x67d   :  { %v3676_v7 = vpop.xlane.xlu1 %3675 }
 0x67e   :  { %4392 = vrsqrt.f32 %v3711_v49  ;;  %v3702_v20 = vmul.f32 0.03125, %v3676_v7 }
 0x680   :  { %v3712_v40 = vadd.f32 1e-05, %v3702_v20 }
 0x682   :  { %v3679_v44 = vpop.xlane.xlu0 %3678  ;;  %4394 = vrsqrt.f32 %v3712_v40 }
 0x683   :  { %v3703_v6 = vmul.f32 0.03125, %v3679_v44 }
 0x685   :  { %v3713_v22 = vadd.f32 1e-05, %v3703_v6 }
 0x686   :  { %v3682_v29 = vpop.xlane.xlu1 %3681 }
 0x687   :  { %4396 = vrsqrt.f32 %v3713_v22  ;;  %v3704_v17 = vmul.f32 0.03125, %v3682_v29 }
 0x688   :  { %v4393_v16 = vpop.eup %4392 }
 0x689   :  { %v3714_v12 = vadd.f32 1e-05, %v3704_v17  ;;  %v3731_v60 = vmul.f32 %v4393_v16, %v6656_v21 }
 0x68b   :  { %v3685_v18 = vpop.xlane.xlu0 %3684  ;;  %4398 = vrsqrt.f32 %v3714_v12  ;;  %v3747_v14 = vmul.f32 %v6721_v11, %v3731_v60 }
 0x68c   :  { %v3705_v24 = vmul.f32 0.03125, %v3685_v18  ;;  %v4395_v43 = vpop.eup %4394 }
 0x68d   :  { %v3688_v35 = vpop.xlane.xlu1 %3687  ;;  %v3732_v39 = vmul.f32 %v4395_v43, %v6661_v15  ;;  %v3763_v51 = vadd.f32 %v6725_v31, %v3747_v14 }
 0x68e   :  { %v3715_v61 = vadd.f32 1e-05, %v3705_v24  ;;  %v3706_v32 = vmul.f32 0.03125, %v3688_v35 }
 0x68f   :  { %v3748_v54 = vmul.f32 %v6721_v11, %v3732_v39  ;;  %v3773_v19 = vmax.f32 %v3763_v51, 0.0 }
 0x690   :  { %4400 = vrsqrt.f32 %v3715_v61  ;;  %v3716_v41 = vadd.f32 1e-05, %v3706_v32 }
 0x691   :  { %v4397_v21 = vpop.eup %4396  ;;  %v3764_v55 = vadd.f32 %v6725_v31, %v3748_v54 }
 0x692   :  { %4402 = vrsqrt.f32 %v3716_v41  ;;  %v3733_v37 = vmul.f32 %v4397_v21, %v6667_v25 }
 0x693   :  { %v3691_v33 = vpop.xlane.xlu0 %3690  ;;  %v3774_v63 = vmax.f32 %v3764_v55, 0.0 }
 0x694   :  { %v3707_v8 = vmul.f32 0.03125, %v3691_v33  ;;  %v3749_v13 = vmul.f32 %v6721_v11, %v3733_v37 }
 0x695   :  { %v3694_v62 = vpop.xlane.xlu1 %3693  ;;  %v4399_v15 = vpop.eup %4398  ;;  %v3787_v53 = vpack.c.bf16 %v3774_v63, %v3773_v19 }
 0x696   :  { %v3717_v46 = vadd.f32 1e-05, %v3707_v8  ;;  %v3708_v23 = vmul.f32 0.03125, %v3694_v62  ;;  %v3734_v30 = vmul.f32 %v4399_v15, %v6673_v28  ;;  %v3765_v25 = vadd.f32 %v6725_v31, %v3749_v13 }
 0x697   :  { %4108 = vmatmul.mubr.msk.bf16.vlgmr.msra.gmra.mrb[20].mxu1 %vm2918_vm13, %v3787_v53 }
 0x698   :  { %4404 = vrsqrt.f32 %v3717_v46  ;;  %v3718_v9 = vadd.f32 1e-05, %v3708_v23  ;;  %v3750_v26 = vmul.f32 %v6721_v11, %v3734_v30  ;;  %4111 = vmatprep.mubr.msk.bf16.mxu1 %vm4578_vm8, %v6932_v57  ;;  %v3775_v56 = vmax.f32 %v3765_v25, 0.0 }
 0x69a   :  { %v4401_v59 = vpop.eup %4400  ;;  %4406 = vrsqrt.f32 %v3718_v9  ;;  %v3766_v58 = vadd.f32 %v6725_v31, %v3750_v26 }
 0x69b   :  { %v3735_v0 = vmul.f32 %v4401_v59, %v6679_v2  ;;  %v3697_v38 = vpop.xlane.xlu0 %3696 }
 0x69c   :  { %v4403_v28 = vpop.eup %4402  ;;  %v3709_v10 = vmul.f32 0.03125, %v3697_v38  ;;  %v3776_v34 = vmax.f32 %v3766_v58, 0.0 }
 0x69d   :  { %v3736_v47 = vmul.f32 %v4403_v28, %v6683_v45  ;;  %v3700_v27 = vpop.xlane.xlu1 %3699  ;;  %v3751_v5 = vmul.f32 %v6721_v11, %v3735_v0 }
 0x69e   :  { %v3719_v4 = vadd.f32 1e-05, %v3709_v10  ;;  %v3710_v3 = vmul.f32 0.03125, %v3700_v27  ;;  %v3788_v50 = vpack.c.bf16 %v3776_v34, %v3775_v56 }
 0x69f   :  { %v3752_v52 = vmul.f32 %v6721_v11, %v3736_v47  ;;  %v3767_v2 = vadd.f32 %v6725_v31, %v3751_v5 }
 0x6a0   :  { %4408 = vrsqrt.f32 %v3719_v4  ;;  %v3720_v49 = vadd.f32 1e-05, %v3710_v3  ;;  %4112 = vmatmul.mubr.msk.bf16.gmra.mrb[24].mxu1 %vm2918_vm13, %v3788_v50 }
 0x6a1   :  { %v3768_v7 = vadd.f32 %v6725_v31, %v3752_v52  ;;  %4115 = vmatprep.mubr.msk.bf16.mxu1 %vm4578_vm8, %v6932_v57  ;;  %v3777_v22 = vmax.f32 %v3767_v2, 0.0 }
 0x6a2   :  { %v4405_v20 = vpop.eup %4404  ;;  %4410 = vrsqrt.f32 %v3720_v49 }
 0x6a3   :  { %v3737_v45 = vmul.f32 %v4405_v20, %v6692_v42  ;;  %v3778_v40 = vmax.f32 %v3768_v7, 0.0 }
 0x6a4   :  { %v4407_v44 = vpop.eup %4406 }
 0x6a5   :  { %v3738_v6 = vmul.f32 %v4407_v44, %v6695_v48  ;;  %v3753_v29 = vmul.f32 %v6721_v11, %v3737_v45  ;;  %v3789_v17 = vpack.c.bf16 %v3778_v40, %v3777_v22 }
 0x6a7   :  { %v3754_v16 = vmul.f32 %v6721_v11, %v3738_v6  ;;  %v3769_v12 = vadd.f32 %v6725_v31, %v3753_v29 }
 0x6a8   :  { %4116 = vmatmul.mubr.msk.bf16.gmra.mrb[28].mxu1 %vm2918_vm13, %v3789_v17 }
 0x6a9   :  { %v3770_v60 = vadd.f32 %v6725_v31, %v3754_v16  ;;  %4119 = vmatprep.mubr.msk.bf16.mxu1 %vm4578_vm8, %v6932_v57  ;;  %v3779_v35 = vmax.f32 %v3769_v12, 0.0 }
 0x6aa   :  { %v4409_v18 = vpop.eup %4408 }
 0x6ab   :  { %v3739_v42 = vmul.f32 %v4409_v18, %v6703_v1  ;;  %v3780_v24 = vmax.f32 %v3770_v60, 0.0 }
 0x6ac   :  { %v4411_v48 = vpop.eup %4410 }
 0x6ad   :  { %v3740_v14 = vmul.f32 %v4411_v48, %v6705_v36  ;;  %v3755_v43 = vmul.f32 %v6721_v11, %v3739_v42  ;;  %v3790_v61 = vpack.c.bf16 %v3780_v24, %v3779_v35  ;;  %v4062_v36 = vld [vmem:[%s6825_s14] ss:$0 sm:$0xff] }
 0x6af   :  { %v3756_v32 = vmul.f32 %v6721_v11, %v3740_v14  ;;  %v3771_v39 = vadd.f32 %v6725_v31, %v3755_v43 }
 0x6b0   :  { %4120 = vmatmul.mubr.msk.bf16.gmra.mrb[32].mxu1 %vm2918_vm13, %v3790_v61 }
 0x6b1   :  { %v3772_v41 = vadd.f32 %v6725_v31, %v3756_v32  ;;  %4123 = vmatprep.mubr.msk.bf16.mxu1 %vm4578_vm8, %v6932_v57  ;;  %v3781_v51 = vmax.f32 %v3771_v39, 0.0 }
 0x6b3   :  { %v3782_v1 = vmax.f32 %v3772_v41, 0.0 }
 0x6b5   :  { %v3791_v54 = vpack.c.bf16 %v3782_v1, %v3781_v51 }
 0x6b8   :  { %4124 = vmatmul.mubr.msk.bf16.gmra.mrb[36].mxu1 %vm2918_vm13, %v3791_v54 }
 0x76a   :  { %v3850_v21 = vpop.f32.mrb[20].mxu1 }
 0x76b   :  { %v3851_v11 = vadd.f32 %v4062_v36, %v3850_v21  ;;  %v4109_v55 = vpop.f32.mrb[21].mxu1 }
 0x76c   :  { %v3853_v37 = vpop.f32.mrb[22].mxu1 }
 0x76d   :  { %3889 = vst.msk [vmem:[%s6933_s11] sm:$0xff] %vm2918_vm13, %v3851_v11  ;;  %v3854_v31 = vadd.f32 %v4062_v36, %v3853_v37  ;;  %v4110_v57 = vpop.f32.mrb[23].mxu1 }
 0x76f   :  { %3890 = vst.msk [vmem:[%s6933_s11 + $0x8] sm:$0xff] %vm2918_vm13, %v3854_v31 }
 0x773   :  { %v3858_v33 = vpop.f32.mrb[24].mxu1 }
 0x774   :  { %v3859_v8 = vadd.f32 %v4062_v36, %v3858_v33  ;;  %v4113_v19 = vpop.f32.mrb[25].mxu1 }
 0x775   :  { %v3861_v63 = vpop.f32.mrb[26].mxu1 }
 0x776   :  { %3891 = vst.msk [vmem:[%s6933_s11 + $0x10] sm:$0xff] %vm2918_vm13, %v3859_v8  ;;  %v3862_v62 = vadd.f32 %v4062_v36, %v3861_v63  ;;  %v4114_v13 = vpop.f32.mrb[27].mxu1 }
 0x778   :  { %3892 = vst.msk [vmem:[%s6933_s11 + $0x18] sm:$0xff] %vm2918_vm13, %v3862_v62 }
 0x77b   :  { %v3866_v15 = vpop.f32.mrb[28].mxu1 }
 0x77c   :  { %v3867_v46 = vadd.f32 %v4062_v36, %v3866_v15  ;;  %v4117_v23 = vpop.f32.mrb[29].mxu1 }
 0x77d   :  { %v3869_v30 = vpop.f32.mrb[30].mxu1 }
 0x77e   :  { %3893 = vst.msk [vmem:[%s6933_s11 + $0x20] sm:$0xff] %vm2918_vm13, %v3867_v46  ;;  %v3870_v53 = vadd.f32 %v4062_v36, %v3869_v30  ;;  %v4118_v9 = vpop.f32.mrb[31].mxu1 }
 0x780   :  { %3894 = vst.msk [vmem:[%s6933_s11 + $0x28] sm:$0xff] %vm2918_vm13, %v3870_v53 }
 0x783   :  { %v3874_v26 = vpop.f32.mrb[32].mxu1 }
 0x784   :  { %v3875_v25 = vadd.f32 %v4062_v36, %v3874_v26  ;;  %v4121_v59 = vpop.f32.mrb[33].mxu1 }
 0x785   :  { %v3877_v0 = vpop.f32.mrb[34].mxu1 }
 0x786   :  { %3895 = vst.msk [vmem:[%s6933_s11 + $0x30] sm:$0xff] %vm2918_vm13, %v3875_v25  ;;  %v3878_v38 = vadd.f32 %v4062_v36, %v3877_v0  ;;  %v4122_v58 = vpop.f32.mrb[35].mxu1 }
 0x788   :  { %3896 = vst.msk [vmem:[%s6933_s11 + $0x38] sm:$0xff] %vm2918_vm13, %v3878_v38 }
 0x78b   :  { %v3882_v28 = vpop.f32.mrb[36].mxu1 }
 0x78c   :  { %v3883_v10 = vadd.f32 %v4062_v36, %v3882_v28  ;;  %v4125_v47 = vpop.f32.mrb[37].mxu1 }
 0x78d   :  { %v3885_v27 = vpop.f32.mrb[38].mxu1 }
 0x78e   :  { %3897 = vst.msk [vmem:[%s6933_s11 + $0x40] sm:$0xff] %vm2918_vm13, %v3883_v10  ;;  %v3886_v56 = vadd.f32 %v4062_v36, %v3885_v27  ;;  %v4126_v34 = vpop.f32.mrb[39].mxu1 }
 0x790   :  { %3898 = vst.msk [vmem:[%s6933_s11 + $0x48] sm:$0xff] %vm2918_vm13, %v3886_v56 }
 0x791   :  { %3903 = vsyncpa [#allocation3], 1 }
 0x792   :  { %3904 = vsyncpa [#allocation5], 1 }
 0x793   :  { %3905 = vsyncpa [#allocation8], 1 }
 0x794   :  { %3906 = vsyncpa [#allocation11], 1 }

</bundles_post_ra>
